<compile_context>
chip_gen: v5e
topology: v5e:2x2
jax: 0.10.0
libtpu: 0.0.40
codegen_flags: <defaults>
</compile_context>

<pallas_src>
import functools
import math

import jax
import jax.numpy as jnp
from jax.experimental import pallas as pl
from jax.experimental.pallas import tpu as pltpu

EPS = 1e-3                       # nn.BatchNorm2d(..., eps=1e-3)
VMEM_LIMIT = 64 * 1024 * 1024    # explicit scoped-VMEM budget (fits all gens)


# ---------------------------------------------------------------------------
# In-kernel helpers
# ---------------------------------------------------------------------------
def _row_col_iota(M, W):
    """Row index m (M,1) int32 and column index m % W, built in-kernel."""
    row = jax.lax.broadcasted_iota(jnp.int32, (M, 1), 0)
    if W & (W - 1) == 0:                       # power of two -> cheap AND
        col = row & (W - 1)
    else:
        rf = row.astype(jnp.float32)
        col = (rf - jnp.floor(rf / float(W)) * float(W)).astype(jnp.int32)
    return row, col


def _shift_rows(a, t, row):
    """result[m] = a[m + t] with zero fill outside [0, M). t is a Python int.

    Uses an XLU roll + mask when the row count is sublane-aligned; falls back
    to the concatenate-with-zeros shift otherwise (tiny tiles only).
    """
    m = a.shape[0]
    if t == 0:
        return a
    if abs(t) >= m:
        return jnp.zeros_like(a)
    if m % 8 == 0:
        r = pltpu.roll(a, (-t) % m, axis=0)    # r[i] = a[(i + t) mod m]
        if t > 0:
            return jnp.where(row < (m - t), r, 0.0)
        return jnp.where(row >= (-t), r, 0.0)
    zeros = jnp.zeros((abs(t),) + a.shape[1:], a.dtype)
    if t > 0:
        return jnp.concatenate([a[t:], zeros], axis=0)
    return jnp.concatenate([zeros, a[:m + t]], axis=0)


# ---------------------------------------------------------------------------
# Pallas kernels
# ---------------------------------------------------------------------------
def _down_kernel(p_ref, w_ref, cb_ref, ps_ref, o_ref, *, Wo):
    """Fused DownsamplerBlock for one batch element.

    p_ref : (1, 4, Mo, Cin) bf16  stride-2 phases of the input (iy*2+ix)
    w_ref : (9*Cin, Cc)     bf16  stacked 3x3 taps (ky*3+kx major), BN folded
    cb_ref: (1, Cc)         f32   conv additive shift = bias*scale + bn_shift
    ps_ref: (2, Cin)        f32   pool BN scale (row 0) / shift (row 1)
    o_ref : (1, Mo, Cc+Cin) bf16  relu(BN(concat([conv, pool])))
    """
    Mo = p_ref.shape[2]
    row, col = _row_col_iota(Mo, Wo)
    ph = p_ref[0].astype(jnp.float32)                 # (4, Mo, Cin) f32

    # kernel offset (relative to 2*out index) -> (phase parity, output shift)
    tap_map = {0: (1, -1), 1: (0, 0), 2: (1, 0)}

    pieces = []
    for ky in range(3):
        py, sy = tap_map[ky]
        for kx in range(3):
            px, sx = tap_map[kx]
            a = _shift_rows(ph[py * 2 + px], sy * Wo + sx, row)
            if sx == -1:                              # wo == 0 reads column -1
                a = jnp.where(col >= 1, a, 0.0)
            pieces.append(a)
    # One stacked-K MXU matmul instead of 9 tiny-K pushes.
    lhs = jnp.concatenate(pieces, axis=-1).astype(jnp.bfloat16)   # (Mo, 9*Cin)
    conv = jnp.dot(lhs, w_ref[...], preferred_element_type=jnp.float32)
    conv = conv + cb_ref[...]                         # (Mo, Cc) f32

    pool = jnp.maximum(jnp.maximum(ph[0], ph[1]), jnp.maximum(ph[2], ph[3]))
    pool = pool * ps_ref[0:1] + ps_ref[1:2]           # (Mo, Cin) f32

    out = jnp.maximum(jnp.concatenate([conv, pool], axis=-1), 0.0)
    o_ref[0] = out.astype(o_ref.dtype)


def _nb_chain_kernel(x_ref, w1_ref, w2_ref, w3_ref, w4_ref, s_ref, o_ref,
                     *, W, dils):
    """Chain of len(dils) fused non_bottleneck_1d blocks for one batch element.

    x_ref : (1, M, C)        bf16   (M = H*W, channels on lanes)
    w*_ref: (nblk, 3, C, C)  bf16   per-block per-tap weights (BN folded in 2/4)
    s_ref : (nblk, 4, C)     f32    additive shifts (bias or bias*scale+shift)
    o_ref : (1, M, C)        bf16
    The activation (and residual) stays in VMEM across the whole chain.
    """
    M = x_ref.shape[1]
    row, col = _row_col_iota(M, W)

    def conv3(a, w, taps, shift):
        acc = None
        for k, off, cmask in taps:
            if off != 0 and abs(off) >= M:            # statically out of range
                continue
            ak = _shift_rows(a, off, row)
            if cmask is not None:
                ak = jnp.where(cmask, ak, 0.0)
            part = jnp.dot(ak.astype(jnp.bfloat16), w[k],
                           preferred_element_type=jnp.float32)
            acc = part if acc is None else acc + part
        return acc + shift

    def h_taps(d):                                    # (3,1) conv, dilation d
        return ((0, -d * W, None), (1, 0, None), (2, d * W, None))

    def w_taps(d):                                    # (1,3) conv, dilation d
        if d >= W:                                    # boundary taps never hit
            return ((1, 0, None),)
        return ((0, -d, col >= d), (1, 0, None), (2, d, col < (W - d)))

    x = x_ref[0].astype(jnp.float32)                  # residual carried in f32
    for b, dil in enumerate(dils):
        w1 = w1_ref[b]
        w2 = w2_ref[b]
        w3 = w3_ref[b]
        w4 = w4_ref[b]
        s = s_ref[b]
        y = jnp.maximum(conv3(x, w1, h_taps(1), s[0:1]), 0.0)
        y = jnp.maximum(conv3(y, w2, w_taps(1), s[1:2]), 0.0)
        y = jnp.maximum(conv3(y, w3, h_taps(dil), s[2:3]), 0.0)
        y = conv3(y, w4, w_taps(dil), s[3:4])         # BN2 folded
        x = jnp.maximum(y + x, 0.0)                   # residual + relu, f32
    o_ref[0] = x.astype(o_ref.dtype)


# ---------------------------------------------------------------------------
# Block wrappers (parameter folding + pallas_call plumbing)
# ---------------------------------------------------------------------------
def _bn_fold(p):
    scale = p["gamma"] / jnp.sqrt(p["var"] + EPS)
    shift = p["beta"] - p["mean"] * scale
    return scale, shift


def downsampler_block(x, p):
    """x: (N, H, W, Cin) bf16  ->  (N, H/2, W/2, Cout) bf16."""
    N, H, W, Cin = x.shape
    assert H % 2 == 0 and W % 2 == 0
    Cc = p["w"].shape[0]                   # conv output channels = Cout - Cin
    Cout = Cc + Cin
    Ho, Wo = H // 2, W // 2
    Mo = Ho * Wo

    scale, shift = _bn_fold(p["bn"])
    sc_c, sh_c = scale[:Cc], shift[:Cc]
    sc_p, sh_p = scale[Cc:], shift[Cc:]

    # (Cc, Cin, 3, 3) -> (9*Cin, Cc): tap-major (ky*3+kx) rows, BN scale folded.
    wt = jnp.transpose(p["w"], (2, 3, 1, 0)).reshape(9, Cin, Cc)
    wt = (wt * sc_c[None, None, :]).reshape(9 * Cin, Cc).astype(jnp.bfloat16)
    cb = (p["b"] * sc_c + sh_c).reshape(1, Cc).astype(jnp.float32)
    ps = jnp.stack([sc_p, sh_p], axis=0).astype(jnp.float32)        # (2, Cin)

    # TODO(synk): stride-2 phase split kept on the XLA side (shared by conv and
    # pool branches); an in-kernel split needs unaligned sublane reshapes that
    # Mosaic does not reliably lower for these shapes.
    phases = jnp.stack([x[:, 0::2, 0::2, :], x[:, 0::2, 1::2, :],
                        x[:, 1::2, 0::2, :], x[:, 1::2, 1::2, :]], axis=1)
    phases = phases.reshape(N, 4, Mo, Cin).astype(jnp.bfloat16)

    y = pl.pallas_call(
        functools.partial(_down_kernel, Wo=Wo),
        out_shape=jax.ShapeDtypeStruct((N, Mo, Cout), jnp.bfloat16),
        grid=(N,),
        in_specs=[
            pl.BlockSpec((1, 4, Mo, Cin), lambda n: (n, 0, 0, 0)),
            pl.BlockSpec((9 * Cin, Cc), lambda n: (0, 0)),
            pl.BlockSpec((1, Cc), lambda n: (0, 0)),
            pl.BlockSpec((2, Cin), lambda n: (0, 0)),
        ],
        out_specs=pl.BlockSpec((1, Mo, Cout), lambda n: (n, 0, 0)),
        compiler_params=pltpu.CompilerParams(
            dimension_semantics=("parallel",),
            vmem_limit_bytes=VMEM_LIMIT),
    )(phases, wt, cb, ps)
    return y.reshape(N, Ho, Wo, Cout)


def nb1d_chain(x, blocks, dils):
    """Fused chain of non_bottleneck_1d blocks (same resolution / channels)."""
    N, H, W, C = x.shape
    M = H * W
    nblk = len(blocks)

    def h_w(w):   # (C, C, 3, 1) -> (3, Cin, Cout)
        return jnp.transpose(w[:, :, :, 0], (2, 1, 0))

    def v_w(w):   # (C, C, 1, 3) -> (3, Cin, Cout)
        return jnp.transpose(w[:, :, 0, :], (2, 1, 0))

    w1s, w2s, w3s, w4s, shs = [], [], [], [], []
    for p in blocks:
        s1, sh1 = _bn_fold(p["bn1"])
        s2, sh2 = _bn_fold(p["bn2"])
        w1s.append(h_w(p["w31_1"]))
        w2s.append(v_w(p["w13_1"]) * s1[None, None, :])
        w3s.append(h_w(p["w31_2"]))
        w4s.append(v_w(p["w13_2"]) * s2[None, None, :])
        shs.append(jnp.stack([p["b31_1"],
                              p["b13_1"] * s1 + sh1,
                              p["b31_2"],
                              p["b13_2"] * s2 + sh2], axis=0))
    w1 = jnp.stack(w1s).astype(jnp.bfloat16)          # (nblk, 3, C, C)
    w2 = jnp.stack(w2s).astype(jnp.bfloat16)
    w3 = jnp.stack(w3s).astype(jnp.bfloat16)
    w4 = jnp.stack(w4s).astype(jnp.bfloat16)
    sh = jnp.stack(shs).astype(jnp.float32)           # (nblk, 4, C)

    xin = x.reshape(N, M, C).astype(jnp.bfloat16)
    y = pl.pallas_call(
        functools.partial(_nb_chain_kernel, W=W, dils=tuple(dils)),
        out_shape=jax.ShapeDtypeStruct((N, M, C), jnp.bfloat16),
        grid=(N,),
        in_specs=[
            pl.BlockSpec((1, M, C), lambda n: (n, 0, 0)),
            pl.BlockSpec((nblk, 3, C, C), lambda n: (0, 0, 0, 0)),
            pl.BlockSpec((nblk, 3, C, C), lambda n: (0, 0, 0, 0)),
            pl.BlockSpec((nblk, 3, C, C), lambda n: (0, 0, 0, 0)),
            pl.BlockSpec((nblk, 3, C, C), lambda n: (0, 0, 0, 0)),
            pl.BlockSpec((nblk, 4, C), lambda n: (0, 0, 0)),
        ],
        out_specs=pl.BlockSpec((1, M, C), lambda n: (n, 0, 0)),
        compiler_params=pltpu.CompilerParams(
            dimension_semantics=("parallel",),
            vmem_limit_bytes=VMEM_LIMIT),
    )(xin, w1, w2, w3, w4, sh)
    return y.reshape(N, H, W, C)


# ---------------------------------------------------------------------------
# Deterministic parameter construction (synthetic; no checkpoint load)
# ---------------------------------------------------------------------------
def init_params(seed=42):
    key = jax.random.PRNGKey(seed)

    def nxt():
        nonlocal key
        key, sub = jax.random.split(key)
        return sub

    def conv_p(cout, cin, kh, kw):
        fan = cin * kh * kw
        w = jax.random.normal(nxt(), (cout, cin, kh, kw), jnp.float32) / math.sqrt(fan)
        b = 0.01 * jax.random.normal(nxt(), (cout,), jnp.float32)
        return w, b

    def bn_p(c):
        return {
            "gamma": 1.0 + 0.1 * jax.random.normal(nxt(), (c,), jnp.float32),
            "beta": 0.1 * jax.random.normal(nxt(), (c,), jnp.float32),
            "mean": 0.1 * jax.random.normal(nxt(), (c,), jnp.float32),
            "var": 1.0 + 0.1 * jax.random.uniform(nxt(), (c,), jnp.float32),
        }

    def down_p(cin, cout):
        w, b = conv_p(cout - cin, cin, 3, 3)
        return {"w": w, "b": b, "bn": bn_p(cout)}

    def nb_p(c):
        w31_1, b31_1 = conv_p(c, c, 3, 1)
        w13_1, b13_1 = conv_p(c, c, 1, 3)
        w31_2, b31_2 = conv_p(c, c, 3, 1)
        w13_2, b13_2 = conv_p(c, c, 1, 3)
        return {"w31_1": w31_1, "b31_1": b31_1, "w13_1": w13_1, "b13_1": b13_1,
                "bn1": bn_p(c),
                "w31_2": w31_2, "b31_2": b31_2, "w13_2": w13_2, "b13_2": b13_2,
                "bn2": bn_p(c)}

    return {
        "init": down_p(3, 16),
        "down1": down_p(16, 64),
        "nb1_0": nb_p(64),
        "nb1_1": nb_p(64),
        "down2": down_p(64, 128),
        "nb2_0": nb_p(128),
        "nb2_1": nb_p(128),
        "nb2_2": nb_p(128),
        "nb2_3": nb_p(128),
    }


# ---------------------------------------------------------------------------
# Encoder forward  (5 pallas_calls total)
# ---------------------------------------------------------------------------
@jax.jit
def encoder_forward(x_nchw, params):
    x = jnp.transpose(x_nchw, (0, 2, 3, 1)).astype(jnp.bfloat16)  # NCHW -> NHWC
    x = downsampler_block(x, params["init"])        # 3  -> 16,  H/2
    x = downsampler_block(x, params["down1"])       # 16 -> 64,  H/4
    x = nb1d_chain(x, [params["nb1_0"], params["nb1_1"]], (1, 1))
    x = downsampler_block(x, params["down2"])       # 64 -> 128, H/8
    x = nb1d_chain(x, [params["nb2_0"], params["nb2_1"],
                       params["nb2_2"], params["nb2_3"]], (2, 4, 8, 16))
    return jnp.transpose(x, (0, 3, 1, 2)).astype(jnp.float32)     # back to NCHW


if __name__ == "__main__":
    params = init_params()
    x = jax.random.normal(jax.random.PRNGKey(0), (2, 3, 16, 16), jnp.float32)
    out = jax.block_until_ready(encoder_forward(x, params))
    assert out.shape == (2, 128, 2, 2), out.shape
    assert bool(jnp.all(jnp.isfinite(out)))
    print("KERNEL_OK")
</pallas_src>

<mosaic_0001>
module attributes {stable_mosaic.version = 11 : i64} {
  func.func @_down_kernel(%arg0: i32, %arg1: memref<1x4x64x3xbf16, #tpu.memory_space<vmem>>, %arg2: memref<27x13xbf16, #tpu.memory_space<vmem>>, %arg3: memref<1x13xf32, #tpu.memory_space<vmem>>, %arg4: memref<2x3xf32, #tpu.memory_space<vmem>>, %arg5: memref<1x64x16xbf16, #tpu.memory_space<vmem>>) attributes {dimension_semantics = [#tpu.dimension_semantics<parallel>], iteration_bounds = array<i64: 2>, scalar_prefetch = 0 : i64, scratch_operands = 0 : i64, tpu.core_type = #tpu.core_type<tc>, window_params = [{transform_indices = @transform_0, window_bounds = array<i64: 1, 4, 64, 3>}, {pipeline_mode = #tpu.pipeline_mode<synchronous>, transform_indices = @transform_1, window_bounds = array<i64: 27, 13>}, {pipeline_mode = #tpu.pipeline_mode<synchronous>, transform_indices = @transform_2, window_bounds = array<i64: 1, 13>}, {pipeline_mode = #tpu.pipeline_mode<synchronous>, transform_indices = @transform_3, window_bounds = array<i64: 2, 3>}, {transform_indices = @transform_4, window_bounds = array<i64: 1, 64, 16>}]} {
    %0 = tpu.iota {dimensions = array<i32: 0>} : vector<64x1xi32>
    %c7_i32 = arith.constant 7 : i32
    %1 = vector.broadcast %c7_i32 : i32 to vector<64x1xi32>
    %2 = arith.andi %0, %1 : vector<64x1xi32>
    %c0 = arith.constant 0 : index
    %c0_0 = arith.constant 0 : index
    %c0_1 = arith.constant 0 : index
    %c0_2 = arith.constant 0 : index
    %3 = vector.load %arg1[%c0, %c0_0, %c0_1, %c0_2] : memref<1x4x64x3xbf16, #tpu.memory_space<vmem>>, vector<1x4x64x3xbf16>
    %4 = vector.shape_cast %3 : vector<1x4x64x3xbf16> to vector<4x64x3xbf16>
    %5 = arith.extf %4 : vector<4x64x3xbf16> to vector<4x64x3xf32>
    %6 = vector.extract_strided_slice %5 {offsets = [3, 0, 0], sizes = [1, 64, 3], strides = [1, 1, 1]} : vector<4x64x3xf32> to vector<1x64x3xf32>
    %7 = vector.shape_cast %6 : vector<1x64x3xf32> to vector<64x3xf32>
    %c9_i32 = arith.constant 9 : i32
    %8 = tpu.dynamic_rotate %7 by %c9_i32 dim 0 : vector<64x3xf32>, i32 -> vector<64x3xf32>
    %c9_i32_3 = arith.constant 9 : i32
    %9 = vector.broadcast %c9_i32_3 : i32 to vector<64x1xi32>
    %10 = arith.cmpi sge, %0, %9 : vector<64x1xi32>
    %cst = arith.constant 0.000000e+00 : f32
    %11 = vector.shape_cast %10 : vector<64x1xi1> to vector<64x1xi1>
    %12 = vector.broadcast %11 : vector<64x1xi1> to vector<64x3xi1>
    %13 = vector.broadcast %cst : f32 to vector<64x3xf32>
    %14 = arith.select %12, %8, %13 : vector<64x3xi1>, vector<64x3xf32>
    %c1_i32 = arith.constant 1 : i32
    %15 = vector.broadcast %c1_i32 : i32 to vector<64x1xi32>
    %16 = arith.cmpi sge, %2, %15 : vector<64x1xi32>
    %cst_4 = arith.constant 0.000000e+00 : f32
    %17 = vector.shape_cast %16 : vector<64x1xi1> to vector<64x1xi1>
    %18 = vector.broadcast %17 : vector<64x1xi1> to vector<64x3xi1>
    %19 = vector.broadcast %cst_4 : f32 to vector<64x3xf32>
    %20 = arith.select %18, %14, %19 : vector<64x3xi1>, vector<64x3xf32>
    %21 = vector.extract_strided_slice %5 {offsets = [2, 0, 0], sizes = [1, 64, 3], strides = [1, 1, 1]} : vector<4x64x3xf32> to vector<1x64x3xf32>
    %22 = vector.shape_cast %21 : vector<1x64x3xf32> to vector<64x3xf32>
    %c8_i32 = arith.constant 8 : i32
    %23 = tpu.dynamic_rotate %22 by %c8_i32 dim 0 : vector<64x3xf32>, i32 -> vector<64x3xf32>
    %c8_i32_5 = arith.constant 8 : i32
    %24 = vector.broadcast %c8_i32_5 : i32 to vector<64x1xi32>
    %25 = arith.cmpi sge, %0, %24 : vector<64x1xi32>
    %cst_6 = arith.constant 0.000000e+00 : f32
    %26 = vector.shape_cast %25 : vector<64x1xi1> to vector<64x1xi1>
    %27 = vector.broadcast %26 : vector<64x1xi1> to vector<64x3xi1>
    %28 = vector.broadcast %cst_6 : f32 to vector<64x3xf32>
    %29 = arith.select %27, %23, %28 : vector<64x3xi1>, vector<64x3xf32>
    %30 = vector.extract_strided_slice %5 {offsets = [3, 0, 0], sizes = [1, 64, 3], strides = [1, 1, 1]} : vector<4x64x3xf32> to vector<1x64x3xf32>
    %31 = vector.shape_cast %30 : vector<1x64x3xf32> to vector<64x3xf32>
    %c8_i32_7 = arith.constant 8 : i32
    %32 = tpu.dynamic_rotate %31 by %c8_i32_7 dim 0 : vector<64x3xf32>, i32 -> vector<64x3xf32>
    %c8_i32_8 = arith.constant 8 : i32
    %33 = vector.broadcast %c8_i32_8 : i32 to vector<64x1xi32>
    %34 = arith.cmpi sge, %0, %33 : vector<64x1xi32>
    %cst_9 = arith.constant 0.000000e+00 : f32
    %35 = vector.shape_cast %34 : vector<64x1xi1> to vector<64x1xi1>
    %36 = vector.broadcast %35 : vector<64x1xi1> to vector<64x3xi1>
    %37 = vector.broadcast %cst_9 : f32 to vector<64x3xf32>
    %38 = arith.select %36, %32, %37 : vector<64x3xi1>, vector<64x3xf32>
    %39 = vector.extract_strided_slice %5 {offsets = [1, 0, 0], sizes = [1, 64, 3], strides = [1, 1, 1]} : vector<4x64x3xf32> to vector<1x64x3xf32>
    %40 = vector.shape_cast %39 : vector<1x64x3xf32> to vector<64x3xf32>
    %c1_i32_10 = arith.constant 1 : i32
    %41 = tpu.dynamic_rotate %40 by %c1_i32_10 dim 0 : vector<64x3xf32>, i32 -> vector<64x3xf32>
    %c1_i32_11 = arith.constant 1 : i32
    %42 = vector.broadcast %c1_i32_11 : i32 to vector<64x1xi32>
    %43 = arith.cmpi sge, %0, %42 : vector<64x1xi32>
    %cst_12 = arith.constant 0.000000e+00 : f32
    %44 = vector.shape_cast %43 : vector<64x1xi1> to vector<64x1xi1>
    %45 = vector.broadcast %44 : vector<64x1xi1> to vector<64x3xi1>
    %46 = vector.broadcast %cst_12 : f32 to vector<64x3xf32>
    %47 = arith.select %45, %41, %46 : vector<64x3xi1>, vector<64x3xf32>
    %c1_i32_13 = arith.constant 1 : i32
    %48 = vector.broadcast %c1_i32_13 : i32 to vector<64x1xi32>
    %49 = arith.cmpi sge, %2, %48 : vector<64x1xi32>
    %cst_14 = arith.constant 0.000000e+00 : f32
    %50 = vector.shape_cast %49 : vector<64x1xi1> to vector<64x1xi1>
    %51 = vector.broadcast %50 : vector<64x1xi1> to vector<64x3xi1>
    %52 = vector.broadcast %cst_14 : f32 to vector<64x3xf32>
    %53 = arith.select %51, %47, %52 : vector<64x3xi1>, vector<64x3xf32>
    %54 = vector.extract_strided_slice %5 {offsets = [0, 0, 0], sizes = [1, 64, 3], strides = [1, 1, 1]} : vector<4x64x3xf32> to vector<1x64x3xf32>
    %55 = vector.shape_cast %54 : vector<1x64x3xf32> to vector<64x3xf32>
    %56 = vector.extract_strided_slice %5 {offsets = [1, 0, 0], sizes = [1, 64, 3], strides = [1, 1, 1]} : vector<4x64x3xf32> to vector<1x64x3xf32>
    %57 = vector.shape_cast %56 : vector<1x64x3xf32> to vector<64x3xf32>
    %58 = vector.extract_strided_slice %5 {offsets = [3, 0, 0], sizes = [1, 64, 3], strides = [1, 1, 1]} : vector<4x64x3xf32> to vector<1x64x3xf32>
    %59 = vector.shape_cast %58 : vector<1x64x3xf32> to vector<64x3xf32>
    %c1_i32_15 = arith.constant 1 : i32
    %60 = tpu.dynamic_rotate %59 by %c1_i32_15 dim 0 : vector<64x3xf32>, i32 -> vector<64x3xf32>
    %c1_i32_16 = arith.constant 1 : i32
    %61 = vector.broadcast %c1_i32_16 : i32 to vector<64x1xi32>
    %62 = arith.cmpi sge, %0, %61 : vector<64x1xi32>
    %cst_17 = arith.constant 0.000000e+00 : f32
    %63 = vector.shape_cast %62 : vector<64x1xi1> to vector<64x1xi1>
    %64 = vector.broadcast %63 : vector<64x1xi1> to vector<64x3xi1>
    %65 = vector.broadcast %cst_17 : f32 to vector<64x3xf32>
    %66 = arith.select %64, %60, %65 : vector<64x3xi1>, vector<64x3xf32>
    %c1_i32_18 = arith.constant 1 : i32
    %67 = vector.broadcast %c1_i32_18 : i32 to vector<64x1xi32>
    %68 = arith.cmpi sge, %2, %67 : vector<64x1xi32>
    %cst_19 = arith.constant 0.000000e+00 : f32
    %69 = vector.shape_cast %68 : vector<64x1xi1> to vector<64x1xi1>
    %70 = vector.broadcast %69 : vector<64x1xi1> to vector<64x3xi1>
    %71 = vector.broadcast %cst_19 : f32 to vector<64x3xf32>
    %72 = arith.select %70, %66, %71 : vector<64x3xi1>, vector<64x3xf32>
    %73 = vector.extract_strided_slice %5 {offsets = [2, 0, 0], sizes = [1, 64, 3], strides = [1, 1, 1]} : vector<4x64x3xf32> to vector<1x64x3xf32>
    %74 = vector.shape_cast %73 : vector<1x64x3xf32> to vector<64x3xf32>
    %75 = vector.extract_strided_slice %5 {offsets = [3, 0, 0], sizes = [1, 64, 3], strides = [1, 1, 1]} : vector<4x64x3xf32> to vector<1x64x3xf32>
    %76 = vector.shape_cast %75 : vector<1x64x3xf32> to vector<64x3xf32>
    %77 = tpu.concatenate %20, %29, %38, %53, %55, %57, %72, %74, %76 in 1 : vector<64x3xf32>, vector<64x3xf32>, vector<64x3xf32>, vector<64x3xf32>, vector<64x3xf32>, vector<64x3xf32>, vector<64x3xf32>, vector<64x3xf32>, vector<64x3xf32> -> vector<64x27xf32>
    %78 = arith.truncf %77 : vector<64x27xf32> to vector<64x27xbf16>
    %c0_20 = arith.constant 0 : index
    %c0_21 = arith.constant 0 : index
    %79 = vector.load %arg2[%c0_20, %c0_21] : memref<27x13xbf16, #tpu.memory_space<vmem>>, vector<27x13xbf16>
    %cst_22 = arith.constant dense<0.000000e+00> : vector<64x13xf32>
    %80 = tpu.matmul %78, %79, %cst_22 {dimension_numbers = #tpu.dot_dimension_numbers<[1], [0], [0], [1], [0, 0, 1, 1], [], []>} : vector<64x27xbf16>, vector<27x13xbf16>, vector<64x13xf32> -> vector<64x13xf32>
    %c0_23 = arith.constant 0 : index
    %c0_24 = arith.constant 0 : index
    %81 = vector.load %arg3[%c0_23, %c0_24] : memref<1x13xf32, #tpu.memory_space<vmem>>, vector<1x13xf32>
    %82 = vector.broadcast %81 : vector<1x13xf32> to vector<64x13xf32>
    %83 = arith.addf %80, %82 : vector<64x13xf32>
    %84 = vector.extract_strided_slice %5 {offsets = [0, 0, 0], sizes = [1, 64, 3], strides = [1, 1, 1]} : vector<4x64x3xf32> to vector<1x64x3xf32>
    %85 = vector.shape_cast %84 : vector<1x64x3xf32> to vector<64x3xf32>
    %86 = vector.extract_strided_slice %5 {offsets = [1, 0, 0], sizes = [1, 64, 3], strides = [1, 1, 1]} : vector<4x64x3xf32> to vector<1x64x3xf32>
    %87 = vector.shape_cast %86 : vector<1x64x3xf32> to vector<64x3xf32>
    %88 = arith.maximumf %85, %87 : vector<64x3xf32>
    %89 = vector.extract_strided_slice %5 {offsets = [2, 0, 0], sizes = [1, 64, 3], strides = [1, 1, 1]} : vector<4x64x3xf32> to vector<1x64x3xf32>
    %90 = vector.shape_cast %89 : vector<1x64x3xf32> to vector<64x3xf32>
    %91 = vector.extract_strided_slice %5 {offsets = [3, 0, 0], sizes = [1, 64, 3], strides = [1, 1, 1]} : vector<4x64x3xf32> to vector<1x64x3xf32>
    %92 = vector.shape_cast %91 : vector<1x64x3xf32> to vector<64x3xf32>
    %93 = arith.maximumf %90, %92 : vector<64x3xf32>
    %94 = arith.maximumf %88, %93 : vector<64x3xf32>
    %c0_25 = arith.constant 0 : index
    %c0_26 = arith.constant 0 : index
    %95 = vector.load %arg4[%c0_25, %c0_26] : memref<2x3xf32, #tpu.memory_space<vmem>>, vector<1x3xf32>
    %96 = vector.broadcast %95 : vector<1x3xf32> to vector<64x3xf32>
    %97 = arith.mulf %94, %96 : vector<64x3xf32>
    %c1 = arith.constant 1 : index
    %c0_27 = arith.constant 0 : index
    %98 = vector.load %arg4[%c1, %c0_27] : memref<2x3xf32, #tpu.memory_space<vmem>>, vector<1x3xf32>
    %99 = vector.broadcast %98 : vector<1x3xf32> to vector<64x3xf32>
    %100 = arith.addf %97, %99 : vector<64x3xf32>
    %101 = tpu.concatenate %83, %100 in 1 : vector<64x13xf32>, vector<64x3xf32> -> vector<64x16xf32>
    %cst_28 = arith.constant 0.000000e+00 : f32
    %102 = vector.broadcast %cst_28 : f32 to vector<64x16xf32>
    %103 = arith.maximumf %101, %102 : vector<64x16xf32>
    %104 = arith.truncf %103 : vector<64x16xf32> to vector<64x16xbf16>
    %c0_29 = arith.constant 0 : index
    %c0_30 = arith.constant 0 : index
    %c0_31 = arith.constant 0 : index
    %105 = vector.load %arg5[%c0_29, %c0_30, %c0_31] : memref<1x64x16xbf16, #tpu.memory_space<vmem>>, vector<1x64x16xbf16>
    %106 = vector.shape_cast %105 : vector<1x64x16xbf16> to vector<64x16xbf16>
    %107 = vector.shape_cast %104 : vector<64x16xbf16> to vector<1x64x16xbf16>
    tpu.vector_store %arg5[%c0_29, %c0_30, %c0_31], %107 {strides = array<i32>} : memref<1x64x16xbf16, #tpu.memory_space<vmem>>, vector<1x64x16xbf16>,
    return
  }
  func.func @transform_0(%arg0: i32) -> (i32, i32, i32, i32) {
    %c0_i32 = arith.constant 0 : i32
    %c0_i32_0 = arith.constant 0 : i32
    %c0_i32_1 = arith.constant 0 : i32
    %c0_i32_2 = arith.constant 0 : i32
    return %arg0, %c0_i32, %c0_i32_0, %c0_i32_1 : i32, i32, i32, i32
  }
  func.func @transform_1(%arg0: i32) -> (i32, i32) {
    %c0_i32 = arith.constant 0 : i32
    %c0_i32_0 = arith.constant 0 : i32
    %c0_i32_1 = arith.constant 0 : i32
    return %c0_i32, %c0_i32_0 : i32, i32
  }
  func.func @transform_2(%arg0: i32) -> (i32, i32) {
    %c0_i32 = arith.constant 0 : i32
    %c0_i32_0 = arith.constant 0 : i32
    %c0_i32_1 = arith.constant 0 : i32
    return %c0_i32, %c0_i32_0 : i32, i32
  }
  func.func @transform_3(%arg0: i32) -> (i32, i32) {
    %c0_i32 = arith.constant 0 : i32
    %c0_i32_0 = arith.constant 0 : i32
    %c0_i32_1 = arith.constant 0 : i32
    return %c0_i32, %c0_i32_0 : i32, i32
  }
  func.func @transform_4(%arg0: i32) -> (i32, i32, i32) {
    %c0_i32 = arith.constant 0 : i32
    %c0_i32_0 = arith.constant 0 : i32
    %c0_i32_1 = arith.constant 0 : i32
    return %arg0, %c0_i32, %c0_i32_0 : i32, i32, i32
  }
}

module attributes {stable_mosaic.version = 11 : i64} {
  func.func @_down_kernel(%arg0: i32, %arg1: memref<1x4x16x16xbf16, #tpu.memory_space<vmem>>, %arg2: memref<144x48xbf16, #tpu.memory_space<vmem>>, %arg3: memref<1x48xf32, #tpu.memory_space<vmem>>, %arg4: memref<2x16xf32, #tpu.memory_space<vmem>>, %arg5: memref<1x16x64xbf16, #tpu.memory_space<vmem>>) attributes {dimension_semantics = [#tpu.dimension_semantics<parallel>], iteration_bounds = array<i64: 2>, scalar_prefetch = 0 : i64, scratch_operands = 0 : i64, tpu.core_type = #tpu.core_type<tc>, window_params = [{transform_indices = @transform_0, window_bounds = array<i64: 1, 4, 16, 16>}, {pipeline_mode = #tpu.pipeline_mode<synchronous>, transform_indices = @transform_1, window_bounds = array<i64: 144, 48>}, {pipeline_mode = #tpu.pipeline_mode<synchronous>, transform_indices = @transform_2, window_bounds = array<i64: 1, 48>}, {pipeline_mode = #tpu.pipeline_mode<synchronous>, transform_indices = @transform_3, window_bounds = array<i64: 2, 16>}, {transform_indices = @transform_4, window_bounds = array<i64: 1, 16, 64>}]} {
    %0 = tpu.iota {dimensions = array<i32: 0>} : vector<16x1xi32>
    %c3_i32 = arith.constant 3 : i32
    %1 = vector.broadcast %c3_i32 : i32 to vector<16x1xi32>
    %2 = arith.andi %0, %1 : vector<16x1xi32>
    %c0 = arith.constant 0 : index
    %c0_0 = arith.constant 0 : index
    %c0_1 = arith.constant 0 : index
    %c0_2 = arith.constant 0 : index
    %3 = vector.load %arg1[%c0, %c0_0, %c0_1, %c0_2] : memref<1x4x16x16xbf16, #tpu.memory_space<vmem>>, vector<1x4x16x16xbf16>
    %4 = vector.shape_cast %3 : vector<1x4x16x16xbf16> to vector<4x16x16xbf16>
    %5 = arith.extf %4 : vector<4x16x16xbf16> to vector<4x16x16xf32>
    %6 = vector.extract_strided_slice %5 {offsets = [3, 0, 0], sizes = [1, 16, 16], strides = [1, 1, 1]} : vector<4x16x16xf32> to vector<1x16x16xf32>
    %7 = vector.shape_cast %6 : vector<1x16x16xf32> to vector<16x16xf32>
    %c5_i32 = arith.constant 5 : i32
    %8 = tpu.dynamic_rotate %7 by %c5_i32 dim 0 : vector<16x16xf32>, i32 -> vector<16x16xf32>
    %c5_i32_3 = arith.constant 5 : i32
    %9 = vector.broadcast %c5_i32_3 : i32 to vector<16x1xi32>
    %10 = arith.cmpi sge, %0, %9 : vector<16x1xi32>
    %cst = arith.constant 0.000000e+00 : f32
    %11 = vector.shape_cast %10 : vector<16x1xi1> to vector<16x1xi1>
    %12 = vector.broadcast %11 : vector<16x1xi1> to vector<16x16xi1>
    %13 = vector.broadcast %cst : f32 to vector<16x16xf32>
    %14 = arith.select %12, %8, %13 : vector<16x16xi1>, vector<16x16xf32>
    %c1_i32 = arith.constant 1 : i32
    %15 = vector.broadcast %c1_i32 : i32 to vector<16x1xi32>
    %16 = arith.cmpi sge, %2, %15 : vector<16x1xi32>
    %cst_4 = arith.constant 0.000000e+00 : f32
    %17 = vector.shape_cast %16 : vector<16x1xi1> to vector<16x1xi1>
    %18 = vector.broadcast %17 : vector<16x1xi1> to vector<16x16xi1>
    %19 = vector.broadcast %cst_4 : f32 to vector<16x16xf32>
    %20 = arith.select %18, %14, %19 : vector<16x16xi1>, vector<16x16xf32>
    %21 = vector.extract_strided_slice %5 {offsets = [2, 0, 0], sizes = [1, 16, 16], strides = [1, 1, 1]} : vector<4x16x16xf32> to vector<1x16x16xf32>
    %22 = vector.shape_cast %21 : vector<1x16x16xf32> to vector<16x16xf32>
    %c4_i32 = arith.constant 4 : i32
    %23 = tpu.dynamic_rotate %22 by %c4_i32 dim 0 : vector<16x16xf32>, i32 -> vector<16x16xf32>
    %c4_i32_5 = arith.constant 4 : i32
    %24 = vector.broadcast %c4_i32_5 : i32 to vector<16x1xi32>
    %25 = arith.cmpi sge, %0, %24 : vector<16x1xi32>
    %cst_6 = arith.constant 0.000000e+00 : f32
    %26 = vector.shape_cast %25 : vector<16x1xi1> to vector<16x1xi1>
    %27 = vector.broadcast %26 : vector<16x1xi1> to vector<16x16xi1>
    %28 = vector.broadcast %cst_6 : f32 to vector<16x16xf32>
    %29 = arith.select %27, %23, %28 : vector<16x16xi1>, vector<16x16xf32>
    %30 = vector.extract_strided_slice %5 {offsets = [3, 0, 0], sizes = [1, 16, 16], strides = [1, 1, 1]} : vector<4x16x16xf32> to vector<1x16x16xf32>
    %31 = vector.shape_cast %30 : vector<1x16x16xf32> to vector<16x16xf32>
    %c4_i32_7 = arith.constant 4 : i32
    %32 = tpu.dynamic_rotate %31 by %c4_i32_7 dim 0 : vector<16x16xf32>, i32 -> vector<16x16xf32>
    %c4_i32_8 = arith.constant 4 : i32
    %33 = vector.broadcast %c4_i32_8 : i32 to vector<16x1xi32>
    %34 = arith.cmpi sge, %0, %33 : vector<16x1xi32>
    %cst_9 = arith.constant 0.000000e+00 : f32
    %35 = vector.shape_cast %34 : vector<16x1xi1> to vector<16x1xi1>
    %36 = vector.broadcast %35 : vector<16x1xi1> to vector<16x16xi1>
    %37 = vector.broadcast %cst_9 : f32 to vector<16x16xf32>
    %38 = arith.select %36, %32, %37 : vector<16x16xi1>, vector<16x16xf32>
    %39 = vector.extract_strided_slice %5 {offsets = [1, 0, 0], sizes = [1, 16, 16], strides = [1, 1, 1]} : vector<4x16x16xf32> to vector<1x16x16xf32>
    %40 = vector.shape_cast %39 : vector<1x16x16xf32> to vector<16x16xf32>
    %c1_i32_10 = arith.constant 1 : i32
    %41 = tpu.dynamic_rotate %40 by %c1_i32_10 dim 0 : vector<16x16xf32>, i32 -> vector<16x16xf32>
    %c1_i32_11 = arith.constant 1 : i32
    %42 = vector.broadcast %c1_i32_11 : i32 to vector<16x1xi32>
    %43 = arith.cmpi sge, %0, %42 : vector<16x1xi32>
    %cst_12 = arith.constant 0.000000e+00 : f32
    %44 = vector.shape_cast %43 : vector<16x1xi1> to vector<16x1xi1>
    %45 = vector.broadcast %44 : vector<16x1xi1> to vector<16x16xi1>
    %46 = vector.broadcast %cst_12 : f32 to vector<16x16xf32>
    %47 = arith.select %45, %41, %46 : vector<16x16xi1>, vector<16x16xf32>
    %c1_i32_13 = arith.constant 1 : i32
    %48 = vector.broadcast %c1_i32_13 : i32 to vector<16x1xi32>
    %49 = arith.cmpi sge, %2, %48 : vector<16x1xi32>
    %cst_14 = arith.constant 0.000000e+00 : f32
    %50 = vector.shape_cast %49 : vector<16x1xi1> to vector<16x1xi1>
    %51 = vector.broadcast %50 : vector<16x1xi1> to vector<16x16xi1>
    %52 = vector.broadcast %cst_14 : f32 to vector<16x16xf32>
    %53 = arith.select %51, %47, %52 : vector<16x16xi1>, vector<16x16xf32>
    %54 = vector.extract_strided_slice %5 {offsets = [0, 0, 0], sizes = [1, 16, 16], strides = [1, 1, 1]} : vector<4x16x16xf32> to vector<1x16x16xf32>
    %55 = vector.shape_cast %54 : vector<1x16x16xf32> to vector<16x16xf32>
    %56 = vector.extract_strided_slice %5 {offsets = [1, 0, 0], sizes = [1, 16, 16], strides = [1, 1, 1]} : vector<4x16x16xf32> to vector<1x16x16xf32>
    %57 = vector.shape_cast %56 : vector<1x16x16xf32> to vector<16x16xf32>
    %58 = vector.extract_strided_slice %5 {offsets = [3, 0, 0], sizes = [1, 16, 16], strides = [1, 1, 1]} : vector<4x16x16xf32> to vector<1x16x16xf32>
    %59 = vector.shape_cast %58 : vector<1x16x16xf32> to vector<16x16xf32>
    %c1_i32_15 = arith.constant 1 : i32
    %60 = tpu.dynamic_rotate %59 by %c1_i32_15 dim 0 : vector<16x16xf32>, i32 -> vector<16x16xf32>
    %c1_i32_16 = arith.constant 1 : i32
    %61 = vector.broadcast %c1_i32_16 : i32 to vector<16x1xi32>
    %62 = arith.cmpi sge, %0, %61 : vector<16x1xi32>
    %cst_17 = arith.constant 0.000000e+00 : f32
    %63 = vector.shape_cast %62 : vector<16x1xi1> to vector<16x1xi1>
    %64 = vector.broadcast %63 : vector<16x1xi1> to vector<16x16xi1>
    %65 = vector.broadcast %cst_17 : f32 to vector<16x16xf32>
    %66 = arith.select %64, %60, %65 : vector<16x16xi1>, vector<16x16xf32>
    %c1_i32_18 = arith.constant 1 : i32
    %67 = vector.broadcast %c1_i32_18 : i32 to vector<16x1xi32>
    %68 = arith.cmpi sge, %2, %67 : vector<16x1xi32>
    %cst_19 = arith.constant 0.000000e+00 : f32
    %69 = vector.shape_cast %68 : vector<16x1xi1> to vector<16x1xi1>
    %70 = vector.broadcast %69 : vector<16x1xi1> to vector<16x16xi1>
    %71 = vector.broadcast %cst_19 : f32 to vector<16x16xf32>
    %72 = arith.select %70, %66, %71 : vector<16x16xi1>, vector<16x16xf32>
    %73 = vector.extract_strided_slice %5 {offsets = [2, 0, 0], sizes = [1, 16, 16], strides = [1, 1, 1]} : vector<4x16x16xf32> to vector<1x16x16xf32>
    %74 = vector.shape_cast %73 : vector<1x16x16xf32> to vector<16x16xf32>
    %75 = vector.extract_strided_slice %5 {offsets = [3, 0, 0], sizes = [1, 16, 16], strides = [1, 1, 1]} : vector<4x16x16xf32> to vector<1x16x16xf32>
    %76 = vector.shape_cast %75 : vector<1x16x16xf32> to vector<16x16xf32>
    %77 = tpu.concatenate %20, %29, %38, %53, %55, %57, %72, %74, %76 in 1 : vector<16x16xf32>, vector<16x16xf32>, vector<16x16xf32>, vector<16x16xf32>, vector<16x16xf32>, vector<16x16xf32>, vector<16x16xf32>, vector<16x16xf32>, vector<16x16xf32> -> vector<16x144xf32>
    %78 = arith.truncf %77 : vector<16x144xf32> to vector<16x144xbf16>
    %c0_20 = arith.constant 0 : index
    %c0_21 = arith.constant 0 : index
    %79 = vector.load %arg2[%c0_20, %c0_21] : memref<144x48xbf16, #tpu.memory_space<vmem>>, vector<144x48xbf16>
    %cst_22 = arith.constant dense<0.000000e+00> : vector<16x48xf32>
    %80 = tpu.matmul %78, %79, %cst_22 {dimension_numbers = #tpu.dot_dimension_numbers<[1], [0], [0], [1], [0, 0, 1, 1], [], []>} : vector<16x144xbf16>, vector<144x48xbf16>, vector<16x48xf32> -> vector<16x48xf32>
    %c0_23 = arith.constant 0 : index
    %c0_24 = arith.constant 0 : index
    %81 = vector.load %arg3[%c0_23, %c0_24] : memref<1x48xf32, #tpu.memory_space<vmem>>, vector<1x48xf32>
    %82 = vector.broadcast %81 : vector<1x48xf32> to vector<16x48xf32>
    %83 = arith.addf %80, %82 : vector<16x48xf32>
    %84 = vector.extract_strided_slice %5 {offsets = [0, 0, 0], sizes = [1, 16, 16], strides = [1, 1, 1]} : vector<4x16x16xf32> to vector<1x16x16xf32>
    %85 = vector.shape_cast %84 : vector<1x16x16xf32> to vector<16x16xf32>
    %86 = vector.extract_strided_slice %5 {offsets = [1, 0, 0], sizes = [1, 16, 16], strides = [1, 1, 1]} : vector<4x16x16xf32> to vector<1x16x16xf32>
    %87 = vector.shape_cast %86 : vector<1x16x16xf32> to vector<16x16xf32>
    %88 = arith.maximumf %85, %87 : vector<16x16xf32>
    %89 = vector.extract_strided_slice %5 {offsets = [2, 0, 0], sizes = [1, 16, 16], strides = [1, 1, 1]} : vector<4x16x16xf32> to vector<1x16x16xf32>
    %90 = vector.shape_cast %89 : vector<1x16x16xf32> to vector<16x16xf32>
    %91 = vector.extract_strided_slice %5 {offsets = [3, 0, 0], sizes = [1, 16, 16], strides = [1, 1, 1]} : vector<4x16x16xf32> to vector<1x16x16xf32>
    %92 = vector.shape_cast %91 : vector<1x16x16xf32> to vector<16x16xf32>
    %93 = arith.maximumf %90, %92 : vector<16x16xf32>
    %94 = arith.maximumf %88, %93 : vector<16x16xf32>
    %c0_25 = arith.constant 0 : index
    %c0_26 = arith.constant 0 : index
    %95 = vector.load %arg4[%c0_25, %c0_26] : memref<2x16xf32, #tpu.memory_space<vmem>>, vector<1x16xf32>
    %96 = vector.broadcast %95 : vector<1x16xf32> to vector<16x16xf32>
    %97 = arith.mulf %94, %96 : vector<16x16xf32>
    %c1 = arith.constant 1 : index
    %c0_27 = arith.constant 0 : index
    %98 = vector.load %arg4[%c1, %c0_27] : memref<2x16xf32, #tpu.memory_space<vmem>>, vector<1x16xf32>
    %99 = vector.broadcast %98 : vector<1x16xf32> to vector<16x16xf32>
    %100 = arith.addf %97, %99 : vector<16x16xf32>
    %101 = tpu.concatenate %83, %100 in 1 : vector<16x48xf32>, vector<16x16xf32> -> vector<16x64xf32>
    %cst_28 = arith.constant 0.000000e+00 : f32
    %102 = vector.broadcast %cst_28 : f32 to vector<16x64xf32>
    %103 = arith.maximumf %101, %102 : vector<16x64xf32>
    %104 = arith.truncf %103 : vector<16x64xf32> to vector<16x64xbf16>
    %c0_29 = arith.constant 0 : index
    %c0_30 = arith.constant 0 : index
    %c0_31 = arith.constant 0 : index
    %105 = vector.load %arg5[%c0_29, %c0_30, %c0_31] : memref<1x16x64xbf16, #tpu.memory_space<vmem>>, vector<1x16x64xbf16>
    %106 = vector.shape_cast %105 : vector<1x16x64xbf16> to vector<16x64xbf16>
    %107 = vector.shape_cast %104 : vector<16x64xbf16> to vector<1x16x64xbf16>
    tpu.vector_store %arg5[%c0_29, %c0_30, %c0_31], %107 {strides = array<i32>} : memref<1x16x64xbf16, #tpu.memory_space<vmem>>, vector<1x16x64xbf16>,
    return
  }
  func.func @transform_0(%arg0: i32) -> (i32, i32, i32, i32) {
    %c0_i32 = arith.constant 0 : i32
    %c0_i32_0 = arith.constant 0 : i32
    %c0_i32_1 = arith.constant 0 : i32
    %c0_i32_2 = arith.constant 0 : i32
    return %arg0, %c0_i32, %c0_i32_0, %c0_i32_1 : i32, i32, i32, i32
  }
  func.func @transform_1(%arg0: i32) -> (i32, i32) {
    %c0_i32 = arith.constant 0 : i32
    %c0_i32_0 = arith.constant 0 : i32
    %c0_i32_1 = arith.constant 0 : i32
    return %c0_i32, %c0_i32_0 : i32, i32
  }
  func.func @transform_2(%arg0: i32) -> (i32, i32) {
    %c0_i32 = arith.constant 0 : i32
    %c0_i32_0 = arith.constant 0 : i32
    %c0_i32_1 = arith.constant 0 : i32
    return %c0_i32, %c0_i32_0 : i32, i32
  }
  func.func @transform_3(%arg0: i32) -> (i32, i32) {
    %c0_i32 = arith.constant 0 : i32
    %c0_i32_0 = arith.constant 0 : i32
    %c0_i32_1 = arith.constant 0 : i32
    return %c0_i32, %c0_i32_0 : i32, i32
  }
  func.func @transform_4(%arg0: i32) -> (i32, i32, i32) {
    %c0_i32 = arith.constant 0 : i32
    %c0_i32_0 = arith.constant 0 : i32
    %c0_i32_1 = arith.constant 0 : i32
    return %arg0, %c0_i32, %c0_i32_0 : i32, i32, i32
  }
}

module attributes {stable_mosaic.version = 11 : i64} {
  func.func @_nb_chain_kernel(%arg0: i32, %arg1: memref<1x16x64xbf16, #tpu.memory_space<vmem>>, %arg2: memref<2x3x64x64xbf16, #tpu.memory_space<vmem>>, %arg3: memref<2x3x64x64xbf16, #tpu.memory_space<vmem>>, %arg4: memref<2x3x64x64xbf16, #tpu.memory_space<vmem>>, %arg5: memref<2x3x64x64xbf16, #tpu.memory_space<vmem>>, %arg6: memref<2x4x64xf32, #tpu.memory_space<vmem>>, %arg7: memref<1x16x64xbf16, #tpu.memory_space<vmem>>) attributes {dimension_semantics = [#tpu.dimension_semantics<parallel>], iteration_bounds = array<i64: 2>, scalar_prefetch = 0 : i64, scratch_operands = 0 : i64, tpu.core_type = #tpu.core_type<tc>, window_params = [{transform_indices = @transform_0, window_bounds = array<i64: 1, 16, 64>}, {pipeline_mode = #tpu.pipeline_mode<synchronous>, transform_indices = @transform_1, window_bounds = array<i64: 2, 3, 64, 64>}, {pipeline_mode = #tpu.pipeline_mode<synchronous>, transform_indices = @transform_2, window_bounds = array<i64: 2, 3, 64, 64>}, {pipeline_mode = #tpu.pipeline_mode<synchronous>, transform_indices = @transform_3, window_bounds = array<i64: 2, 3, 64, 64>}, {pipeline_mode = #tpu.pipeline_mode<synchronous>, transform_indices = @transform_4, window_bounds = array<i64: 2, 3, 64, 64>}, {pipeline_mode = #tpu.pipeline_mode<synchronous>, transform_indices = @transform_5, window_bounds = array<i64: 2, 4, 64>}, {transform_indices = @transform_6, window_bounds = array<i64: 1, 16, 64>}]} {
    %0 = tpu.iota {dimensions = array<i32: 0>} : vector<16x1xi32>
    %c3_i32 = arith.constant 3 : i32
    %1 = vector.broadcast %c3_i32 : i32 to vector<16x1xi32>
    %2 = arith.andi %0, %1 : vector<16x1xi32>
    %c0 = arith.constant 0 : index
    %c0_0 = arith.constant 0 : index
    %c0_1 = arith.constant 0 : index
    %3 = vector.load %arg1[%c0, %c0_0, %c0_1] : memref<1x16x64xbf16, #tpu.memory_space<vmem>>, vector<1x16x64xbf16>
    %4 = vector.shape_cast %3 : vector<1x16x64xbf16> to vector<16x64xbf16>
    %5 = arith.extf %4 : vector<16x64xbf16> to vector<16x64xf32>
    %c0_2 = arith.constant 0 : index
    %c0_3 = arith.constant 0 : index
    %c0_4 = arith.constant 0 : index
    %c0_5 = arith.constant 0 : index
    %6 = vector.load %arg2[%c0_2, %c0_3, %c0_4, %c0_5] : memref<2x3x64x64xbf16, #tpu.memory_space<vmem>>, vector<1x3x64x64xbf16>
    %7 = vector.shape_cast %6 : vector<1x3x64x64xbf16> to vector<3x64x64xbf16>
    %c0_6 = arith.constant 0 : index
    %c0_7 = arith.constant 0 : index
    %c0_8 = arith.constant 0 : index
    %c0_9 = arith.constant 0 : index
    %8 = vector.load %arg3[%c0_6, %c0_7, %c0_8, %c0_9] : memref<2x3x64x64xbf16, #tpu.memory_space<vmem>>, vector<1x3x64x64xbf16>
    %9 = vector.shape_cast %8 : vector<1x3x64x64xbf16> to vector<3x64x64xbf16>
    %c0_10 = arith.constant 0 : index
    %c0_11 = arith.constant 0 : index
    %c0_12 = arith.constant 0 : index
    %c0_13 = arith.constant 0 : index
    %10 = vector.load %arg4[%c0_10, %c0_11, %c0_12, %c0_13] : memref<2x3x64x64xbf16, #tpu.memory_space<vmem>>, vector<1x3x64x64xbf16>
    %11 = vector.shape_cast %10 : vector<1x3x64x64xbf16> to vector<3x64x64xbf16>
    %c0_14 = arith.constant 0 : index
    %c0_15 = arith.constant 0 : index
    %c0_16 = arith.constant 0 : index
    %c0_17 = arith.constant 0 : index
    %12 = vector.load %arg5[%c0_14, %c0_15, %c0_16, %c0_17] : memref<2x3x64x64xbf16, #tpu.memory_space<vmem>>, vector<1x3x64x64xbf16>
    %13 = vector.shape_cast %12 : vector<1x3x64x64xbf16> to vector<3x64x64xbf16>
    %c0_18 = arith.constant 0 : index
    %c0_19 = arith.constant 0 : index
    %c0_20 = arith.constant 0 : index
    %14 = vector.load %arg6[%c0_18, %c0_19, %c0_20] : memref<2x4x64xf32, #tpu.memory_space<vmem>>, vector<1x4x64xf32>
    %15 = vector.shape_cast %14 : vector<1x4x64xf32> to vector<4x64xf32>
    %16 = vector.extract_strided_slice %15 {offsets = [0, 0], sizes = [1, 64], strides = [1, 1]} : vector<4x64xf32> to vector<1x64xf32>
    %c4_i32 = arith.constant 4 : i32
    %17 = tpu.dynamic_rotate %5 by %c4_i32 dim 0 : vector<16x64xf32>, i32 -> vector<16x64xf32>
    %c4_i32_21 = arith.constant 4 : i32
    %18 = vector.broadcast %c4_i32_21 : i32 to vector<16x1xi32>
    %19 = arith.cmpi sge, %0, %18 : vector<16x1xi32>
    %cst = arith.constant 0.000000e+00 : f32
    %20 = vector.shape_cast %19 : vector<16x1xi1> to vector<16x1xi1>
    %21 = vector.broadcast %20 : vector<16x1xi1> to vector<16x64xi1>
    %22 = vector.broadcast %cst : f32 to vector<16x64xf32>
    %23 = arith.select %21, %17, %22 : vector<16x64xi1>, vector<16x64xf32>
    %24 = arith.truncf %23 : vector<16x64xf32> to vector<16x64xbf16>
    %25 = vector.extract_strided_slice %7 {offsets = [0, 0, 0], sizes = [1, 64, 64], strides = [1, 1, 1]} : vector<3x64x64xbf16> to vector<1x64x64xbf16>
    %26 = vector.shape_cast %25 : vector<1x64x64xbf16> to vector<64x64xbf16>
    %cst_22 = arith.constant dense<0.000000e+00> : vector<16x64xf32>
    %27 = tpu.matmul %24, %26, %cst_22 {dimension_numbers = #tpu.dot_dimension_numbers<[1], [0], [0], [1], [0, 0, 1, 1], [], []>} : vector<16x64xbf16>, vector<64x64xbf16>, vector<16x64xf32> -> vector<16x64xf32>
    %28 = arith.truncf %5 : vector<16x64xf32> to vector<16x64xbf16>
    %29 = vector.extract_strided_slice %7 {offsets = [1, 0, 0], sizes = [1, 64, 64], strides = [1, 1, 1]} : vector<3x64x64xbf16> to vector<1x64x64xbf16>
    %30 = vector.shape_cast %29 : vector<1x64x64xbf16> to vector<64x64xbf16>
    %cst_23 = arith.constant dense<0.000000e+00> : vector<16x64xf32>
    %31 = tpu.matmul %28, %30, %cst_23 {dimension_numbers = #tpu.dot_dimension_numbers<[1], [0], [0], [1], [0, 0, 1, 1], [], []>} : vector<16x64xbf16>, vector<64x64xbf16>, vector<16x64xf32> -> vector<16x64xf32>
    %32 = arith.addf %27, %31 : vector<16x64xf32>
    %c12_i32 = arith.constant 12 : i32
    %33 = tpu.dynamic_rotate %5 by %c12_i32 dim 0 : vector<16x64xf32>, i32 -> vector<16x64xf32>
    %c12_i32_24 = arith.constant 12 : i32
    %34 = vector.broadcast %c12_i32_24 : i32 to vector<16x1xi32>
    %35 = arith.cmpi slt, %0, %34 : vector<16x1xi32>
    %cst_25 = arith.constant 0.000000e+00 : f32
    %36 = vector.shape_cast %35 : vector<16x1xi1> to vector<16x1xi1>
    %37 = vector.broadcast %36 : vector<16x1xi1> to vector<16x64xi1>
    %38 = vector.broadcast %cst_25 : f32 to vector<16x64xf32>
    %39 = arith.select %37, %33, %38 : vector<16x64xi1>, vector<16x64xf32>
    %40 = arith.truncf %39 : vector<16x64xf32> to vector<16x64xbf16>
    %41 = vector.extract_strided_slice %7 {offsets = [2, 0, 0], sizes = [1, 64, 64], strides = [1, 1, 1]} : vector<3x64x64xbf16> to vector<1x64x64xbf16>
    %42 = vector.shape_cast %41 : vector<1x64x64xbf16> to vector<64x64xbf16>
    %cst_26 = arith.constant dense<0.000000e+00> : vector<16x64xf32>
    %43 = tpu.matmul %40, %42, %cst_26 {dimension_numbers = #tpu.dot_dimension_numbers<[1], [0], [0], [1], [0, 0, 1, 1], [], []>} : vector<16x64xbf16>, vector<64x64xbf16>, vector<16x64xf32> -> vector<16x64xf32>
    %44 = arith.addf %32, %43 : vector<16x64xf32>
    %45 = vector.broadcast %16 : vector<1x64xf32> to vector<16x64xf32>
    %46 = arith.addf %44, %45 : vector<16x64xf32>
    %cst_27 = arith.constant 0.000000e+00 : f32
    %47 = vector.broadcast %cst_27 : f32 to vector<16x64xf32>
    %48 = arith.maximumf %46, %47 : vector<16x64xf32>
    %c1_i32 = arith.constant 1 : i32
    %49 = vector.broadcast %c1_i32 : i32 to vector<16x1xi32>
    %50 = arith.cmpi sge, %2, %49 : vector<16x1xi32>
    %c3_i32_28 = arith.constant 3 : i32
    %51 = vector.broadcast %c3_i32_28 : i32 to vector<16x1xi32>
    %52 = arith.cmpi slt, %2, %51 : vector<16x1xi32>
    %53 = vector.extract_strided_slice %15 {offsets = [1, 0], sizes = [1, 64], strides = [1, 1]} : vector<4x64xf32> to vector<1x64xf32>
    %c1_i32_29 = arith.constant 1 : i32
    %54 = tpu.dynamic_rotate %48 by %c1_i32_29 dim 0 : vector<16x64xf32>, i32 -> vector<16x64xf32>
    %c1_i32_30 = arith.constant 1 : i32
    %55 = vector.broadcast %c1_i32_30 : i32 to vector<16x1xi32>
    %56 = arith.cmpi sge, %0, %55 : vector<16x1xi32>
    %cst_31 = arith.constant 0.000000e+00 : f32
    %57 = vector.shape_cast %56 : vector<16x1xi1> to vector<16x1xi1>
    %58 = vector.broadcast %57 : vector<16x1xi1> to vector<16x64xi1>
    %59 = vector.broadcast %cst_31 : f32 to vector<16x64xf32>
    %60 = arith.select %58, %54, %59 : vector<16x64xi1>, vector<16x64xf32>
    %cst_32 = arith.constant 0.000000e+00 : f32
    %61 = vector.shape_cast %50 : vector<16x1xi1> to vector<16x1xi1>
    %62 = vector.broadcast %61 : vector<16x1xi1> to vector<16x64xi1>
    %63 = vector.broadcast %cst_32 : f32 to vector<16x64xf32>
    %64 = arith.select %62, %60, %63 : vector<16x64xi1>, vector<16x64xf32>
    %65 = arith.truncf %64 : vector<16x64xf32> to vector<16x64xbf16>
    %66 = vector.extract_strided_slice %9 {offsets = [0, 0, 0], sizes = [1, 64, 64], strides = [1, 1, 1]} : vector<3x64x64xbf16> to vector<1x64x64xbf16>
    %67 = vector.shape_cast %66 : vector<1x64x64xbf16> to vector<64x64xbf16>
    %cst_33 = arith.constant dense<0.000000e+00> : vector<16x64xf32>
    %68 = tpu.matmul %65, %67, %cst_33 {dimension_numbers = #tpu.dot_dimension_numbers<[1], [0], [0], [1], [0, 0, 1, 1], [], []>} : vector<16x64xbf16>, vector<64x64xbf16>, vector<16x64xf32> -> vector<16x64xf32>
    %69 = arith.truncf %48 : vector<16x64xf32> to vector<16x64xbf16>
    %70 = vector.extract_strided_slice %9 {offsets = [1, 0, 0], sizes = [1, 64, 64], strides = [1, 1, 1]} : vector<3x64x64xbf16> to vector<1x64x64xbf16>
    %71 = vector.shape_cast %70 : vector<1x64x64xbf16> to vector<64x64xbf16>
    %cst_34 = arith.constant dense<0.000000e+00> : vector<16x64xf32>
    %72 = tpu.matmul %69, %71, %cst_34 {dimension_numbers = #tpu.dot_dimension_numbers<[1], [0], [0], [1], [0, 0, 1, 1], [], []>} : vector<16x64xbf16>, vector<64x64xbf16>, vector<16x64xf32> -> vector<16x64xf32>
    %73 = arith.addf %68, %72 : vector<16x64xf32>
    %c15_i32 = arith.constant 15 : i32
    %74 = tpu.dynamic_rotate %48 by %c15_i32 dim 0 : vector<16x64xf32>, i32 -> vector<16x64xf32>
    %c15_i32_35 = arith.constant 15 : i32
    %75 = vector.broadcast %c15_i32_35 : i32 to vector<16x1xi32>
    %76 = arith.cmpi slt, %0, %75 : vector<16x1xi32>
    %cst_36 = arith.constant 0.000000e+00 : f32
    %77 = vector.shape_cast %76 : vector<16x1xi1> to vector<16x1xi1>
    %78 = vector.broadcast %77 : vector<16x1xi1> to vector<16x64xi1>
    %79 = vector.broadcast %cst_36 : f32 to vector<16x64xf32>
    %80 = arith.select %78, %74, %79 : vector<16x64xi1>, vector<16x64xf32>
    %cst_37 = arith.constant 0.000000e+00 : f32
    %81 = vector.shape_cast %52 : vector<16x1xi1> to vector<16x1xi1>
    %82 = vector.broadcast %81 : vector<16x1xi1> to vector<16x64xi1>
    %83 = vector.broadcast %cst_37 : f32 to vector<16x64xf32>
    %84 = arith.select %82, %80, %83 : vector<16x64xi1>, vector<16x64xf32>
    %85 = arith.truncf %84 : vector<16x64xf32> to vector<16x64xbf16>
    %86 = vector.extract_strided_slice %9 {offsets = [2, 0, 0], sizes = [1, 64, 64], strides = [1, 1, 1]} : vector<3x64x64xbf16> to vector<1x64x64xbf16>
    %87 = vector.shape_cast %86 : vector<1x64x64xbf16> to vector<64x64xbf16>
    %cst_38 = arith.constant dense<0.000000e+00> : vector<16x64xf32>
    %88 = tpu.matmul %85, %87, %cst_38 {dimension_numbers = #tpu.dot_dimension_numbers<[1], [0], [0], [1], [0, 0, 1, 1], [], []>} : vector<16x64xbf16>, vector<64x64xbf16>, vector<16x64xf32> -> vector<16x64xf32>
    %89 = arith.addf %73, %88 : vector<16x64xf32>
    %90 = vector.broadcast %53 : vector<1x64xf32> to vector<16x64xf32>
    %91 = arith.addf %89, %90 : vector<16x64xf32>
    %cst_39 = arith.constant 0.000000e+00 : f32
    %92 = vector.broadcast %cst_39 : f32 to vector<16x64xf32>
    %93 = arith.maximumf %91, %92 : vector<16x64xf32>
    %94 = vector.extract_strided_slice %15 {offsets = [2, 0], sizes = [1, 64], strides = [1, 1]} : vector<4x64xf32> to vector<1x64xf32>
    %c4_i32_40 = arith.constant 4 : i32
    %95 = tpu.dynamic_rotate %93 by %c4_i32_40 dim 0 : vector<16x64xf32>, i32 -> vector<16x64xf32>
    %c4_i32_41 = arith.constant 4 : i32
    %96 = vector.broadcast %c4_i32_41 : i32 to vector<16x1xi32>
    %97 = arith.cmpi sge, %0, %96 : vector<16x1xi32>
    %cst_42 = arith.constant 0.000000e+00 : f32
    %98 = vector.shape_cast %97 : vector<16x1xi1> to vector<16x1xi1>
    %99 = vector.broadcast %98 : vector<16x1xi1> to vector<16x64xi1>
    %100 = vector.broadcast %cst_42 : f32 to vector<16x64xf32>
    %101 = arith.select %99, %95, %100 : vector<16x64xi1>, vector<16x64xf32>
    %102 = arith.truncf %101 : vector<16x64xf32> to vector<16x64xbf16>
    %103 = vector.extract_strided_slice %11 {offsets = [0, 0, 0], sizes = [1, 64, 64], strides = [1, 1, 1]} : vector<3x64x64xbf16> to vector<1x64x64xbf16>
    %104 = vector.shape_cast %103 : vector<1x64x64xbf16> to vector<64x64xbf16>
    %cst_43 = arith.constant dense<0.000000e+00> : vector<16x64xf32>
    %105 = tpu.matmul %102, %104, %cst_43 {dimension_numbers = #tpu.dot_dimension_numbers<[1], [0], [0], [1], [0, 0, 1, 1], [], []>} : vector<16x64xbf16>, vector<64x64xbf16>, vector<16x64xf32> -> vector<16x64xf32>
    %106 = arith.truncf %93 : vector<16x64xf32> to vector<16x64xbf16>
    %107 = vector.extract_strided_slice %11 {offsets = [1, 0, 0], sizes = [1, 64, 64], strides = [1, 1, 1]} : vector<3x64x64xbf16> to vector<1x64x64xbf16>
    %108 = vector.shape_cast %107 : vector<1x64x64xbf16> to vector<64x64xbf16>
    %cst_44 = arith.constant dense<0.000000e+00> : vector<16x64xf32>
    %109 = tpu.matmul %106, %108, %cst_44 {dimension_numbers = #tpu.dot_dimension_numbers<[1], [0], [0], [1], [0, 0, 1, 1], [], []>} : vector<16x64xbf16>, vector<64x64xbf16>, vector<16x64xf32> -> vector<16x64xf32>
    %110 = arith.addf %105, %109 : vector<16x64xf32>
    %c12_i32_45 = arith.constant 12 : i32
    %111 = tpu.dynamic_rotate %93 by %c12_i32_45 dim 0 : vector<16x64xf32>, i32 -> vector<16x64xf32>
    %c12_i32_46 = arith.constant 12 : i32
    %112 = vector.broadcast %c12_i32_46 : i32 to vector<16x1xi32>
    %113 = arith.cmpi slt, %0, %112 : vector<16x1xi32>
    %cst_47 = arith.constant 0.000000e+00 : f32
    %114 = vector.shape_cast %113 : vector<16x1xi1> to vector<16x1xi1>
    %115 = vector.broadcast %114 : vector<16x1xi1> to vector<16x64xi1>
    %116 = vector.broadcast %cst_47 : f32 to vector<16x64xf32>
    %117 = arith.select %115, %111, %116 : vector<16x64xi1>, vector<16x64xf32>
    %118 = arith.truncf %117 : vector<16x64xf32> to vector<16x64xbf16>
    %119 = vector.extract_strided_slice %11 {offsets = [2, 0, 0], sizes = [1, 64, 64], strides = [1, 1, 1]} : vector<3x64x64xbf16> to vector<1x64x64xbf16>
    %120 = vector.shape_cast %119 : vector<1x64x64xbf16> to vector<64x64xbf16>
    %cst_48 = arith.constant dense<0.000000e+00> : vector<16x64xf32>
    %121 = tpu.matmul %118, %120, %cst_48 {dimension_numbers = #tpu.dot_dimension_numbers<[1], [0], [0], [1], [0, 0, 1, 1], [], []>} : vector<16x64xbf16>, vector<64x64xbf16>, vector<16x64xf32> -> vector<16x64xf32>
    %122 = arith.addf %110, %121 : vector<16x64xf32>
    %123 = vector.broadcast %94 : vector<1x64xf32> to vector<16x64xf32>
    %124 = arith.addf %122, %123 : vector<16x64xf32>
    %cst_49 = arith.constant 0.000000e+00 : f32
    %125 = vector.broadcast %cst_49 : f32 to vector<16x64xf32>
    %126 = arith.maximumf %124, %125 : vector<16x64xf32>
    %c1_i32_50 = arith.constant 1 : i32
    %127 = vector.broadcast %c1_i32_50 : i32 to vector<16x1xi32>
    %128 = arith.cmpi sge, %2, %127 : vector<16x1xi32>
    %c3_i32_51 = arith.constant 3 : i32
    %129 = vector.broadcast %c3_i32_51 : i32 to vector<16x1xi32>
    %130 = arith.cmpi slt, %2, %129 : vector<16x1xi32>
    %131 = vector.extract_strided_slice %15 {offsets = [3, 0], sizes = [1, 64], strides = [1, 1]} : vector<4x64xf32> to vector<1x64xf32>
    %c1_i32_52 = arith.constant 1 : i32
    %132 = tpu.dynamic_rotate %126 by %c1_i32_52 dim 0 : vector<16x64xf32>, i32 -> vector<16x64xf32>
    %c1_i32_53 = arith.constant 1 : i32
    %133 = vector.broadcast %c1_i32_53 : i32 to vector<16x1xi32>
    %134 = arith.cmpi sge, %0, %133 : vector<16x1xi32>
    %cst_54 = arith.constant 0.000000e+00 : f32
    %135 = vector.shape_cast %134 : vector<16x1xi1> to vector<16x1xi1>
    %136 = vector.broadcast %135 : vector<16x1xi1> to vector<16x64xi1>
    %137 = vector.broadcast %cst_54 : f32 to vector<16x64xf32>
    %138 = arith.select %136, %132, %137 : vector<16x64xi1>, vector<16x64xf32>
    %cst_55 = arith.constant 0.000000e+00 : f32
    %139 = vector.shape_cast %128 : vector<16x1xi1> to vector<16x1xi1>
    %140 = vector.broadcast %139 : vector<16x1xi1> to vector<16x64xi1>
    %141 = vector.broadcast %cst_55 : f32 to vector<16x64xf32>
    %142 = arith.select %140, %138, %141 : vector<16x64xi1>, vector<16x64xf32>
    %143 = arith.truncf %142 : vector<16x64xf32> to vector<16x64xbf16>
    %144 = vector.extract_strided_slice %13 {offsets = [0, 0, 0], sizes = [1, 64, 64], strides = [1, 1, 1]} : vector<3x64x64xbf16> to vector<1x64x64xbf16>
    %145 = vector.shape_cast %144 : vector<1x64x64xbf16> to vector<64x64xbf16>
    %cst_56 = arith.constant dense<0.000000e+00> : vector<16x64xf32>
    %146 = tpu.matmul %143, %145, %cst_56 {dimension_numbers = #tpu.dot_dimension_numbers<[1], [0], [0], [1], [0, 0, 1, 1], [], []>} : vector<16x64xbf16>, vector<64x64xbf16>, vector<16x64xf32> -> vector<16x64xf32>
    %147 = arith.truncf %126 : vector<16x64xf32> to vector<16x64xbf16>
    %148 = vector.extract_strided_slice %13 {offsets = [1, 0, 0], sizes = [1, 64, 64], strides = [1, 1, 1]} : vector<3x64x64xbf16> to vector<1x64x64xbf16>
    %149 = vector.shape_cast %148 : vector<1x64x64xbf16> to vector<64x64xbf16>
    %cst_57 = arith.constant dense<0.000000e+00> : vector<16x64xf32>
    %150 = tpu.matmul %147, %149, %cst_57 {dimension_numbers = #tpu.dot_dimension_numbers<[1], [0], [0], [1], [0, 0, 1, 1], [], []>} : vector<16x64xbf16>, vector<64x64xbf16>, vector<16x64xf32> -> vector<16x64xf32>
    %151 = arith.addf %146, %150 : vector<16x64xf32>
    %c15_i32_58 = arith.constant 15 : i32
    %152 = tpu.dynamic_rotate %126 by %c15_i32_58 dim 0 : vector<16x64xf32>, i32 -> vector<16x64xf32>
    %c15_i32_59 = arith.constant 15 : i32
    %153 = vector.broadcast %c15_i32_59 : i32 to vector<16x1xi32>
    %154 = arith.cmpi slt, %0, %153 : vector<16x1xi32>
    %cst_60 = arith.constant 0.000000e+00 : f32
    %155 = vector.shape_cast %154 : vector<16x1xi1> to vector<16x1xi1>
    %156 = vector.broadcast %155 : vector<16x1xi1> to vector<16x64xi1>
    %157 = vector.broadcast %cst_60 : f32 to vector<16x64xf32>
    %158 = arith.select %156, %152, %157 : vector<16x64xi1>, vector<16x64xf32>
    %cst_61 = arith.constant 0.000000e+00 : f32
    %159 = vector.shape_cast %130 : vector<16x1xi1> to vector<16x1xi1>
    %160 = vector.broadcast %159 : vector<16x1xi1> to vector<16x64xi1>
    %161 = vector.broadcast %cst_61 : f32 to vector<16x64xf32>
    %162 = arith.select %160, %158, %161 : vector<16x64xi1>, vector<16x64xf32>
    %163 = arith.truncf %162 : vector<16x64xf32> to vector<16x64xbf16>
    %164 = vector.extract_strided_slice %13 {offsets = [2, 0, 0], sizes = [1, 64, 64], strides = [1, 1, 1]} : vector<3x64x64xbf16> to vector<1x64x64xbf16>
    %165 = vector.shape_cast %164 : vector<1x64x64xbf16> to vector<64x64xbf16>
    %cst_62 = arith.constant dense<0.000000e+00> : vector<16x64xf32>
    %166 = tpu.matmul %163, %165, %cst_62 {dimension_numbers = #tpu.dot_dimension_numbers<[1], [0], [0], [1], [0, 0, 1, 1], [], []>} : vector<16x64xbf16>, vector<64x64xbf16>, vector<16x64xf32> -> vector<16x64xf32>
    %167 = arith.addf %151, %166 : vector<16x64xf32>
    %168 = vector.broadcast %131 : vector<1x64xf32> to vector<16x64xf32>
    %169 = arith.addf %167, %168 : vector<16x64xf32>
    %170 = arith.addf %169, %5 : vector<16x64xf32>
    %cst_63 = arith.constant 0.000000e+00 : f32
    %171 = vector.broadcast %cst_63 : f32 to vector<16x64xf32>
    %172 = arith.maximumf %170, %171 : vector<16x64xf32>
    %c1 = arith.constant 1 : index
    %c0_64 = arith.constant 0 : index
    %c0_65 = arith.constant 0 : index
    %c0_66 = arith.constant 0 : index
    %173 = vector.load %arg2[%c1, %c0_64, %c0_65, %c0_66] : memref<2x3x64x64xbf16, #tpu.memory_space<vmem>>, vector<1x3x64x64xbf16>
    %174 = vector.shape_cast %173 : vector<1x3x64x64xbf16> to vector<3x64x64xbf16>
    %c1_67 = arith.constant 1 : index
    %c0_68 = arith.constant 0 : index
    %c0_69 = arith.constant 0 : index
    %c0_70 = arith.constant 0 : index
    %175 = vector.load %arg3[%c1_67, %c0_68, %c0_69, %c0_70] : memref<2x3x64x64xbf16, #tpu.memory_space<vmem>>, vector<1x3x64x64xbf16>
    %176 = vector.shape_cast %175 : vector<1x3x64x64xbf16> to vector<3x64x64xbf16>
    %c1_71 = arith.constant 1 : index
    %c0_72 = arith.constant 0 : index
    %c0_73 = arith.constant 0 : index
    %c0_74 = arith.constant 0 : index
    %177 = vector.load %arg4[%c1_71, %c0_72, %c0_73, %c0_74] : memref<2x3x64x64xbf16, #tpu.memory_space<vmem>>, vector<1x3x64x64xbf16>
    %178 = vector.shape_cast %177 : vector<1x3x64x64xbf16> to vector<3x64x64xbf16>
    %c1_75 = arith.constant 1 : index
    %c0_76 = arith.constant 0 : index
    %c0_77 = arith.constant 0 : index
    %c0_78 = arith.constant 0 : index
    %179 = vector.load %arg5[%c1_75, %c0_76, %c0_77, %c0_78] : memref<2x3x64x64xbf16, #tpu.memory_space<vmem>>, vector<1x3x64x64xbf16>
    %180 = vector.shape_cast %179 : vector<1x3x64x64xbf16> to vector<3x64x64xbf16>
    %c1_79 = arith.constant 1 : index
    %c0_80 = arith.constant 0 : index
    %c0_81 = arith.constant 0 : index
    %181 = vector.load %arg6[%c1_79, %c0_80, %c0_81] : memref<2x4x64xf32, #tpu.memory_space<vmem>>, vector<1x4x64xf32>
    %182 = vector.shape_cast %181 : vector<1x4x64xf32> to vector<4x64xf32>
    %183 = vector.extract_strided_slice %182 {offsets = [0, 0], sizes = [1, 64], strides = [1, 1]} : vector<4x64xf32> to vector<1x64xf32>
    %c4_i32_82 = arith.constant 4 : i32
    %184 = tpu.dynamic_rotate %172 by %c4_i32_82 dim 0 : vector<16x64xf32>, i32 -> vector<16x64xf32>
    %c4_i32_83 = arith.constant 4 : i32
    %185 = vector.broadcast %c4_i32_83 : i32 to vector<16x1xi32>
    %186 = arith.cmpi sge, %0, %185 : vector<16x1xi32>
    %cst_84 = arith.constant 0.000000e+00 : f32
    %187 = vector.shape_cast %186 : vector<16x1xi1> to vector<16x1xi1>
    %188 = vector.broadcast %187 : vector<16x1xi1> to vector<16x64xi1>
    %189 = vector.broadcast %cst_84 : f32 to vector<16x64xf32>
    %190 = arith.select %188, %184, %189 : vector<16x64xi1>, vector<16x64xf32>
    %191 = arith.truncf %190 : vector<16x64xf32> to vector<16x64xbf16>
    %192 = vector.extract_strided_slice %174 {offsets = [0, 0, 0], sizes = [1, 64, 64], strides = [1, 1, 1]} : vector<3x64x64xbf16> to vector<1x64x64xbf16>
    %193 = vector.shape_cast %192 : vector<1x64x64xbf16> to vector<64x64xbf16>
    %cst_85 = arith.constant dense<0.000000e+00> : vector<16x64xf32>
    %194 = tpu.matmul %191, %193, %cst_85 {dimension_numbers = #tpu.dot_dimension_numbers<[1], [0], [0], [1], [0, 0, 1, 1], [], []>} : vector<16x64xbf16>, vector<64x64xbf16>, vector<16x64xf32> -> vector<16x64xf32>
    %195 = arith.truncf %172 : vector<16x64xf32> to vector<16x64xbf16>
    %196 = vector.extract_strided_slice %174 {offsets = [1, 0, 0], sizes = [1, 64, 64], strides = [1, 1, 1]} : vector<3x64x64xbf16> to vector<1x64x64xbf16>
    %197 = vector.shape_cast %196 : vector<1x64x64xbf16> to vector<64x64xbf16>
    %cst_86 = arith.constant dense<0.000000e+00> : vector<16x64xf32>
    %198 = tpu.matmul %195, %197, %cst_86 {dimension_numbers = #tpu.dot_dimension_numbers<[1], [0], [0], [1], [0, 0, 1, 1], [], []>} : vector<16x64xbf16>, vector<64x64xbf16>, vector<16x64xf32> -> vector<16x64xf32>
    %199 = arith.addf %194, %198 : vector<16x64xf32>
    %c12_i32_87 = arith.constant 12 : i32
    %200 = tpu.dynamic_rotate %172 by %c12_i32_87 dim 0 : vector<16x64xf32>, i32 -> vector<16x64xf32>
    %c12_i32_88 = arith.constant 12 : i32
    %201 = vector.broadcast %c12_i32_88 : i32 to vector<16x1xi32>
    %202 = arith.cmpi slt, %0, %201 : vector<16x1xi32>
    %cst_89 = arith.constant 0.000000e+00 : f32
    %203 = vector.shape_cast %202 : vector<16x1xi1> to vector<16x1xi1>
    %204 = vector.broadcast %203 : vector<16x1xi1> to vector<16x64xi1>
    %205 = vector.broadcast %cst_89 : f32 to vector<16x64xf32>
    %206 = arith.select %204, %200, %205 : vector<16x64xi1>, vector<16x64xf32>
    %207 = arith.truncf %206 : vector<16x64xf32> to vector<16x64xbf16>
    %208 = vector.extract_strided_slice %174 {offsets = [2, 0, 0], sizes = [1, 64, 64], strides = [1, 1, 1]} : vector<3x64x64xbf16> to vector<1x64x64xbf16>
    %209 = vector.shape_cast %208 : vector<1x64x64xbf16> to vector<64x64xbf16>
    %cst_90 = arith.constant dense<0.000000e+00> : vector<16x64xf32>
    %210 = tpu.matmul %207, %209, %cst_90 {dimension_numbers = #tpu.dot_dimension_numbers<[1], [0], [0], [1], [0, 0, 1, 1], [], []>} : vector<16x64xbf16>, vector<64x64xbf16>, vector<16x64xf32> -> vector<16x64xf32>
    %211 = arith.addf %199, %210 : vector<16x64xf32>
    %212 = vector.broadcast %183 : vector<1x64xf32> to vector<16x64xf32>
    %213 = arith.addf %211, %212 : vector<16x64xf32>
    %cst_91 = arith.constant 0.000000e+00 : f32
    %214 = vector.broadcast %cst_91 : f32 to vector<16x64xf32>
    %215 = arith.maximumf %213, %214 : vector<16x64xf32>
    %c1_i32_92 = arith.constant 1 : i32
    %216 = vector.broadcast %c1_i32_92 : i32 to vector<16x1xi32>
    %217 = arith.cmpi sge, %2, %216 : vector<16x1xi32>
    %c3_i32_93 = arith.constant 3 : i32
    %218 = vector.broadcast %c3_i32_93 : i32 to vector<16x1xi32>
    %219 = arith.cmpi slt, %2, %218 : vector<16x1xi32>
    %220 = vector.extract_strided_slice %182 {offsets = [1, 0], sizes = [1, 64], strides = [1, 1]} : vector<4x64xf32> to vector<1x64xf32>
    %c1_i32_94 = arith.constant 1 : i32
    %221 = tpu.dynamic_rotate %215 by %c1_i32_94 dim 0 : vector<16x64xf32>, i32 -> vector<16x64xf32>
    %c1_i32_95 = arith.constant 1 : i32
    %222 = vector.broadcast %c1_i32_95 : i32 to vector<16x1xi32>
    %223 = arith.cmpi sge, %0, %222 : vector<16x1xi32>
    %cst_96 = arith.constant 0.000000e+00 : f32
    %224 = vector.shape_cast %223 : vector<16x1xi1> to vector<16x1xi1>
    %225 = vector.broadcast %224 : vector<16x1xi1> to vector<16x64xi1>
    %226 = vector.broadcast %cst_96 : f32 to vector<16x64xf32>
    %227 = arith.select %225, %221, %226 : vector<16x64xi1>, vector<16x64xf32>
    %cst_97 = arith.constant 0.000000e+00 : f32
    %228 = vector.shape_cast %217 : vector<16x1xi1> to vector<16x1xi1>
    %229 = vector.broadcast %228 : vector<16x1xi1> to vector<16x64xi1>
    %230 = vector.broadcast %cst_97 : f32 to vector<16x64xf32>
    %231 = arith.select %229, %227, %230 : vector<16x64xi1>, vector<16x64xf32>
    %232 = arith.truncf %231 : vector<16x64xf32> to vector<16x64xbf16>
    %233 = vector.extract_strided_slice %176 {offsets = [0, 0, 0], sizes = [1, 64, 64], strides = [1, 1, 1]} : vector<3x64x64xbf16> to vector<1x64x64xbf16>
    %234 = vector.shape_cast %233 : vector<1x64x64xbf16> to vector<64x64xbf16>
    %cst_98 = arith.constant dense<0.000000e+00> : vector<16x64xf32>
    %235 = tpu.matmul %232, %234, %cst_98 {dimension_numbers = #tpu.dot_dimension_numbers<[1], [0], [0], [1], [0, 0, 1, 1], [], []>} : vector<16x64xbf16>, vector<64x64xbf16>, vector<16x64xf32> -> vector<16x64xf32>
    %236 = arith.truncf %215 : vector<16x64xf32> to vector<16x64xbf16>
    %237 = vector.extract_strided_slice %176 {offsets = [1, 0, 0], sizes = [1, 64, 64], strides = [1, 1, 1]} : vector<3x64x64xbf16> to vector<1x64x64xbf16>
    %238 = vector.shape_cast %237 : vector<1x64x64xbf16> to vector<64x64xbf16>
    %cst_99 = arith.constant dense<0.000000e+00> : vector<16x64xf32>
    %239 = tpu.matmul %236, %238, %cst_99 {dimension_numbers = #tpu.dot_dimension_numbers<[1], [0], [0], [1], [0, 0, 1, 1], [], []>} : vector<16x64xbf16>, vector<64x64xbf16>, vector<16x64xf32> -> vector<16x64xf32>
    %240 = arith.addf %235, %239 : vector<16x64xf32>
    %c15_i32_100 = arith.constant 15 : i32
    %241 = tpu.dynamic_rotate %215 by %c15_i32_100 dim 0 : vector<16x64xf32>, i32 -> vector<16x64xf32>
    %c15_i32_101 = arith.constant 15 : i32
    %242 = vector.broadcast %c15_i32_101 : i32 to vector<16x1xi32>
    %243 = arith.cmpi slt, %0, %242 : vector<16x1xi32>
    %cst_102 = arith.constant 0.000000e+00 : f32
    %244 = vector.shape_cast %243 : vector<16x1xi1> to vector<16x1xi1>
    %245 = vector.broadcast %244 : vector<16x1xi1> to vector<16x64xi1>
    %246 = vector.broadcast %cst_102 : f32 to vector<16x64xf32>
    %247 = arith.select %245, %241, %246 : vector<16x64xi1>, vector<16x64xf32>
    %cst_103 = arith.constant 0.000000e+00 : f32
    %248 = vector.shape_cast %219 : vector<16x1xi1> to vector<16x1xi1>
    %249 = vector.broadcast %248 : vector<16x1xi1> to vector<16x64xi1>
    %250 = vector.broadcast %cst_103 : f32 to vector<16x64xf32>
    %251 = arith.select %249, %247, %250 : vector<16x64xi1>, vector<16x64xf32>
    %252 = arith.truncf %251 : vector<16x64xf32> to vector<16x64xbf16>
    %253 = vector.extract_strided_slice %176 {offsets = [2, 0, 0], sizes = [1, 64, 64], strides = [1, 1, 1]} : vector<3x64x64xbf16> to vector<1x64x64xbf16>
    %254 = vector.shape_cast %253 : vector<1x64x64xbf16> to vector<64x64xbf16>
    %cst_104 = arith.constant dense<0.000000e+00> : vector<16x64xf32>
    %255 = tpu.matmul %252, %254, %cst_104 {dimension_numbers = #tpu.dot_dimension_numbers<[1], [0], [0], [1], [0, 0, 1, 1], [], []>} : vector<16x64xbf16>, vector<64x64xbf16>, vector<16x64xf32> -> vector<16x64xf32>
    %256 = arith.addf %240, %255 : vector<16x64xf32>
    %257 = vector.broadcast %220 : vector<1x64xf32> to vector<16x64xf32>
    %258 = arith.addf %256, %257 : vector<16x64xf32>
    %cst_105 = arith.constant 0.000000e+00 : f32
    %259 = vector.broadcast %cst_105 : f32 to vector<16x64xf32>
    %260 = arith.maximumf %258, %259 : vector<16x64xf32>
    %261 = vector.extract_strided_slice %182 {offsets = [2, 0], sizes = [1, 64], strides = [1, 1]} : vector<4x64xf32> to vector<1x64xf32>
    %c4_i32_106 = arith.constant 4 : i32
    %262 = tpu.dynamic_rotate %260 by %c4_i32_106 dim 0 : vector<16x64xf32>, i32 -> vector<16x64xf32>
    %c4_i32_107 = arith.constant 4 : i32
    %263 = vector.broadcast %c4_i32_107 : i32 to vector<16x1xi32>
    %264 = arith.cmpi sge, %0, %263 : vector<16x1xi32>
    %cst_108 = arith.constant 0.000000e+00 : f32
    %265 = vector.shape_cast %264 : vector<16x1xi1> to vector<16x1xi1>
    %266 = vector.broadcast %265 : vector<16x1xi1> to vector<16x64xi1>
    %267 = vector.broadcast %cst_108 : f32 to vector<16x64xf32>
    %268 = arith.select %266, %262, %267 : vector<16x64xi1>, vector<16x64xf32>
    %269 = arith.truncf %268 : vector<16x64xf32> to vector<16x64xbf16>
    %270 = vector.extract_strided_slice %178 {offsets = [0, 0, 0], sizes = [1, 64, 64], strides = [1, 1, 1]} : vector<3x64x64xbf16> to vector<1x64x64xbf16>
    %271 = vector.shape_cast %270 : vector<1x64x64xbf16> to vector<64x64xbf16>
    %cst_109 = arith.constant dense<0.000000e+00> : vector<16x64xf32>
    %272 = tpu.matmul %269, %271, %cst_109 {dimension_numbers = #tpu.dot_dimension_numbers<[1], [0], [0], [1], [0, 0, 1, 1], [], []>} : vector<16x64xbf16>, vector<64x64xbf16>, vector<16x64xf32> -> vector<16x64xf32>
    %273 = arith.truncf %260 : vector<16x64xf32> to vector<16x64xbf16>
    %274 = vector.extract_strided_slice %178 {offsets = [1, 0, 0], sizes = [1, 64, 64], strides = [1, 1, 1]} : vector<3x64x64xbf16> to vector<1x64x64xbf16>
    %275 = vector.shape_cast %274 : vector<1x64x64xbf16> to vector<64x64xbf16>
    %cst_110 = arith.constant dense<0.000000e+00> : vector<16x64xf32>
    %276 = tpu.matmul %273, %275, %cst_110 {dimension_numbers = #tpu.dot_dimension_numbers<[1], [0], [0], [1], [0, 0, 1, 1], [], []>} : vector<16x64xbf16>, vector<64x64xbf16>, vector<16x64xf32> -> vector<16x64xf32>
    %277 = arith.addf %272, %276 : vector<16x64xf32>
    %c12_i32_111 = arith.constant 12 : i32
    %278 = tpu.dynamic_rotate %260 by %c12_i32_111 dim 0 : vector<16x64xf32>, i32 -> vector<16x64xf32>
    %c12_i32_112 = arith.constant 12 : i32
    %279 = vector.broadcast %c12_i32_112 : i32 to vector<16x1xi32>
    %280 = arith.cmpi slt, %0, %279 : vector<16x1xi32>
    %cst_113 = arith.constant 0.000000e+00 : f32
    %281 = vector.shape_cast %280 : vector<16x1xi1> to vector<16x1xi1>
    %282 = vector.broadcast %281 : vector<16x1xi1> to vector<16x64xi1>
    %283 = vector.broadcast %cst_113 : f32 to vector<16x64xf32>
    %284 = arith.select %282, %278, %283 : vector<16x64xi1>, vector<16x64xf32>
    %285 = arith.truncf %284 : vector<16x64xf32> to vector<16x64xbf16>
    %286 = vector.extract_strided_slice %178 {offsets = [2, 0, 0], sizes = [1, 64, 64], strides = [1, 1, 1]} : vector<3x64x64xbf16> to vector<1x64x64xbf16>
    %287 = vector.shape_cast %286 : vector<1x64x64xbf16> to vector<64x64xbf16>
    %cst_114 = arith.constant dense<0.000000e+00> : vector<16x64xf32>
    %288 = tpu.matmul %285, %287, %cst_114 {dimension_numbers = #tpu.dot_dimension_numbers<[1], [0], [0], [1], [0, 0, 1, 1], [], []>} : vector<16x64xbf16>, vector<64x64xbf16>, vector<16x64xf32> -> vector<16x64xf32>
    %289 = arith.addf %277, %288 : vector<16x64xf32>
    %290 = vector.broadcast %261 : vector<1x64xf32> to vector<16x64xf32>
    %291 = arith.addf %289, %290 : vector<16x64xf32>
    %cst_115 = arith.constant 0.000000e+00 : f32
    %292 = vector.broadcast %cst_115 : f32 to vector<16x64xf32>
    %293 = arith.maximumf %291, %292 : vector<16x64xf32>
    %c1_i32_116 = arith.constant 1 : i32
    %294 = vector.broadcast %c1_i32_116 : i32 to vector<16x1xi32>
    %295 = arith.cmpi sge, %2, %294 : vector<16x1xi32>
    %c3_i32_117 = arith.constant 3 : i32
    %296 = vector.broadcast %c3_i32_117 : i32 to vector<16x1xi32>
    %297 = arith.cmpi slt, %2, %296 : vector<16x1xi32>
    %298 = vector.extract_strided_slice %182 {offsets = [3, 0], sizes = [1, 64], strides = [1, 1]} : vector<4x64xf32> to vector<1x64xf32>
    %c1_i32_118 = arith.constant 1 : i32
    %299 = tpu.dynamic_rotate %293 by %c1_i32_118 dim 0 : vector<16x64xf32>, i32 -> vector<16x64xf32>
    %c1_i32_119 = arith.constant 1 : i32
    %300 = vector.broadcast %c1_i32_119 : i32 to vector<16x1xi32>
    %301 = arith.cmpi sge, %0, %300 : vector<16x1xi32>
    %cst_120 = arith.constant 0.000000e+00 : f32
    %302 = vector.shape_cast %301 : vector<16x1xi1> to vector<16x1xi1>
    %303 = vector.broadcast %302 : vector<16x1xi1> to vector<16x64xi1>
    %304 = vector.broadcast %cst_120 : f32 to vector<16x64xf32>
    %305 = arith.select %303, %299, %304 : vector<16x64xi1>, vector<16x64xf32>
    %cst_121 = arith.constant 0.000000e+00 : f32
    %306 = vector.shape_cast %295 : vector<16x1xi1> to vector<16x1xi1>
    %307 = vector.broadcast %306 : vector<16x1xi1> to vector<16x64xi1>
    %308 = vector.broadcast %cst_121 : f32 to vector<16x64xf32>
    %309 = arith.select %307, %305, %308 : vector<16x64xi1>, vector<16x64xf32>
    %310 = arith.truncf %309 : vector<16x64xf32> to vector<16x64xbf16>
    %311 = vector.extract_strided_slice %180 {offsets = [0, 0, 0], sizes = [1, 64, 64], strides = [1, 1, 1]} : vector<3x64x64xbf16> to vector<1x64x64xbf16>
    %312 = vector.shape_cast %311 : vector<1x64x64xbf16> to vector<64x64xbf16>
    %cst_122 = arith.constant dense<0.000000e+00> : vector<16x64xf32>
    %313 = tpu.matmul %310, %312, %cst_122 {dimension_numbers = #tpu.dot_dimension_numbers<[1], [0], [0], [1], [0, 0, 1, 1], [], []>} : vector<16x64xbf16>, vector<64x64xbf16>, vector<16x64xf32> -> vector<16x64xf32>
    %314 = arith.truncf %293 : vector<16x64xf32> to vector<16x64xbf16>
    %315 = vector.extract_strided_slice %180 {offsets = [1, 0, 0], sizes = [1, 64, 64], strides = [1, 1, 1]} : vector<3x64x64xbf16> to vector<1x64x64xbf16>
    %316 = vector.shape_cast %315 : vector<1x64x64xbf16> to vector<64x64xbf16>
    %cst_123 = arith.constant dense<0.000000e+00> : vector<16x64xf32>
    %317 = tpu.matmul %314, %316, %cst_123 {dimension_numbers = #tpu.dot_dimension_numbers<[1], [0], [0], [1], [0, 0, 1, 1], [], []>} : vector<16x64xbf16>, vector<64x64xbf16>, vector<16x64xf32> -> vector<16x64xf32>
    %318 = arith.addf %313, %317 : vector<16x64xf32>
    %c15_i32_124 = arith.constant 15 : i32
    %319 = tpu.dynamic_rotate %293 by %c15_i32_124 dim 0 : vector<16x64xf32>, i32 -> vector<16x64xf32>
    %c15_i32_125 = arith.constant 15 : i32
    %320 = vector.broadcast %c15_i32_125 : i32 to vector<16x1xi32>
    %321 = arith.cmpi slt, %0, %320 : vector<16x1xi32>
    %cst_126 = arith.constant 0.000000e+00 : f32
    %322 = vector.shape_cast %321 : vector<16x1xi1> to vector<16x1xi1>
    %323 = vector.broadcast %322 : vector<16x1xi1> to vector<16x64xi1>
    %324 = vector.broadcast %cst_126 : f32 to vector<16x64xf32>
    %325 = arith.select %323, %319, %324 : vector<16x64xi1>, vector<16x64xf32>
    %cst_127 = arith.constant 0.000000e+00 : f32
    %326 = vector.shape_cast %297 : vector<16x1xi1> to vector<16x1xi1>
    %327 = vector.broadcast %326 : vector<16x1xi1> to vector<16x64xi1>
    %328 = vector.broadcast %cst_127 : f32 to vector<16x64xf32>
    %329 = arith.select %327, %325, %328 : vector<16x64xi1>, vector<16x64xf32>
    %330 = arith.truncf %329 : vector<16x64xf32> to vector<16x64xbf16>
    %331 = vector.extract_strided_slice %180 {offsets = [2, 0, 0], sizes = [1, 64, 64], strides = [1, 1, 1]} : vector<3x64x64xbf16> to vector<1x64x64xbf16>
    %332 = vector.shape_cast %331 : vector<1x64x64xbf16> to vector<64x64xbf16>
    %cst_128 = arith.constant dense<0.000000e+00> : vector<16x64xf32>
    %333 = tpu.matmul %330, %332, %cst_128 {dimension_numbers = #tpu.dot_dimension_numbers<[1], [0], [0], [1], [0, 0, 1, 1], [], []>} : vector<16x64xbf16>, vector<64x64xbf16>, vector<16x64xf32> -> vector<16x64xf32>
    %334 = arith.addf %318, %333 : vector<16x64xf32>
    %335 = vector.broadcast %298 : vector<1x64xf32> to vector<16x64xf32>
    %336 = arith.addf %334, %335 : vector<16x64xf32>
    %337 = arith.addf %336, %172 : vector<16x64xf32>
    %cst_129 = arith.constant 0.000000e+00 : f32
    %338 = vector.broadcast %cst_129 : f32 to vector<16x64xf32>
    %339 = arith.maximumf %337, %338 : vector<16x64xf32>
    %340 = arith.truncf %339 : vector<16x64xf32> to vector<16x64xbf16>
    %c0_130 = arith.constant 0 : index
    %c0_131 = arith.constant 0 : index
    %c0_132 = arith.constant 0 : index
    %341 = vector.load %arg7[%c0_130, %c0_131, %c0_132] : memref<1x16x64xbf16, #tpu.memory_space<vmem>>, vector<1x16x64xbf16>
    %342 = vector.shape_cast %341 : vector<1x16x64xbf16> to vector<16x64xbf16>
    %343 = vector.shape_cast %340 : vector<16x64xbf16> to vector<1x16x64xbf16>
    tpu.vector_store %arg7[%c0_130, %c0_131, %c0_132], %343 {strides = array<i32>} : memref<1x16x64xbf16, #tpu.memory_space<vmem>>, vector<1x16x64xbf16>,
    return
  }
  func.func @transform_0(%arg0: i32) -> (i32, i32, i32) {
    %c0_i32 = arith.constant 0 : i32
    %c0_i32_0 = arith.constant 0 : i32
    %c0_i32_1 = arith.constant 0 : i32
    return %arg0, %c0_i32, %c0_i32_0 : i32, i32, i32
  }
  func.func @transform_1(%arg0: i32) -> (i32, i32, i32, i32) {
    %c0_i32 = arith.constant 0 : i32
    %c0_i32_0 = arith.constant 0 : i32
    %c0_i32_1 = arith.constant 0 : i32
    %c0_i32_2 = arith.constant 0 : i32
    %c0_i32_3 = arith.constant 0 : i32
    return %c0_i32, %c0_i32_0, %c0_i32_1, %c0_i32_2 : i32, i32, i32, i32
  }
  func.func @transform_2(%arg0: i32) -> (i32, i32, i32, i32) {
    %c0_i32 = arith.constant 0 : i32
    %c0_i32_0 = arith.constant 0 : i32
    %c0_i32_1 = arith.constant 0 : i32
    %c0_i32_2 = arith.constant 0 : i32
    %c0_i32_3 = arith.constant 0 : i32
    return %c0_i32, %c0_i32_0, %c0_i32_1, %c0_i32_2 : i32, i32, i32, i32
  }
  func.func @transform_3(%arg0: i32) -> (i32, i32, i32, i32) {
    %c0_i32 = arith.constant 0 : i32
    %c0_i32_0 = arith.constant 0 : i32
    %c0_i32_1 = arith.constant 0 : i32
    %c0_i32_2 = arith.constant 0 : i32
    %c0_i32_3 = arith.constant 0 : i32
    return %c0_i32, %c0_i32_0, %c0_i32_1, %c0_i32_2 : i32, i32, i32, i32
  }
  func.func @transform_4(%arg0: i32) -> (i32, i32, i32, i32) {
    %c0_i32 = arith.constant 0 : i32
    %c0_i32_0 = arith.constant 0 : i32
    %c0_i32_1 = arith.constant 0 : i32
    %c0_i32_2 = arith.constant 0 : i32
    %c0_i32_3 = arith.constant 0 : i32
    return %c0_i32, %c0_i32_0, %c0_i32_1, %c0_i32_2 : i32, i32, i32, i32
  }
  func.func @transform_5(%arg0: i32) -> (i32, i32, i32) {
    %c0_i32 = arith.constant 0 : i32
    %c0_i32_0 = arith.constant 0 : i32
    %c0_i32_1 = arith.constant 0 : i32
    %c0_i32_2 = arith.constant 0 : i32
    return %c0_i32, %c0_i32_0, %c0_i32_1 : i32, i32, i32
  }
  func.func @transform_6(%arg0: i32) -> (i32, i32, i32) {
    %c0_i32 = arith.constant 0 : i32
    %c0_i32_0 = arith.constant 0 : i32
    %c0_i32_1 = arith.constant 0 : i32
    return %arg0, %c0_i32, %c0_i32_0 : i32, i32, i32
  }
}

module attributes {stable_mosaic.version = 11 : i64} {
  func.func @_down_kernel(%arg0: i32, %arg1: memref<1x4x4x64xbf16, #tpu.memory_space<vmem>>, %arg2: memref<576x64xbf16, #tpu.memory_space<vmem>>, %arg3: memref<1x64xf32, #tpu.memory_space<vmem>>, %arg4: memref<2x64xf32, #tpu.memory_space<vmem>>, %arg5: memref<1x4x128xbf16, #tpu.memory_space<vmem>>) attributes {dimension_semantics = [#tpu.dimension_semantics<parallel>], iteration_bounds = array<i64: 2>, scalar_prefetch = 0 : i64, scratch_operands = 0 : i64, tpu.core_type = #tpu.core_type<tc>, window_params = [{transform_indices = @transform_0, window_bounds = array<i64: 1, 4, 4, 64>}, {pipeline_mode = #tpu.pipeline_mode<synchronous>, transform_indices = @transform_1, window_bounds = array<i64: 576, 64>}, {pipeline_mode = #tpu.pipeline_mode<synchronous>, transform_indices = @transform_2, window_bounds = array<i64: 1, 64>}, {pipeline_mode = #tpu.pipeline_mode<synchronous>, transform_indices = @transform_3, window_bounds = array<i64: 2, 64>}, {transform_indices = @transform_4, window_bounds = array<i64: 1, 4, 128>}]} {
    %0 = tpu.iota {dimensions = array<i32: 0>} : vector<4x1xi32>
    %c1_i32 = arith.constant 1 : i32
    %1 = vector.broadcast %c1_i32 : i32 to vector<4x1xi32>
    %2 = arith.andi %0, %1 : vector<4x1xi32>
    %c0 = arith.constant 0 : index
    %c0_0 = arith.constant 0 : index
    %c0_1 = arith.constant 0 : index
    %c0_2 = arith.constant 0 : index
    %3 = vector.load %arg1[%c0, %c0_0, %c0_1, %c0_2] : memref<1x4x4x64xbf16, #tpu.memory_space<vmem>>, vector<1x4x4x64xbf16>
    %4 = vector.shape_cast %3 : vector<1x4x4x64xbf16> to vector<4x4x64xbf16>
    %5 = arith.extf %4 : vector<4x4x64xbf16> to vector<4x4x64xf32>
    %6 = vector.extract_strided_slice %5 {offsets = [3, 0, 0], sizes = [1, 4, 64], strides = [1, 1, 1]} : vector<4x4x64xf32> to vector<1x4x64xf32>
    %7 = vector.shape_cast %6 : vector<1x4x64xf32> to vector<4x64xf32>
    %cst = arith.constant 0.000000e+00 : f32
    %8 = vector.broadcast %cst : f32 to vector<3x64xf32>
    %9 = vector.extract_strided_slice %7 {offsets = [0, 0], sizes = [1, 64], strides = [1, 1]} : vector<4x64xf32> to vector<1x64xf32>
    %10 = tpu.concatenate %8, %9 in 0 : vector<3x64xf32>, vector<1x64xf32> -> vector<4x64xf32>
    %c1_i32_3 = arith.constant 1 : i32
    %11 = vector.broadcast %c1_i32_3 : i32 to vector<4x1xi32>
    %12 = arith.cmpi sge, %2, %11 : vector<4x1xi32>
    %cst_4 = arith.constant 0.000000e+00 : f32
    %13 = vector.shape_cast %12 : vector<4x1xi1> to vector<4x1xi1>
    %14 = vector.broadcast %13 : vector<4x1xi1> to vector<4x64xi1>
    %15 = vector.broadcast %cst_4 : f32 to vector<4x64xf32>
    %16 = arith.select %14, %10, %15 : vector<4x64xi1>, vector<4x64xf32>
    %17 = vector.extract_strided_slice %5 {offsets = [2, 0, 0], sizes = [1, 4, 64], strides = [1, 1, 1]} : vector<4x4x64xf32> to vector<1x4x64xf32>
    %18 = vector.shape_cast %17 : vector<1x4x64xf32> to vector<4x64xf32>
    %cst_5 = arith.constant 0.000000e+00 : f32
    %19 = vector.broadcast %cst_5 : f32 to vector<2x64xf32>
    %20 = vector.extract_strided_slice %18 {offsets = [0, 0], sizes = [2, 64], strides = [1, 1]} : vector<4x64xf32> to vector<2x64xf32>
    %21 = tpu.concatenate %19, %20 in 0 : vector<2x64xf32>, vector<2x64xf32> -> vector<4x64xf32>
    %22 = vector.extract_strided_slice %5 {offsets = [3, 0, 0], sizes = [1, 4, 64], strides = [1, 1, 1]} : vector<4x4x64xf32> to vector<1x4x64xf32>
    %23 = vector.shape_cast %22 : vector<1x4x64xf32> to vector<4x64xf32>
    %cst_6 = arith.constant 0.000000e+00 : f32
    %24 = vector.broadcast %cst_6 : f32 to vector<2x64xf32>
    %25 = vector.extract_strided_slice %23 {offsets = [0, 0], sizes = [2, 64], strides = [1, 1]} : vector<4x64xf32> to vector<2x64xf32>
    %26 = tpu.concatenate %24, %25 in 0 : vector<2x64xf32>, vector<2x64xf32> -> vector<4x64xf32>
    %27 = vector.extract_strided_slice %5 {offsets = [1, 0, 0], sizes = [1, 4, 64], strides = [1, 1, 1]} : vector<4x4x64xf32> to vector<1x4x64xf32>
    %28 = vector.shape_cast %27 : vector<1x4x64xf32> to vector<4x64xf32>
    %cst_7 = arith.constant 0.000000e+00 : f32
    %29 = vector.broadcast %cst_7 : f32 to vector<1x64xf32>
    %30 = vector.extract_strided_slice %28 {offsets = [0, 0], sizes = [3, 64], strides = [1, 1]} : vector<4x64xf32> to vector<3x64xf32>
    %31 = tpu.concatenate %29, %30 in 0 : vector<1x64xf32>, vector<3x64xf32> -> vector<4x64xf32>
    %c1_i32_8 = arith.constant 1 : i32
    %32 = vector.broadcast %c1_i32_8 : i32 to vector<4x1xi32>
    %33 = arith.cmpi sge, %2, %32 : vector<4x1xi32>
    %cst_9 = arith.constant 0.000000e+00 : f32
    %34 = vector.shape_cast %33 : vector<4x1xi1> to vector<4x1xi1>
    %35 = vector.broadcast %34 : vector<4x1xi1> to vector<4x64xi1>
    %36 = vector.broadcast %cst_9 : f32 to vector<4x64xf32>
    %37 = arith.select %35, %31, %36 : vector<4x64xi1>, vector<4x64xf32>
    %38 = vector.extract_strided_slice %5 {offsets = [0, 0, 0], sizes = [1, 4, 64], strides = [1, 1, 1]} : vector<4x4x64xf32> to vector<1x4x64xf32>
    %39 = vector.shape_cast %38 : vector<1x4x64xf32> to vector<4x64xf32>
    %40 = vector.extract_strided_slice %5 {offsets = [1, 0, 0], sizes = [1, 4, 64], strides = [1, 1, 1]} : vector<4x4x64xf32> to vector<1x4x64xf32>
    %41 = vector.shape_cast %40 : vector<1x4x64xf32> to vector<4x64xf32>
    %42 = vector.extract_strided_slice %5 {offsets = [3, 0, 0], sizes = [1, 4, 64], strides = [1, 1, 1]} : vector<4x4x64xf32> to vector<1x4x64xf32>
    %43 = vector.shape_cast %42 : vector<1x4x64xf32> to vector<4x64xf32>
    %cst_10 = arith.constant 0.000000e+00 : f32
    %44 = vector.broadcast %cst_10 : f32 to vector<1x64xf32>
    %45 = vector.extract_strided_slice %43 {offsets = [0, 0], sizes = [3, 64], strides = [1, 1]} : vector<4x64xf32> to vector<3x64xf32>
    %46 = tpu.concatenate %44, %45 in 0 : vector<1x64xf32>, vector<3x64xf32> -> vector<4x64xf32>
    %c1_i32_11 = arith.constant 1 : i32
    %47 = vector.broadcast %c1_i32_11 : i32 to vector<4x1xi32>
    %48 = arith.cmpi sge, %2, %47 : vector<4x1xi32>
    %cst_12 = arith.constant 0.000000e+00 : f32
    %49 = vector.shape_cast %48 : vector<4x1xi1> to vector<4x1xi1>
    %50 = vector.broadcast %49 : vector<4x1xi1> to vector<4x64xi1>
    %51 = vector.broadcast %cst_12 : f32 to vector<4x64xf32>
    %52 = arith.select %50, %46, %51 : vector<4x64xi1>, vector<4x64xf32>
    %53 = vector.extract_strided_slice %5 {offsets = [2, 0, 0], sizes = [1, 4, 64], strides = [1, 1, 1]} : vector<4x4x64xf32> to vector<1x4x64xf32>
    %54 = vector.shape_cast %53 : vector<1x4x64xf32> to vector<4x64xf32>
    %55 = vector.extract_strided_slice %5 {offsets = [3, 0, 0], sizes = [1, 4, 64], strides = [1, 1, 1]} : vector<4x4x64xf32> to vector<1x4x64xf32>
    %56 = vector.shape_cast %55 : vector<1x4x64xf32> to vector<4x64xf32>
    %57 = tpu.concatenate %16, %21, %26, %37, %39, %41, %52, %54, %56 in 1 : vector<4x64xf32>, vector<4x64xf32>, vector<4x64xf32>, vector<4x64xf32>, vector<4x64xf32>, vector<4x64xf32>, vector<4x64xf32>, vector<4x64xf32>, vector<4x64xf32> -> vector<4x576xf32>
    %58 = arith.truncf %57 : vector<4x576xf32> to vector<4x576xbf16>
    %c0_13 = arith.constant 0 : index
    %c0_14 = arith.constant 0 : index
    %59 = vector.load %arg2[%c0_13, %c0_14] : memref<576x64xbf16, #tpu.memory_space<vmem>>, vector<576x64xbf16>
    %cst_15 = arith.constant dense<0.000000e+00> : vector<4x64xf32>
    %60 = tpu.matmul %58, %59, %cst_15 {dimension_numbers = #tpu.dot_dimension_numbers<[1], [0], [0], [1], [0, 0, 1, 1], [], []>} : vector<4x576xbf16>, vector<576x64xbf16>, vector<4x64xf32> -> vector<4x64xf32>
    %c0_16 = arith.constant 0 : index
    %c0_17 = arith.constant 0 : index
    %61 = vector.load %arg3[%c0_16, %c0_17] : memref<1x64xf32, #tpu.memory_space<vmem>>, vector<1x64xf32>
    %62 = vector.broadcast %61 : vector<1x64xf32> to vector<4x64xf32>
    %63 = arith.addf %60, %62 : vector<4x64xf32>
    %64 = vector.extract_strided_slice %5 {offsets = [0, 0, 0], sizes = [1, 4, 64], strides = [1, 1, 1]} : vector<4x4x64xf32> to vector<1x4x64xf32>
    %65 = vector.shape_cast %64 : vector<1x4x64xf32> to vector<4x64xf32>
    %66 = vector.extract_strided_slice %5 {offsets = [1, 0, 0], sizes = [1, 4, 64], strides = [1, 1, 1]} : vector<4x4x64xf32> to vector<1x4x64xf32>
    %67 = vector.shape_cast %66 : vector<1x4x64xf32> to vector<4x64xf32>
    %68 = arith.maximumf %65, %67 : vector<4x64xf32>
    %69 = vector.extract_strided_slice %5 {offsets = [2, 0, 0], sizes = [1, 4, 64], strides = [1, 1, 1]} : vector<4x4x64xf32> to vector<1x4x64xf32>
    %70 = vector.shape_cast %69 : vector<1x4x64xf32> to vector<4x64xf32>
    %71 = vector.extract_strided_slice %5 {offsets = [3, 0, 0], sizes = [1, 4, 64], strides = [1, 1, 1]} : vector<4x4x64xf32> to vector<1x4x64xf32>
    %72 = vector.shape_cast %71 : vector<1x4x64xf32> to vector<4x64xf32>
    %73 = arith.maximumf %70, %72 : vector<4x64xf32>
    %74 = arith.maximumf %68, %73 : vector<4x64xf32>
    %c0_18 = arith.constant 0 : index
    %c0_19 = arith.constant 0 : index
    %75 = vector.load %arg4[%c0_18, %c0_19] : memref<2x64xf32, #tpu.memory_space<vmem>>, vector<1x64xf32>
    %76 = vector.broadcast %75 : vector<1x64xf32> to vector<4x64xf32>
    %77 = arith.mulf %74, %76 : vector<4x64xf32>
    %c1 = arith.constant 1 : index
    %c0_20 = arith.constant 0 : index
    %78 = vector.load %arg4[%c1, %c0_20] : memref<2x64xf32, #tpu.memory_space<vmem>>, vector<1x64xf32>
    %79 = vector.broadcast %78 : vector<1x64xf32> to vector<4x64xf32>
    %80 = arith.addf %77, %79 : vector<4x64xf32>
    %81 = tpu.concatenate %63, %80 in 1 : vector<4x64xf32>, vector<4x64xf32> -> vector<4x128xf32>
    %cst_21 = arith.constant 0.000000e+00 : f32
    %82 = vector.broadcast %cst_21 : f32 to vector<4x128xf32>
    %83 = arith.maximumf %81, %82 : vector<4x128xf32>
    %84 = arith.truncf %83 : vector<4x128xf32> to vector<4x128xbf16>
    %c0_22 = arith.constant 0 : index
    %c0_23 = arith.constant 0 : index
    %c0_24 = arith.constant 0 : index
    %85 = vector.load %arg5[%c0_22, %c0_23, %c0_24] : memref<1x4x128xbf16, #tpu.memory_space<vmem>>, vector<1x4x128xbf16>
    %86 = vector.shape_cast %85 : vector<1x4x128xbf16> to vector<4x128xbf16>
    %87 = vector.shape_cast %84 : vector<4x128xbf16> to vector<1x4x128xbf16>
    tpu.vector_store %arg5[%c0_22, %c0_23, %c0_24], %87 {strides = array<i32>} : memref<1x4x128xbf16, #tpu.memory_space<vmem>>, vector<1x4x128xbf16>,
    return
  }
  func.func @transform_0(%arg0: i32) -> (i32, i32, i32, i32) {
    %c0_i32 = arith.constant 0 : i32
    %c0_i32_0 = arith.constant 0 : i32
    %c0_i32_1 = arith.constant 0 : i32
    %c0_i32_2 = arith.constant 0 : i32
    return %arg0, %c0_i32, %c0_i32_0, %c0_i32_1 : i32, i32, i32, i32
  }
  func.func @transform_1(%arg0: i32) -> (i32, i32) {
    %c0_i32 = arith.constant 0 : i32
    %c0_i32_0 = arith.constant 0 : i32
    %c0_i32_1 = arith.constant 0 : i32
    return %c0_i32, %c0_i32_0 : i32, i32
  }
  func.func @transform_2(%arg0: i32) -> (i32, i32) {
    %c0_i32 = arith.constant 0 : i32
    %c0_i32_0 = arith.constant 0 : i32
    %c0_i32_1 = arith.constant 0 : i32
    return %c0_i32, %c0_i32_0 : i32, i32
  }
  func.func @transform_3(%arg0: i32) -> (i32, i32) {
    %c0_i32 = arith.constant 0 : i32
    %c0_i32_0 = arith.constant 0 : i32
    %c0_i32_1 = arith.constant 0 : i32
    return %c0_i32, %c0_i32_0 : i32, i32
  }
  func.func @transform_4(%arg0: i32) -> (i32, i32, i32) {
    %c0_i32 = arith.constant 0 : i32
    %c0_i32_0 = arith.constant 0 : i32
    %c0_i32_1 = arith.constant 0 : i32
    return %arg0, %c0_i32, %c0_i32_0 : i32, i32, i32
  }
}

module attributes {stable_mosaic.version = 11 : i64} {
  func.func @_nb_chain_kernel(%arg0: i32, %arg1: memref<1x4x128xbf16, #tpu.memory_space<vmem>>, %arg2: memref<4x3x128x128xbf16, #tpu.memory_space<vmem>>, %arg3: memref<4x3x128x128xbf16, #tpu.memory_space<vmem>>, %arg4: memref<4x3x128x128xbf16, #tpu.memory_space<vmem>>, %arg5: memref<4x3x128x128xbf16, #tpu.memory_space<vmem>>, %arg6: memref<4x4x128xf32, #tpu.memory_space<vmem>>, %arg7: memref<1x4x128xbf16, #tpu.memory_space<vmem>>) attributes {dimension_semantics = [#tpu.dimension_semantics<parallel>], iteration_bounds = array<i64: 2>, scalar_prefetch = 0 : i64, scratch_operands = 0 : i64, tpu.core_type = #tpu.core_type<tc>, window_params = [{transform_indices = @transform_0, window_bounds = array<i64: 1, 4, 128>}, {pipeline_mode = #tpu.pipeline_mode<synchronous>, transform_indices = @transform_1, window_bounds = array<i64: 4, 3, 128, 128>}, {pipeline_mode = #tpu.pipeline_mode<synchronous>, transform_indices = @transform_2, window_bounds = array<i64: 4, 3, 128, 128>}, {pipeline_mode = #tpu.pipeline_mode<synchronous>, transform_indices = @transform_3, window_bounds = array<i64: 4, 3, 128, 128>}, {pipeline_mode = #tpu.pipeline_mode<synchronous>, transform_indices = @transform_4, window_bounds = array<i64: 4, 3, 128, 128>}, {pipeline_mode = #tpu.pipeline_mode<synchronous>, transform_indices = @transform_5, window_bounds = array<i64: 4, 4, 128>}, {transform_indices = @transform_6, window_bounds = array<i64: 1, 4, 128>}]} {
    %0 = tpu.iota {dimensions = array<i32: 0>} : vector<4x1xi32>
    %c1_i32 = arith.constant 1 : i32
    %1 = vector.broadcast %c1_i32 : i32 to vector<4x1xi32>
    %2 = arith.andi %0, %1 : vector<4x1xi32>
    %c0 = arith.constant 0 : index
    %c0_0 = arith.constant 0 : index
    %c0_1 = arith.constant 0 : index
    %3 = vector.load %arg1[%c0, %c0_0, %c0_1] : memref<1x4x128xbf16, #tpu.memory_space<vmem>>, vector<1x4x128xbf16>
    %4 = vector.shape_cast %3 : vector<1x4x128xbf16> to vector<4x128xbf16>
    %5 = arith.extf %4 : vector<4x128xbf16> to vector<4x128xf32>
    %c0_2 = arith.constant 0 : index
    %c0_3 = arith.constant 0 : index
    %c0_4 = arith.constant 0 : index
    %c0_5 = arith.constant 0 : index
    %6 = vector.load %arg2[%c0_2, %c0_3, %c0_4, %c0_5] : memref<4x3x128x128xbf16, #tpu.memory_space<vmem>>, vector<1x3x128x128xbf16>
    %7 = vector.shape_cast %6 : vector<1x3x128x128xbf16> to vector<3x128x128xbf16>
    %c0_6 = arith.constant 0 : index
    %c0_7 = arith.constant 0 : index
    %c0_8 = arith.constant 0 : index
    %c0_9 = arith.constant 0 : index
    %8 = vector.load %arg3[%c0_6, %c0_7, %c0_8, %c0_9] : memref<4x3x128x128xbf16, #tpu.memory_space<vmem>>, vector<1x3x128x128xbf16>
    %9 = vector.shape_cast %8 : vector<1x3x128x128xbf16> to vector<3x128x128xbf16>
    %c0_10 = arith.constant 0 : index
    %c0_11 = arith.constant 0 : index
    %c0_12 = arith.constant 0 : index
    %c0_13 = arith.constant 0 : index
    %10 = vector.load %arg4[%c0_10, %c0_11, %c0_12, %c0_13] : memref<4x3x128x128xbf16, #tpu.memory_space<vmem>>, vector<1x3x128x128xbf16>
    %11 = vector.shape_cast %10 : vector<1x3x128x128xbf16> to vector<3x128x128xbf16>
    %c0_14 = arith.constant 0 : index
    %c0_15 = arith.constant 0 : index
    %c0_16 = arith.constant 0 : index
    %c0_17 = arith.constant 0 : index
    %12 = vector.load %arg5[%c0_14, %c0_15, %c0_16, %c0_17] : memref<4x3x128x128xbf16, #tpu.memory_space<vmem>>, vector<1x3x128x128xbf16>
    %13 = vector.shape_cast %12 : vector<1x3x128x128xbf16> to vector<3x128x128xbf16>
    %c0_18 = arith.constant 0 : index
    %c0_19 = arith.constant 0 : index
    %c0_20 = arith.constant 0 : index
    %14 = vector.load %arg6[%c0_18, %c0_19, %c0_20] : memref<4x4x128xf32, #tpu.memory_space<vmem>>, vector<1x4x128xf32>
    %15 = vector.shape_cast %14 : vector<1x4x128xf32> to vector<4x128xf32>
    %16 = vector.extract_strided_slice %15 {offsets = [0, 0], sizes = [1, 128], strides = [1, 1]} : vector<4x128xf32> to vector<1x128xf32>
    %cst = arith.constant 0.000000e+00 : f32
    %17 = vector.broadcast %cst : f32 to vector<2x128xf32>
    %18 = vector.extract_strided_slice %5 {offsets = [0, 0], sizes = [2, 128], strides = [1, 1]} : vector<4x128xf32> to vector<2x128xf32>
    %19 = tpu.concatenate %17, %18 in 0 : vector<2x128xf32>, vector<2x128xf32> -> vector<4x128xf32>
    %20 = arith.truncf %19 : vector<4x128xf32> to vector<4x128xbf16>
    %21 = vector.extract_strided_slice %7 {offsets = [0, 0, 0], sizes = [1, 128, 128], strides = [1, 1, 1]} : vector<3x128x128xbf16> to vector<1x128x128xbf16>
    %22 = vector.shape_cast %21 : vector<1x128x128xbf16> to vector<128x128xbf16>
    %cst_21 = arith.constant dense<0.000000e+00> : vector<4x128xf32>
    %23 = tpu.matmul %20, %22, %cst_21 {dimension_numbers = #tpu.dot_dimension_numbers<[1], [0], [0], [1], [0, 0, 1, 1], [], []>} : vector<4x128xbf16>, vector<128x128xbf16>, vector<4x128xf32> -> vector<4x128xf32>
    %24 = arith.truncf %5 : vector<4x128xf32> to vector<4x128xbf16>
    %25 = vector.extract_strided_slice %7 {offsets = [1, 0, 0], sizes = [1, 128, 128], strides = [1, 1, 1]} : vector<3x128x128xbf16> to vector<1x128x128xbf16>
    %26 = vector.shape_cast %25 : vector<1x128x128xbf16> to vector<128x128xbf16>
    %cst_22 = arith.constant dense<0.000000e+00> : vector<4x128xf32>
    %27 = tpu.matmul %24, %26, %cst_22 {dimension_numbers = #tpu.dot_dimension_numbers<[1], [0], [0], [1], [0, 0, 1, 1], [], []>} : vector<4x128xbf16>, vector<128x128xbf16>, vector<4x128xf32> -> vector<4x128xf32>
    %28 = arith.addf %23, %27 : vector<4x128xf32>
    %cst_23 = arith.constant 0.000000e+00 : f32
    %29 = vector.broadcast %cst_23 : f32 to vector<2x128xf32>
    %30 = vector.extract_strided_slice %5 {offsets = [2, 0], sizes = [2, 128], strides = [1, 1]} : vector<4x128xf32> to vector<2x128xf32>
    %31 = tpu.concatenate %30, %29 in 0 : vector<2x128xf32>, vector<2x128xf32> -> vector<4x128xf32>
    %32 = arith.truncf %31 : vector<4x128xf32> to vector<4x128xbf16>
    %33 = vector.extract_strided_slice %7 {offsets = [2, 0, 0], sizes = [1, 128, 128], strides = [1, 1, 1]} : vector<3x128x128xbf16> to vector<1x128x128xbf16>
    %34 = vector.shape_cast %33 : vector<1x128x128xbf16> to vector<128x128xbf16>
    %cst_24 = arith.constant dense<0.000000e+00> : vector<4x128xf32>
    %35 = tpu.matmul %32, %34, %cst_24 {dimension_numbers = #tpu.dot_dimension_numbers<[1], [0], [0], [1], [0, 0, 1, 1], [], []>} : vector<4x128xbf16>, vector<128x128xbf16>, vector<4x128xf32> -> vector<4x128xf32>
    %36 = arith.addf %28, %35 : vector<4x128xf32>
    %37 = vector.broadcast %16 : vector<1x128xf32> to vector<4x128xf32>
    %38 = arith.addf %36, %37 : vector<4x128xf32>
    %cst_25 = arith.constant 0.000000e+00 : f32
    %39 = vector.broadcast %cst_25 : f32 to vector<4x128xf32>
    %40 = arith.maximumf %38, %39 : vector<4x128xf32>
    %c1_i32_26 = arith.constant 1 : i32
    %41 = vector.broadcast %c1_i32_26 : i32 to vector<4x1xi32>
    %42 = arith.cmpi sge, %2, %41 : vector<4x1xi32>
    %c1_i32_27 = arith.constant 1 : i32
    %43 = vector.broadcast %c1_i32_27 : i32 to vector<4x1xi32>
    %44 = arith.cmpi slt, %2, %43 : vector<4x1xi32>
    %45 = vector.extract_strided_slice %15 {offsets = [1, 0], sizes = [1, 128], strides = [1, 1]} : vector<4x128xf32> to vector<1x128xf32>
    %cst_28 = arith.constant 0.000000e+00 : f32
    %46 = vector.broadcast %cst_28 : f32 to vector<1x128xf32>
    %47 = vector.extract_strided_slice %40 {offsets = [0, 0], sizes = [3, 128], strides = [1, 1]} : vector<4x128xf32> to vector<3x128xf32>
    %48 = tpu.concatenate %46, %47 in 0 : vector<1x128xf32>, vector<3x128xf32> -> vector<4x128xf32>
    %cst_29 = arith.constant 0.000000e+00 : f32
    %49 = vector.shape_cast %42 : vector<4x1xi1> to vector<4x1xi1>
    %50 = vector.broadcast %49 : vector<4x1xi1> to vector<4x128xi1>
    %51 = vector.broadcast %cst_29 : f32 to vector<4x128xf32>
    %52 = arith.select %50, %48, %51 : vector<4x128xi1>, vector<4x128xf32>
    %53 = arith.truncf %52 : vector<4x128xf32> to vector<4x128xbf16>
    %54 = vector.extract_strided_slice %9 {offsets = [0, 0, 0], sizes = [1, 128, 128], strides = [1, 1, 1]} : vector<3x128x128xbf16> to vector<1x128x128xbf16>
    %55 = vector.shape_cast %54 : vector<1x128x128xbf16> to vector<128x128xbf16>
    %cst_30 = arith.constant dense<0.000000e+00> : vector<4x128xf32>
    %56 = tpu.matmul %53, %55, %cst_30 {dimension_numbers = #tpu.dot_dimension_numbers<[1], [0], [0], [1], [0, 0, 1, 1], [], []>} : vector<4x128xbf16>, vector<128x128xbf16>, vector<4x128xf32> -> vector<4x128xf32>
    %57 = arith.truncf %40 : vector<4x128xf32> to vector<4x128xbf16>
    %58 = vector.extract_strided_slice %9 {offsets = [1, 0, 0], sizes = [1, 128, 128], strides = [1, 1, 1]} : vector<3x128x128xbf16> to vector<1x128x128xbf16>
    %59 = vector.shape_cast %58 : vector<1x128x128xbf16> to vector<128x128xbf16>
    %cst_31 = arith.constant dense<0.000000e+00> : vector<4x128xf32>
    %60 = tpu.matmul %57, %59, %cst_31 {dimension_numbers = #tpu.dot_dimension_numbers<[1], [0], [0], [1], [0, 0, 1, 1], [], []>} : vector<4x128xbf16>, vector<128x128xbf16>, vector<4x128xf32> -> vector<4x128xf32>
    %61 = arith.addf %56, %60 : vector<4x128xf32>
    %cst_32 = arith.constant 0.000000e+00 : f32
    %62 = vector.broadcast %cst_32 : f32 to vector<1x128xf32>
    %63 = vector.extract_strided_slice %40 {offsets = [1, 0], sizes = [3, 128], strides = [1, 1]} : vector<4x128xf32> to vector<3x128xf32>
    %64 = tpu.concatenate %63, %62 in 0 : vector<3x128xf32>, vector<1x128xf32> -> vector<4x128xf32>
    %cst_33 = arith.constant 0.000000e+00 : f32
    %65 = vector.shape_cast %44 : vector<4x1xi1> to vector<4x1xi1>
    %66 = vector.broadcast %65 : vector<4x1xi1> to vector<4x128xi1>
    %67 = vector.broadcast %cst_33 : f32 to vector<4x128xf32>
    %68 = arith.select %66, %64, %67 : vector<4x128xi1>, vector<4x128xf32>
    %69 = arith.truncf %68 : vector<4x128xf32> to vector<4x128xbf16>
    %70 = vector.extract_strided_slice %9 {offsets = [2, 0, 0], sizes = [1, 128, 128], strides = [1, 1, 1]} : vector<3x128x128xbf16> to vector<1x128x128xbf16>
    %71 = vector.shape_cast %70 : vector<1x128x128xbf16> to vector<128x128xbf16>
    %cst_34 = arith.constant dense<0.000000e+00> : vector<4x128xf32>
    %72 = tpu.matmul %69, %71, %cst_34 {dimension_numbers = #tpu.dot_dimension_numbers<[1], [0], [0], [1], [0, 0, 1, 1], [], []>} : vector<4x128xbf16>, vector<128x128xbf16>, vector<4x128xf32> -> vector<4x128xf32>
    %73 = arith.addf %61, %72 : vector<4x128xf32>
    %74 = vector.broadcast %45 : vector<1x128xf32> to vector<4x128xf32>
    %75 = arith.addf %73, %74 : vector<4x128xf32>
    %cst_35 = arith.constant 0.000000e+00 : f32
    %76 = vector.broadcast %cst_35 : f32 to vector<4x128xf32>
    %77 = arith.maximumf %75, %76 : vector<4x128xf32>
    %78 = vector.extract_strided_slice %15 {offsets = [2, 0], sizes = [1, 128], strides = [1, 1]} : vector<4x128xf32> to vector<1x128xf32>
    %79 = arith.truncf %77 : vector<4x128xf32> to vector<4x128xbf16>
    %80 = vector.extract_strided_slice %11 {offsets = [1, 0, 0], sizes = [1, 128, 128], strides = [1, 1, 1]} : vector<3x128x128xbf16> to vector<1x128x128xbf16>
    %81 = vector.shape_cast %80 : vector<1x128x128xbf16> to vector<128x128xbf16>
    %cst_36 = arith.constant dense<0.000000e+00> : vector<4x128xf32>
    %82 = tpu.matmul %79, %81, %cst_36 {dimension_numbers = #tpu.dot_dimension_numbers<[1], [0], [0], [1], [0, 0, 1, 1], [], []>} : vector<4x128xbf16>, vector<128x128xbf16>, vector<4x128xf32> -> vector<4x128xf32>
    %83 = vector.broadcast %78 : vector<1x128xf32> to vector<4x128xf32>
    %84 = arith.addf %82, %83 : vector<4x128xf32>
    %cst_37 = arith.constant 0.000000e+00 : f32
    %85 = vector.broadcast %cst_37 : f32 to vector<4x128xf32>
    %86 = arith.maximumf %84, %85 : vector<4x128xf32>
    %87 = vector.extract_strided_slice %15 {offsets = [3, 0], sizes = [1, 128], strides = [1, 1]} : vector<4x128xf32> to vector<1x128xf32>
    %88 = arith.truncf %86 : vector<4x128xf32> to vector<4x128xbf16>
    %89 = vector.extract_strided_slice %13 {offsets = [1, 0, 0], sizes = [1, 128, 128], strides = [1, 1, 1]} : vector<3x128x128xbf16> to vector<1x128x128xbf16>
    %90 = vector.shape_cast %89 : vector<1x128x128xbf16> to vector<128x128xbf16>
    %cst_38 = arith.constant dense<0.000000e+00> : vector<4x128xf32>
    %91 = tpu.matmul %88, %90, %cst_38 {dimension_numbers = #tpu.dot_dimension_numbers<[1], [0], [0], [1], [0, 0, 1, 1], [], []>} : vector<4x128xbf16>, vector<128x128xbf16>, vector<4x128xf32> -> vector<4x128xf32>
    %92 = vector.broadcast %87 : vector<1x128xf32> to vector<4x128xf32>
    %93 = arith.addf %91, %92 : vector<4x128xf32>
    %94 = arith.addf %93, %5 : vector<4x128xf32>
    %cst_39 = arith.constant 0.000000e+00 : f32
    %95 = vector.broadcast %cst_39 : f32 to vector<4x128xf32>
    %96 = arith.maximumf %94, %95 : vector<4x128xf32>
    %c1 = arith.constant 1 : index
    %c0_40 = arith.constant 0 : index
    %c0_41 = arith.constant 0 : index
    %c0_42 = arith.constant 0 : index
    %97 = vector.load %arg2[%c1, %c0_40, %c0_41, %c0_42] : memref<4x3x128x128xbf16, #tpu.memory_space<vmem>>, vector<1x3x128x128xbf16>
    %98 = vector.shape_cast %97 : vector<1x3x128x128xbf16> to vector<3x128x128xbf16>
    %c1_43 = arith.constant 1 : index
    %c0_44 = arith.constant 0 : index
    %c0_45 = arith.constant 0 : index
    %c0_46 = arith.constant 0 : index
    %99 = vector.load %arg3[%c1_43, %c0_44, %c0_45, %c0_46] : memref<4x3x128x128xbf16, #tpu.memory_space<vmem>>, vector<1x3x128x128xbf16>
    %100 = vector.shape_cast %99 : vector<1x3x128x128xbf16> to vector<3x128x128xbf16>
    %c1_47 = arith.constant 1 : index
    %c0_48 = arith.constant 0 : index
    %c0_49 = arith.constant 0 : index
    %c0_50 = arith.constant 0 : index
    %101 = vector.load %arg4[%c1_47, %c0_48, %c0_49, %c0_50] : memref<4x3x128x128xbf16, #tpu.memory_space<vmem>>, vector<1x3x128x128xbf16>
    %102 = vector.shape_cast %101 : vector<1x3x128x128xbf16> to vector<3x128x128xbf16>
    %c1_51 = arith.constant 1 : index
    %c0_52 = arith.constant 0 : index
    %c0_53 = arith.constant 0 : index
    %c0_54 = arith.constant 0 : index
    %103 = vector.load %arg5[%c1_51, %c0_52, %c0_53, %c0_54] : memref<4x3x128x128xbf16, #tpu.memory_space<vmem>>, vector<1x3x128x128xbf16>
    %104 = vector.shape_cast %103 : vector<1x3x128x128xbf16> to vector<3x128x128xbf16>
    %c1_55 = arith.constant 1 : index
    %c0_56 = arith.constant 0 : index
    %c0_57 = arith.constant 0 : index
    %105 = vector.load %arg6[%c1_55, %c0_56, %c0_57] : memref<4x4x128xf32, #tpu.memory_space<vmem>>, vector<1x4x128xf32>
    %106 = vector.shape_cast %105 : vector<1x4x128xf32> to vector<4x128xf32>
    %107 = vector.extract_strided_slice %106 {offsets = [0, 0], sizes = [1, 128], strides = [1, 1]} : vector<4x128xf32> to vector<1x128xf32>
    %cst_58 = arith.constant 0.000000e+00 : f32
    %108 = vector.broadcast %cst_58 : f32 to vector<2x128xf32>
    %109 = vector.extract_strided_slice %96 {offsets = [0, 0], sizes = [2, 128], strides = [1, 1]} : vector<4x128xf32> to vector<2x128xf32>
    %110 = tpu.concatenate %108, %109 in 0 : vector<2x128xf32>, vector<2x128xf32> -> vector<4x128xf32>
    %111 = arith.truncf %110 : vector<4x128xf32> to vector<4x128xbf16>
    %112 = vector.extract_strided_slice %98 {offsets = [0, 0, 0], sizes = [1, 128, 128], strides = [1, 1, 1]} : vector<3x128x128xbf16> to vector<1x128x128xbf16>
    %113 = vector.shape_cast %112 : vector<1x128x128xbf16> to vector<128x128xbf16>
    %cst_59 = arith.constant dense<0.000000e+00> : vector<4x128xf32>
    %114 = tpu.matmul %111, %113, %cst_59 {dimension_numbers = #tpu.dot_dimension_numbers<[1], [0], [0], [1], [0, 0, 1, 1], [], []>} : vector<4x128xbf16>, vector<128x128xbf16>, vector<4x128xf32> -> vector<4x128xf32>
    %115 = arith.truncf %96 : vector<4x128xf32> to vector<4x128xbf16>
    %116 = vector.extract_strided_slice %98 {offsets = [1, 0, 0], sizes = [1, 128, 128], strides = [1, 1, 1]} : vector<3x128x128xbf16> to vector<1x128x128xbf16>
    %117 = vector.shape_cast %116 : vector<1x128x128xbf16> to vector<128x128xbf16>
    %cst_60 = arith.constant dense<0.000000e+00> : vector<4x128xf32>
    %118 = tpu.matmul %115, %117, %cst_60 {dimension_numbers = #tpu.dot_dimension_numbers<[1], [0], [0], [1], [0, 0, 1, 1], [], []>} : vector<4x128xbf16>, vector<128x128xbf16>, vector<4x128xf32> -> vector<4x128xf32>
    %119 = arith.addf %114, %118 : vector<4x128xf32>
    %cst_61 = arith.constant 0.000000e+00 : f32
    %120 = vector.broadcast %cst_61 : f32 to vector<2x128xf32>
    %121 = vector.extract_strided_slice %96 {offsets = [2, 0], sizes = [2, 128], strides = [1, 1]} : vector<4x128xf32> to vector<2x128xf32>
    %122 = tpu.concatenate %121, %120 in 0 : vector<2x128xf32>, vector<2x128xf32> -> vector<4x128xf32>
    %123 = arith.truncf %122 : vector<4x128xf32> to vector<4x128xbf16>
    %124 = vector.extract_strided_slice %98 {offsets = [2, 0, 0], sizes = [1, 128, 128], strides = [1, 1, 1]} : vector<3x128x128xbf16> to vector<1x128x128xbf16>
    %125 = vector.shape_cast %124 : vector<1x128x128xbf16> to vector<128x128xbf16>
    %cst_62 = arith.constant dense<0.000000e+00> : vector<4x128xf32>
    %126 = tpu.matmul %123, %125, %cst_62 {dimension_numbers = #tpu.dot_dimension_numbers<[1], [0], [0], [1], [0, 0, 1, 1], [], []>} : vector<4x128xbf16>, vector<128x128xbf16>, vector<4x128xf32> -> vector<4x128xf32>
    %127 = arith.addf %119, %126 : vector<4x128xf32>
    %128 = vector.broadcast %107 : vector<1x128xf32> to vector<4x128xf32>
    %129 = arith.addf %127, %128 : vector<4x128xf32>
    %cst_63 = arith.constant 0.000000e+00 : f32
    %130 = vector.broadcast %cst_63 : f32 to vector<4x128xf32>
    %131 = arith.maximumf %129, %130 : vector<4x128xf32>
    %c1_i32_64 = arith.constant 1 : i32
    %132 = vector.broadcast %c1_i32_64 : i32 to vector<4x1xi32>
    %133 = arith.cmpi sge, %2, %132 : vector<4x1xi32>
    %c1_i32_65 = arith.constant 1 : i32
    %134 = vector.broadcast %c1_i32_65 : i32 to vector<4x1xi32>
    %135 = arith.cmpi slt, %2, %134 : vector<4x1xi32>
    %136 = vector.extract_strided_slice %106 {offsets = [1, 0], sizes = [1, 128], strides = [1, 1]} : vector<4x128xf32> to vector<1x128xf32>
    %cst_66 = arith.constant 0.000000e+00 : f32
    %137 = vector.broadcast %cst_66 : f32 to vector<1x128xf32>
    %138 = vector.extract_strided_slice %131 {offsets = [0, 0], sizes = [3, 128], strides = [1, 1]} : vector<4x128xf32> to vector<3x128xf32>
    %139 = tpu.concatenate %137, %138 in 0 : vector<1x128xf32>, vector<3x128xf32> -> vector<4x128xf32>
    %cst_67 = arith.constant 0.000000e+00 : f32
    %140 = vector.shape_cast %133 : vector<4x1xi1> to vector<4x1xi1>
    %141 = vector.broadcast %140 : vector<4x1xi1> to vector<4x128xi1>
    %142 = vector.broadcast %cst_67 : f32 to vector<4x128xf32>
    %143 = arith.select %141, %139, %142 : vector<4x128xi1>, vector<4x128xf32>
    %144 = arith.truncf %143 : vector<4x128xf32> to vector<4x128xbf16>
    %145 = vector.extract_strided_slice %100 {offsets = [0, 0, 0], sizes = [1, 128, 128], strides = [1, 1, 1]} : vector<3x128x128xbf16> to vector<1x128x128xbf16>
    %146 = vector.shape_cast %145 : vector<1x128x128xbf16> to vector<128x128xbf16>
    %cst_68 = arith.constant dense<0.000000e+00> : vector<4x128xf32>
    %147 = tpu.matmul %144, %146, %cst_68 {dimension_numbers = #tpu.dot_dimension_numbers<[1], [0], [0], [1], [0, 0, 1, 1], [], []>} : vector<4x128xbf16>, vector<128x128xbf16>, vector<4x128xf32> -> vector<4x128xf32>
    %148 = arith.truncf %131 : vector<4x128xf32> to vector<4x128xbf16>
    %149 = vector.extract_strided_slice %100 {offsets = [1, 0, 0], sizes = [1, 128, 128], strides = [1, 1, 1]} : vector<3x128x128xbf16> to vector<1x128x128xbf16>
    %150 = vector.shape_cast %149 : vector<1x128x128xbf16> to vector<128x128xbf16>
    %cst_69 = arith.constant dense<0.000000e+00> : vector<4x128xf32>
    %151 = tpu.matmul %148, %150, %cst_69 {dimension_numbers = #tpu.dot_dimension_numbers<[1], [0], [0], [1], [0, 0, 1, 1], [], []>} : vector<4x128xbf16>, vector<128x128xbf16>, vector<4x128xf32> -> vector<4x128xf32>
    %152 = arith.addf %147, %151 : vector<4x128xf32>
    %cst_70 = arith.constant 0.000000e+00 : f32
    %153 = vector.broadcast %cst_70 : f32 to vector<1x128xf32>
    %154 = vector.extract_strided_slice %131 {offsets = [1, 0], sizes = [3, 128], strides = [1, 1]} : vector<4x128xf32> to vector<3x128xf32>
    %155 = tpu.concatenate %154, %153 in 0 : vector<3x128xf32>, vector<1x128xf32> -> vector<4x128xf32>
    %cst_71 = arith.constant 0.000000e+00 : f32
    %156 = vector.shape_cast %135 : vector<4x1xi1> to vector<4x1xi1>
    %157 = vector.broadcast %156 : vector<4x1xi1> to vector<4x128xi1>
    %158 = vector.broadcast %cst_71 : f32 to vector<4x128xf32>
    %159 = arith.select %157, %155, %158 : vector<4x128xi1>, vector<4x128xf32>
    %160 = arith.truncf %159 : vector<4x128xf32> to vector<4x128xbf16>
    %161 = vector.extract_strided_slice %100 {offsets = [2, 0, 0], sizes = [1, 128, 128], strides = [1, 1, 1]} : vector<3x128x128xbf16> to vector<1x128x128xbf16>
    %162 = vector.shape_cast %161 : vector<1x128x128xbf16> to vector<128x128xbf16>
    %cst_72 = arith.constant dense<0.000000e+00> : vector<4x128xf32>
    %163 = tpu.matmul %160, %162, %cst_72 {dimension_numbers = #tpu.dot_dimension_numbers<[1], [0], [0], [1], [0, 0, 1, 1], [], []>} : vector<4x128xbf16>, vector<128x128xbf16>, vector<4x128xf32> -> vector<4x128xf32>
    %164 = arith.addf %152, %163 : vector<4x128xf32>
    %165 = vector.broadcast %136 : vector<1x128xf32> to vector<4x128xf32>
    %166 = arith.addf %164, %165 : vector<4x128xf32>
    %cst_73 = arith.constant 0.000000e+00 : f32
    %167 = vector.broadcast %cst_73 : f32 to vector<4x128xf32>
    %168 = arith.maximumf %166, %167 : vector<4x128xf32>
    %169 = vector.extract_strided_slice %106 {offsets = [2, 0], sizes = [1, 128], strides = [1, 1]} : vector<4x128xf32> to vector<1x128xf32>
    %170 = arith.truncf %168 : vector<4x128xf32> to vector<4x128xbf16>
    %171 = vector.extract_strided_slice %102 {offsets = [1, 0, 0], sizes = [1, 128, 128], strides = [1, 1, 1]} : vector<3x128x128xbf16> to vector<1x128x128xbf16>
    %172 = vector.shape_cast %171 : vector<1x128x128xbf16> to vector<128x128xbf16>
    %cst_74 = arith.constant dense<0.000000e+00> : vector<4x128xf32>
    %173 = tpu.matmul %170, %172, %cst_74 {dimension_numbers = #tpu.dot_dimension_numbers<[1], [0], [0], [1], [0, 0, 1, 1], [], []>} : vector<4x128xbf16>, vector<128x128xbf16>, vector<4x128xf32> -> vector<4x128xf32>
    %174 = vector.broadcast %169 : vector<1x128xf32> to vector<4x128xf32>
    %175 = arith.addf %173, %174 : vector<4x128xf32>
    %cst_75 = arith.constant 0.000000e+00 : f32
    %176 = vector.broadcast %cst_75 : f32 to vector<4x128xf32>
    %177 = arith.maximumf %175, %176 : vector<4x128xf32>
    %178 = vector.extract_strided_slice %106 {offsets = [3, 0], sizes = [1, 128], strides = [1, 1]} : vector<4x128xf32> to vector<1x128xf32>
    %179 = arith.truncf %177 : vector<4x128xf32> to vector<4x128xbf16>
    %180 = vector.extract_strided_slice %104 {offsets = [1, 0, 0], sizes = [1, 128, 128], strides = [1, 1, 1]} : vector<3x128x128xbf16> to vector<1x128x128xbf16>
    %181 = vector.shape_cast %180 : vector<1x128x128xbf16> to vector<128x128xbf16>
    %cst_76 = arith.constant dense<0.000000e+00> : vector<4x128xf32>
    %182 = tpu.matmul %179, %181, %cst_76 {dimension_numbers = #tpu.dot_dimension_numbers<[1], [0], [0], [1], [0, 0, 1, 1], [], []>} : vector<4x128xbf16>, vector<128x128xbf16>, vector<4x128xf32> -> vector<4x128xf32>
    %183 = vector.broadcast %178 : vector<1x128xf32> to vector<4x128xf32>
    %184 = arith.addf %182, %183 : vector<4x128xf32>
    %185 = arith.addf %184, %96 : vector<4x128xf32>
    %cst_77 = arith.constant 0.000000e+00 : f32
    %186 = vector.broadcast %cst_77 : f32 to vector<4x128xf32>
    %187 = arith.maximumf %185, %186 : vector<4x128xf32>
    %c2 = arith.constant 2 : index
    %c0_78 = arith.constant 0 : index
    %c0_79 = arith.constant 0 : index
    %c0_80 = arith.constant 0 : index
    %188 = vector.load %arg2[%c2, %c0_78, %c0_79, %c0_80] : memref<4x3x128x128xbf16, #tpu.memory_space<vmem>>, vector<1x3x128x128xbf16>
    %189 = vector.shape_cast %188 : vector<1x3x128x128xbf16> to vector<3x128x128xbf16>
    %c2_81 = arith.constant 2 : index
    %c0_82 = arith.constant 0 : index
    %c0_83 = arith.constant 0 : index
    %c0_84 = arith.constant 0 : index
    %190 = vector.load %arg3[%c2_81, %c0_82, %c0_83, %c0_84] : memref<4x3x128x128xbf16, #tpu.memory_space<vmem>>, vector<1x3x128x128xbf16>
    %191 = vector.shape_cast %190 : vector<1x3x128x128xbf16> to vector<3x128x128xbf16>
    %c2_85 = arith.constant 2 : index
    %c0_86 = arith.constant 0 : index
    %c0_87 = arith.constant 0 : index
    %c0_88 = arith.constant 0 : index
    %192 = vector.load %arg4[%c2_85, %c0_86, %c0_87, %c0_88] : memref<4x3x128x128xbf16, #tpu.memory_space<vmem>>, vector<1x3x128x128xbf16>
    %193 = vector.shape_cast %192 : vector<1x3x128x128xbf16> to vector<3x128x128xbf16>
    %c2_89 = arith.constant 2 : index
    %c0_90 = arith.constant 0 : index
    %c0_91 = arith.constant 0 : index
    %c0_92 = arith.constant 0 : index
    %194 = vector.load %arg5[%c2_89, %c0_90, %c0_91, %c0_92] : memref<4x3x128x128xbf16, #tpu.memory_space<vmem>>, vector<1x3x128x128xbf16>
    %195 = vector.shape_cast %194 : vector<1x3x128x128xbf16> to vector<3x128x128xbf16>
    %c2_93 = arith.constant 2 : index
    %c0_94 = arith.constant 0 : index
    %c0_95 = arith.constant 0 : index
    %196 = vector.load %arg6[%c2_93, %c0_94, %c0_95] : memref<4x4x128xf32, #tpu.memory_space<vmem>>, vector<1x4x128xf32>
    %197 = vector.shape_cast %196 : vector<1x4x128xf32> to vector<4x128xf32>
    %198 = vector.extract_strided_slice %197 {offsets = [0, 0], sizes = [1, 128], strides = [1, 1]} : vector<4x128xf32> to vector<1x128xf32>
    %cst_96 = arith.constant 0.000000e+00 : f32
    %199 = vector.broadcast %cst_96 : f32 to vector<2x128xf32>
    %200 = vector.extract_strided_slice %187 {offsets = [0, 0], sizes = [2, 128], strides = [1, 1]} : vector<4x128xf32> to vector<2x128xf32>
    %201 = tpu.concatenate %199, %200 in 0 : vector<2x128xf32>, vector<2x128xf32> -> vector<4x128xf32>
    %202 = arith.truncf %201 : vector<4x128xf32> to vector<4x128xbf16>
    %203 = vector.extract_strided_slice %189 {offsets = [0, 0, 0], sizes = [1, 128, 128], strides = [1, 1, 1]} : vector<3x128x128xbf16> to vector<1x128x128xbf16>
    %204 = vector.shape_cast %203 : vector<1x128x128xbf16> to vector<128x128xbf16>
    %cst_97 = arith.constant dense<0.000000e+00> : vector<4x128xf32>
    %205 = tpu.matmul %202, %204, %cst_97 {dimension_numbers = #tpu.dot_dimension_numbers<[1], [0], [0], [1], [0, 0, 1, 1], [], []>} : vector<4x128xbf16>, vector<128x128xbf16>, vector<4x128xf32> -> vector<4x128xf32>
    %206 = arith.truncf %187 : vector<4x128xf32> to vector<4x128xbf16>
    %207 = vector.extract_strided_slice %189 {offsets = [1, 0, 0], sizes = [1, 128, 128], strides = [1, 1, 1]} : vector<3x128x128xbf16> to vector<1x128x128xbf16>
    %208 = vector.shape_cast %207 : vector<1x128x128xbf16> to vector<128x128xbf16>
    %cst_98 = arith.constant dense<0.000000e+00> : vector<4x128xf32>
    %209 = tpu.matmul %206, %208, %cst_98 {dimension_numbers = #tpu.dot_dimension_numbers<[1], [0], [0], [1], [0, 0, 1, 1], [], []>} : vector<4x128xbf16>, vector<128x128xbf16>, vector<4x128xf32> -> vector<4x128xf32>
    %210 = arith.addf %205, %209 : vector<4x128xf32>
    %cst_99 = arith.constant 0.000000e+00 : f32
    %211 = vector.broadcast %cst_99 : f32 to vector<2x128xf32>
    %212 = vector.extract_strided_slice %187 {offsets = [2, 0], sizes = [2, 128], strides = [1, 1]} : vector<4x128xf32> to vector<2x128xf32>
    %213 = tpu.concatenate %212, %211 in 0 : vector<2x128xf32>, vector<2x128xf32> -> vector<4x128xf32>
    %214 = arith.truncf %213 : vector<4x128xf32> to vector<4x128xbf16>
    %215 = vector.extract_strided_slice %189 {offsets = [2, 0, 0], sizes = [1, 128, 128], strides = [1, 1, 1]} : vector<3x128x128xbf16> to vector<1x128x128xbf16>
    %216 = vector.shape_cast %215 : vector<1x128x128xbf16> to vector<128x128xbf16>
    %cst_100 = arith.constant dense<0.000000e+00> : vector<4x128xf32>
    %217 = tpu.matmul %214, %216, %cst_100 {dimension_numbers = #tpu.dot_dimension_numbers<[1], [0], [0], [1], [0, 0, 1, 1], [], []>} : vector<4x128xbf16>, vector<128x128xbf16>, vector<4x128xf32> -> vector<4x128xf32>
    %218 = arith.addf %210, %217 : vector<4x128xf32>
    %219 = vector.broadcast %198 : vector<1x128xf32> to vector<4x128xf32>
    %220 = arith.addf %218, %219 : vector<4x128xf32>
    %cst_101 = arith.constant 0.000000e+00 : f32
    %221 = vector.broadcast %cst_101 : f32 to vector<4x128xf32>
    %222 = arith.maximumf %220, %221 : vector<4x128xf32>
    %c1_i32_102 = arith.constant 1 : i32
    %223 = vector.broadcast %c1_i32_102 : i32 to vector<4x1xi32>
    %224 = arith.cmpi sge, %2, %223 : vector<4x1xi32>
    %c1_i32_103 = arith.constant 1 : i32
    %225 = vector.broadcast %c1_i32_103 : i32 to vector<4x1xi32>
    %226 = arith.cmpi slt, %2, %225 : vector<4x1xi32>
    %227 = vector.extract_strided_slice %197 {offsets = [1, 0], sizes = [1, 128], strides = [1, 1]} : vector<4x128xf32> to vector<1x128xf32>
    %cst_104 = arith.constant 0.000000e+00 : f32
    %228 = vector.broadcast %cst_104 : f32 to vector<1x128xf32>
    %229 = vector.extract_strided_slice %222 {offsets = [0, 0], sizes = [3, 128], strides = [1, 1]} : vector<4x128xf32> to vector<3x128xf32>
    %230 = tpu.concatenate %228, %229 in 0 : vector<1x128xf32>, vector<3x128xf32> -> vector<4x128xf32>
    %cst_105 = arith.constant 0.000000e+00 : f32
    %231 = vector.shape_cast %224 : vector<4x1xi1> to vector<4x1xi1>
    %232 = vector.broadcast %231 : vector<4x1xi1> to vector<4x128xi1>
    %233 = vector.broadcast %cst_105 : f32 to vector<4x128xf32>
    %234 = arith.select %232, %230, %233 : vector<4x128xi1>, vector<4x128xf32>
    %235 = arith.truncf %234 : vector<4x128xf32> to vector<4x128xbf16>
    %236 = vector.extract_strided_slice %191 {offsets = [0, 0, 0], sizes = [1, 128, 128], strides = [1, 1, 1]} : vector<3x128x128xbf16> to vector<1x128x128xbf16>
    %237 = vector.shape_cast %236 : vector<1x128x128xbf16> to vector<128x128xbf16>
    %cst_106 = arith.constant dense<0.000000e+00> : vector<4x128xf32>
    %238 = tpu.matmul %235, %237, %cst_106 {dimension_numbers = #tpu.dot_dimension_numbers<[1], [0], [0], [1], [0, 0, 1, 1], [], []>} : vector<4x128xbf16>, vector<128x128xbf16>, vector<4x128xf32> -> vector<4x128xf32>
    %239 = arith.truncf %222 : vector<4x128xf32> to vector<4x128xbf16>
    %240 = vector.extract_strided_slice %191 {offsets = [1, 0, 0], sizes = [1, 128, 128], strides = [1, 1, 1]} : vector<3x128x128xbf16> to vector<1x128x128xbf16>
    %241 = vector.shape_cast %240 : vector<1x128x128xbf16> to vector<128x128xbf16>
    %cst_107 = arith.constant dense<0.000000e+00> : vector<4x128xf32>
    %242 = tpu.matmul %239, %241, %cst_107 {dimension_numbers = #tpu.dot_dimension_numbers<[1], [0], [0], [1], [0, 0, 1, 1], [], []>} : vector<4x128xbf16>, vector<128x128xbf16>, vector<4x128xf32> -> vector<4x128xf32>
    %243 = arith.addf %238, %242 : vector<4x128xf32>
    %cst_108 = arith.constant 0.000000e+00 : f32
    %244 = vector.broadcast %cst_108 : f32 to vector<1x128xf32>
    %245 = vector.extract_strided_slice %222 {offsets = [1, 0], sizes = [3, 128], strides = [1, 1]} : vector<4x128xf32> to vector<3x128xf32>
    %246 = tpu.concatenate %245, %244 in 0 : vector<3x128xf32>, vector<1x128xf32> -> vector<4x128xf32>
    %cst_109 = arith.constant 0.000000e+00 : f32
    %247 = vector.shape_cast %226 : vector<4x1xi1> to vector<4x1xi1>
    %248 = vector.broadcast %247 : vector<4x1xi1> to vector<4x128xi1>
    %249 = vector.broadcast %cst_109 : f32 to vector<4x128xf32>
    %250 = arith.select %248, %246, %249 : vector<4x128xi1>, vector<4x128xf32>
    %251 = arith.truncf %250 : vector<4x128xf32> to vector<4x128xbf16>
    %252 = vector.extract_strided_slice %191 {offsets = [2, 0, 0], sizes = [1, 128, 128], strides = [1, 1, 1]} : vector<3x128x128xbf16> to vector<1x128x128xbf16>
    %253 = vector.shape_cast %252 : vector<1x128x128xbf16> to vector<128x128xbf16>
    %cst_110 = arith.constant dense<0.000000e+00> : vector<4x128xf32>
    %254 = tpu.matmul %251, %253, %cst_110 {dimension_numbers = #tpu.dot_dimension_numbers<[1], [0], [0], [1], [0, 0, 1, 1], [], []>} : vector<4x128xbf16>, vector<128x128xbf16>, vector<4x128xf32> -> vector<4x128xf32>
    %255 = arith.addf %243, %254 : vector<4x128xf32>
    %256 = vector.broadcast %227 : vector<1x128xf32> to vector<4x128xf32>
    %257 = arith.addf %255, %256 : vector<4x128xf32>
    %cst_111 = arith.constant 0.000000e+00 : f32
    %258 = vector.broadcast %cst_111 : f32 to vector<4x128xf32>
    %259 = arith.maximumf %257, %258 : vector<4x128xf32>
    %260 = vector.extract_strided_slice %197 {offsets = [2, 0], sizes = [1, 128], strides = [1, 1]} : vector<4x128xf32> to vector<1x128xf32>
    %261 = arith.truncf %259 : vector<4x128xf32> to vector<4x128xbf16>
    %262 = vector.extract_strided_slice %193 {offsets = [1, 0, 0], sizes = [1, 128, 128], strides = [1, 1, 1]} : vector<3x128x128xbf16> to vector<1x128x128xbf16>
    %263 = vector.shape_cast %262 : vector<1x128x128xbf16> to vector<128x128xbf16>
    %cst_112 = arith.constant dense<0.000000e+00> : vector<4x128xf32>
    %264 = tpu.matmul %261, %263, %cst_112 {dimension_numbers = #tpu.dot_dimension_numbers<[1], [0], [0], [1], [0, 0, 1, 1], [], []>} : vector<4x128xbf16>, vector<128x128xbf16>, vector<4x128xf32> -> vector<4x128xf32>
    %265 = vector.broadcast %260 : vector<1x128xf32> to vector<4x128xf32>
    %266 = arith.addf %264, %265 : vector<4x128xf32>
    %cst_113 = arith.constant 0.000000e+00 : f32
    %267 = vector.broadcast %cst_113 : f32 to vector<4x128xf32>
    %268 = arith.maximumf %266, %267 : vector<4x128xf32>
    %269 = vector.extract_strided_slice %197 {offsets = [3, 0], sizes = [1, 128], strides = [1, 1]} : vector<4x128xf32> to vector<1x128xf32>
    %270 = arith.truncf %268 : vector<4x128xf32> to vector<4x128xbf16>
    %271 = vector.extract_strided_slice %195 {offsets = [1, 0, 0], sizes = [1, 128, 128], strides = [1, 1, 1]} : vector<3x128x128xbf16> to vector<1x128x128xbf16>
    %272 = vector.shape_cast %271 : vector<1x128x128xbf16> to vector<128x128xbf16>
    %cst_114 = arith.constant dense<0.000000e+00> : vector<4x128xf32>
    %273 = tpu.matmul %270, %272, %cst_114 {dimension_numbers = #tpu.dot_dimension_numbers<[1], [0], [0], [1], [0, 0, 1, 1], [], []>} : vector<4x128xbf16>, vector<128x128xbf16>, vector<4x128xf32> -> vector<4x128xf32>
    %274 = vector.broadcast %269 : vector<1x128xf32> to vector<4x128xf32>
    %275 = arith.addf %273, %274 : vector<4x128xf32>
    %276 = arith.addf %275, %187 : vector<4x128xf32>
    %cst_115 = arith.constant 0.000000e+00 : f32
    %277 = vector.broadcast %cst_115 : f32 to vector<4x128xf32>
    %278 = arith.maximumf %276, %277 : vector<4x128xf32>
    %c3 = arith.constant 3 : index
    %c0_116 = arith.constant 0 : index
    %c0_117 = arith.constant 0 : index
    %c0_118 = arith.constant 0 : index
    %279 = vector.load %arg2[%c3, %c0_116, %c0_117, %c0_118] : memref<4x3x128x128xbf16, #tpu.memory_space<vmem>>, vector<1x3x128x128xbf16>
    %280 = vector.shape_cast %279 : vector<1x3x128x128xbf16> to vector<3x128x128xbf16>
    %c3_119 = arith.constant 3 : index
    %c0_120 = arith.constant 0 : index
    %c0_121 = arith.constant 0 : index
    %c0_122 = arith.constant 0 : index
    %281 = vector.load %arg3[%c3_119, %c0_120, %c0_121, %c0_122] : memref<4x3x128x128xbf16, #tpu.memory_space<vmem>>, vector<1x3x128x128xbf16>
    %282 = vector.shape_cast %281 : vector<1x3x128x128xbf16> to vector<3x128x128xbf16>
    %c3_123 = arith.constant 3 : index
    %c0_124 = arith.constant 0 : index
    %c0_125 = arith.constant 0 : index
    %c0_126 = arith.constant 0 : index
    %283 = vector.load %arg4[%c3_123, %c0_124, %c0_125, %c0_126] : memref<4x3x128x128xbf16, #tpu.memory_space<vmem>>, vector<1x3x128x128xbf16>
    %284 = vector.shape_cast %283 : vector<1x3x128x128xbf16> to vector<3x128x128xbf16>
    %c3_127 = arith.constant 3 : index
    %c0_128 = arith.constant 0 : index
    %c0_129 = arith.constant 0 : index
    %c0_130 = arith.constant 0 : index
    %285 = vector.load %arg5[%c3_127, %c0_128, %c0_129, %c0_130] : memref<4x3x128x128xbf16, #tpu.memory_space<vmem>>, vector<1x3x128x128xbf16>
    %286 = vector.shape_cast %285 : vector<1x3x128x128xbf16> to vector<3x128x128xbf16>
    %c3_131 = arith.constant 3 : index
    %c0_132 = arith.constant 0 : index
    %c0_133 = arith.constant 0 : index
    %287 = vector.load %arg6[%c3_131, %c0_132, %c0_133] : memref<4x4x128xf32, #tpu.memory_space<vmem>>, vector<1x4x128xf32>
    %288 = vector.shape_cast %287 : vector<1x4x128xf32> to vector<4x128xf32>
    %289 = vector.extract_strided_slice %288 {offsets = [0, 0], sizes = [1, 128], strides = [1, 1]} : vector<4x128xf32> to vector<1x128xf32>
    %cst_134 = arith.constant 0.000000e+00 : f32
    %290 = vector.broadcast %cst_134 : f32 to vector<2x128xf32>
    %291 = vector.extract_strided_slice %278 {offsets = [0, 0], sizes = [2, 128], strides = [1, 1]} : vector<4x128xf32> to vector<2x128xf32>
    %292 = tpu.concatenate %290, %291 in 0 : vector<2x128xf32>, vector<2x128xf32> -> vector<4x128xf32>
    %293 = arith.truncf %292 : vector<4x128xf32> to vector<4x128xbf16>
    %294 = vector.extract_strided_slice %280 {offsets = [0, 0, 0], sizes = [1, 128, 128], strides = [1, 1, 1]} : vector<3x128x128xbf16> to vector<1x128x128xbf16>
    %295 = vector.shape_cast %294 : vector<1x128x128xbf16> to vector<128x128xbf16>
    %cst_135 = arith.constant dense<0.000000e+00> : vector<4x128xf32>
    %296 = tpu.matmul %293, %295, %cst_135 {dimension_numbers = #tpu.dot_dimension_numbers<[1], [0], [0], [1], [0, 0, 1, 1], [], []>} : vector<4x128xbf16>, vector<128x128xbf16>, vector<4x128xf32> -> vector<4x128xf32>
    %297 = arith.truncf %278 : vector<4x128xf32> to vector<4x128xbf16>
    %298 = vector.extract_strided_slice %280 {offsets = [1, 0, 0], sizes = [1, 128, 128], strides = [1, 1, 1]} : vector<3x128x128xbf16> to vector<1x128x128xbf16>
    %299 = vector.shape_cast %298 : vector<1x128x128xbf16> to vector<128x128xbf16>
    %cst_136 = arith.constant dense<0.000000e+00> : vector<4x128xf32>
    %300 = tpu.matmul %297, %299, %cst_136 {dimension_numbers = #tpu.dot_dimension_numbers<[1], [0], [0], [1], [0, 0, 1, 1], [], []>} : vector<4x128xbf16>, vector<128x128xbf16>, vector<4x128xf32> -> vector<4x128xf32>
    %301 = arith.addf %296, %300 : vector<4x128xf32>
    %cst_137 = arith.constant 0.000000e+00 : f32
    %302 = vector.broadcast %cst_137 : f32 to vector<2x128xf32>
    %303 = vector.extract_strided_slice %278 {offsets = [2, 0], sizes = [2, 128], strides = [1, 1]} : vector<4x128xf32> to vector<2x128xf32>
    %304 = tpu.concatenate %303, %302 in 0 : vector<2x128xf32>, vector<2x128xf32> -> vector<4x128xf32>
    %305 = arith.truncf %304 : vector<4x128xf32> to vector<4x128xbf16>
    %306 = vector.extract_strided_slice %280 {offsets = [2, 0, 0], sizes = [1, 128, 128], strides = [1, 1, 1]} : vector<3x128x128xbf16> to vector<1x128x128xbf16>
    %307 = vector.shape_cast %306 : vector<1x128x128xbf16> to vector<128x128xbf16>
    %cst_138 = arith.constant dense<0.000000e+00> : vector<4x128xf32>
    %308 = tpu.matmul %305, %307, %cst_138 {dimension_numbers = #tpu.dot_dimension_numbers<[1], [0], [0], [1], [0, 0, 1, 1], [], []>} : vector<4x128xbf16>, vector<128x128xbf16>, vector<4x128xf32> -> vector<4x128xf32>
    %309 = arith.addf %301, %308 : vector<4x128xf32>
    %310 = vector.broadcast %289 : vector<1x128xf32> to vector<4x128xf32>
    %311 = arith.addf %309, %310 : vector<4x128xf32>
    %cst_139 = arith.constant 0.000000e+00 : f32
    %312 = vector.broadcast %cst_139 : f32 to vector<4x128xf32>
    %313 = arith.maximumf %311, %312 : vector<4x128xf32>
    %c1_i32_140 = arith.constant 1 : i32
    %314 = vector.broadcast %c1_i32_140 : i32 to vector<4x1xi32>
    %315 = arith.cmpi sge, %2, %314 : vector<4x1xi32>
    %c1_i32_141 = arith.constant 1 : i32
    %316 = vector.broadcast %c1_i32_141 : i32 to vector<4x1xi32>
    %317 = arith.cmpi slt, %2, %316 : vector<4x1xi32>
    %318 = vector.extract_strided_slice %288 {offsets = [1, 0], sizes = [1, 128], strides = [1, 1]} : vector<4x128xf32> to vector<1x128xf32>
    %cst_142 = arith.constant 0.000000e+00 : f32
    %319 = vector.broadcast %cst_142 : f32 to vector<1x128xf32>
    %320 = vector.extract_strided_slice %313 {offsets = [0, 0], sizes = [3, 128], strides = [1, 1]} : vector<4x128xf32> to vector<3x128xf32>
    %321 = tpu.concatenate %319, %320 in 0 : vector<1x128xf32>, vector<3x128xf32> -> vector<4x128xf32>
    %cst_143 = arith.constant 0.000000e+00 : f32
    %322 = vector.shape_cast %315 : vector<4x1xi1> to vector<4x1xi1>
    %323 = vector.broadcast %322 : vector<4x1xi1> to vector<4x128xi1>
    %324 = vector.broadcast %cst_143 : f32 to vector<4x128xf32>
    %325 = arith.select %323, %321, %324 : vector<4x128xi1>, vector<4x128xf32>
    %326 = arith.truncf %325 : vector<4x128xf32> to vector<4x128xbf16>
    %327 = vector.extract_strided_slice %282 {offsets = [0, 0, 0], sizes = [1, 128, 128], strides = [1, 1, 1]} : vector<3x128x128xbf16> to vector<1x128x128xbf16>
    %328 = vector.shape_cast %327 : vector<1x128x128xbf16> to vector<128x128xbf16>
    %cst_144 = arith.constant dense<0.000000e+00> : vector<4x128xf32>
    %329 = tpu.matmul %326, %328, %cst_144 {dimension_numbers = #tpu.dot_dimension_numbers<[1], [0], [0], [1], [0, 0, 1, 1], [], []>} : vector<4x128xbf16>, vector<128x128xbf16>, vector<4x128xf32> -> vector<4x128xf32>
    %330 = arith.truncf %313 : vector<4x128xf32> to vector<4x128xbf16>
    %331 = vector.extract_strided_slice %282 {offsets = [1, 0, 0], sizes = [1, 128, 128], strides = [1, 1, 1]} : vector<3x128x128xbf16> to vector<1x128x128xbf16>
    %332 = vector.shape_cast %331 : vector<1x128x128xbf16> to vector<128x128xbf16>
    %cst_145 = arith.constant dense<0.000000e+00> : vector<4x128xf32>
    %333 = tpu.matmul %330, %332, %cst_145 {dimension_numbers = #tpu.dot_dimension_numbers<[1], [0], [0], [1], [0, 0, 1, 1], [], []>} : vector<4x128xbf16>, vector<128x128xbf16>, vector<4x128xf32> -> vector<4x128xf32>
    %334 = arith.addf %329, %333 : vector<4x128xf32>
    %cst_146 = arith.constant 0.000000e+00 : f32
    %335 = vector.broadcast %cst_146 : f32 to vector<1x128xf32>
    %336 = vector.extract_strided_slice %313 {offsets = [1, 0], sizes = [3, 128], strides = [1, 1]} : vector<4x128xf32> to vector<3x128xf32>
    %337 = tpu.concatenate %336, %335 in 0 : vector<3x128xf32>, vector<1x128xf32> -> vector<4x128xf32>
    %cst_147 = arith.constant 0.000000e+00 : f32
    %338 = vector.shape_cast %317 : vector<4x1xi1> to vector<4x1xi1>
    %339 = vector.broadcast %338 : vector<4x1xi1> to vector<4x128xi1>
    %340 = vector.broadcast %cst_147 : f32 to vector<4x128xf32>
    %341 = arith.select %339, %337, %340 : vector<4x128xi1>, vector<4x128xf32>
    %342 = arith.truncf %341 : vector<4x128xf32> to vector<4x128xbf16>
    %343 = vector.extract_strided_slice %282 {offsets = [2, 0, 0], sizes = [1, 128, 128], strides = [1, 1, 1]} : vector<3x128x128xbf16> to vector<1x128x128xbf16>
    %344 = vector.shape_cast %343 : vector<1x128x128xbf16> to vector<128x128xbf16>
    %cst_148 = arith.constant dense<0.000000e+00> : vector<4x128xf32>
    %345 = tpu.matmul %342, %344, %cst_148 {dimension_numbers = #tpu.dot_dimension_numbers<[1], [0], [0], [1], [0, 0, 1, 1], [], []>} : vector<4x128xbf16>, vector<128x128xbf16>, vector<4x128xf32> -> vector<4x128xf32>
    %346 = arith.addf %334, %345 : vector<4x128xf32>
    %347 = vector.broadcast %318 : vector<1x128xf32> to vector<4x128xf32>
    %348 = arith.addf %346, %347 : vector<4x128xf32>
    %cst_149 = arith.constant 0.000000e+00 : f32
    %349 = vector.broadcast %cst_149 : f32 to vector<4x128xf32>
    %350 = arith.maximumf %348, %349 : vector<4x128xf32>
    %351 = vector.extract_strided_slice %288 {offsets = [2, 0], sizes = [1, 128], strides = [1, 1]} : vector<4x128xf32> to vector<1x128xf32>
    %352 = arith.truncf %350 : vector<4x128xf32> to vector<4x128xbf16>
    %353 = vector.extract_strided_slice %284 {offsets = [1, 0, 0], sizes = [1, 128, 128], strides = [1, 1, 1]} : vector<3x128x128xbf16> to vector<1x128x128xbf16>
    %354 = vector.shape_cast %353 : vector<1x128x128xbf16> to vector<128x128xbf16>
    %cst_150 = arith.constant dense<0.000000e+00> : vector<4x128xf32>
    %355 = tpu.matmul %352, %354, %cst_150 {dimension_numbers = #tpu.dot_dimension_numbers<[1], [0], [0], [1], [0, 0, 1, 1], [], []>} : vector<4x128xbf16>, vector<128x128xbf16>, vector<4x128xf32> -> vector<4x128xf32>
    %356 = vector.broadcast %351 : vector<1x128xf32> to vector<4x128xf32>
    %357 = arith.addf %355, %356 : vector<4x128xf32>
    %cst_151 = arith.constant 0.000000e+00 : f32
    %358 = vector.broadcast %cst_151 : f32 to vector<4x128xf32>
    %359 = arith.maximumf %357, %358 : vector<4x128xf32>
    %360 = vector.extract_strided_slice %288 {offsets = [3, 0], sizes = [1, 128], strides = [1, 1]} : vector<4x128xf32> to vector<1x128xf32>
    %361 = arith.truncf %359 : vector<4x128xf32> to vector<4x128xbf16>
    %362 = vector.extract_strided_slice %286 {offsets = [1, 0, 0], sizes = [1, 128, 128], strides = [1, 1, 1]} : vector<3x128x128xbf16> to vector<1x128x128xbf16>
    %363 = vector.shape_cast %362 : vector<1x128x128xbf16> to vector<128x128xbf16>
    %cst_152 = arith.constant dense<0.000000e+00> : vector<4x128xf32>
    %364 = tpu.matmul %361, %363, %cst_152 {dimension_numbers = #tpu.dot_dimension_numbers<[1], [0], [0], [1], [0, 0, 1, 1], [], []>} : vector<4x128xbf16>, vector<128x128xbf16>, vector<4x128xf32> -> vector<4x128xf32>
    %365 = vector.broadcast %360 : vector<1x128xf32> to vector<4x128xf32>
    %366 = arith.addf %364, %365 : vector<4x128xf32>
    %367 = arith.addf %366, %278 : vector<4x128xf32>
    %cst_153 = arith.constant 0.000000e+00 : f32
    %368 = vector.broadcast %cst_153 : f32 to vector<4x128xf32>
    %369 = arith.maximumf %367, %368 : vector<4x128xf32>
    %370 = arith.truncf %369 : vector<4x128xf32> to vector<4x128xbf16>
    %c0_154 = arith.constant 0 : index
    %c0_155 = arith.constant 0 : index
    %c0_156 = arith.constant 0 : index
    %371 = vector.load %arg7[%c0_154, %c0_155, %c0_156] : memref<1x4x128xbf16, #tpu.memory_space<vmem>>, vector<1x4x128xbf16>
    %372 = vector.shape_cast %371 : vector<1x4x128xbf16> to vector<4x128xbf16>
    %373 = vector.shape_cast %370 : vector<4x128xbf16> to vector<1x4x128xbf16>
    tpu.vector_store %arg7[%c0_154, %c0_155, %c0_156], %373 {strides = array<i32>} : memref<1x4x128xbf16, #tpu.memory_space<vmem>>, vector<1x4x128xbf16>,
    return
  }
  func.func @transform_0(%arg0: i32) -> (i32, i32, i32) {
    %c0_i32 = arith.constant 0 : i32
    %c0_i32_0 = arith.constant 0 : i32
    %c0_i32_1 = arith.constant 0 : i32
    return %arg0, %c0_i32, %c0_i32_0 : i32, i32, i32
  }
  func.func @transform_1(%arg0: i32) -> (i32, i32, i32, i32) {
    %c0_i32 = arith.constant 0 : i32
    %c0_i32_0 = arith.constant 0 : i32
    %c0_i32_1 = arith.constant 0 : i32
    %c0_i32_2 = arith.constant 0 : i32
    %c0_i32_3 = arith.constant 0 : i32
    return %c0_i32, %c0_i32_0, %c0_i32_1, %c0_i32_2 : i32, i32, i32, i32
  }
  func.func @transform_2(%arg0: i32) -> (i32, i32, i32, i32) {
    %c0_i32 = arith.constant 0 : i32
    %c0_i32_0 = arith.constant 0 : i32
    %c0_i32_1 = arith.constant 0 : i32
    %c0_i32_2 = arith.constant 0 : i32
    %c0_i32_3 = arith.constant 0 : i32
    return %c0_i32, %c0_i32_0, %c0_i32_1, %c0_i32_2 : i32, i32, i32, i32
  }
  func.func @transform_3(%arg0: i32) -> (i32, i32, i32, i32) {
    %c0_i32 = arith.constant 0 : i32
    %c0_i32_0 = arith.constant 0 : i32
    %c0_i32_1 = arith.constant 0 : i32
    %c0_i32_2 = arith.constant 0 : i32
    %c0_i32_3 = arith.constant 0 : i32
    return %c0_i32, %c0_i32_0, %c0_i32_1, %c0_i32_2 : i32, i32, i32, i32
  }
  func.func @transform_4(%arg0: i32) -> (i32, i32, i32, i32) {
    %c0_i32 = arith.constant 0 : i32
    %c0_i32_0 = arith.constant 0 : i32
    %c0_i32_1 = arith.constant 0 : i32
    %c0_i32_2 = arith.constant 0 : i32
    %c0_i32_3 = arith.constant 0 : i32
    return %c0_i32, %c0_i32_0, %c0_i32_1, %c0_i32_2 : i32, i32, i32, i32
  }
  func.func @transform_5(%arg0: i32) -> (i32, i32, i32) {
    %c0_i32 = arith.constant 0 : i32
    %c0_i32_0 = arith.constant 0 : i32
    %c0_i32_1 = arith.constant 0 : i32
    %c0_i32_2 = arith.constant 0 : i32
    return %c0_i32, %c0_i32_0, %c0_i32_1 : i32, i32, i32
  }
  func.func @transform_6(%arg0: i32) -> (i32, i32, i32) {
    %c0_i32 = arith.constant 0 : i32
    %c0_i32_0 = arith.constant 0 : i32
    %c0_i32_1 = arith.constant 0 : i32
    return %arg0, %c0_i32, %c0_i32_0 : i32, i32, i32
  }
}

</mosaic_0001>

<bundles_post_ra>
// kernel: encoder_forward.6
= control target key start
LH: loop header
LB: loop body
LE: loop exit
PB: predicated region body
PF: predicated region fallthrough
CT: control target
= control target key end

     0   :  { %s731_s15 = smov 0   ;;  %s880_s0 = inlined_call_operand.vmem [shape: bf16[2,4,16,16], index: 0, kind: input, shape index: {}]   ;;  %s881_s1 = inlined_call_operand.vmem [shape: bf16[144,48], index: 1, kind: input, shape index: {}]   ;;  %s882_s2 = inlined_call_operand.vmem [shape: f32[1,48], index: 2, kind: input, shape index: {}]   ;;  %s883_s3 = inlined_call_operand.vmem [shape: f32[2,16], index: 3, kind: input, shape index: {}]   ;;  %s884_s4 = inlined_call_operand.vmem [shape: bf16[2,16,64], index: 4, kind: output, shape index: {}]  }
   0x1 LB: > { %s555_s16 = sadd.s32 4294967295, %s697_s15   ;;  %p559_p0 = scmp.ge.s32.totalorder %s697_s15, 1  ;;  %s697_s15 = sphi %s731_s15, %s14_s15  }
   0x2   : > { %p162_p1 = scmp.lt.s32.totalorder %s697_s15, 3 }
   0x4   : > { %p163_p2 = pnand %p559_p0, %p162_p1 }
   0x5   : > { %p188_p3 = scmp.lt.s32.totalorder (!%p163_p2), %s555_s16, 1  ;;  %s699_s27 = smov (!%p163_p2), 16  }
   0x6   : > { %166 = sbr.rel (%p163_p2) target bundleno = 304 (0x130), region = 36  ;;  %s700_s28 = smov (!%p163_p2), 48  }
   0x7   : > { %s701_s29 = smov (!%p163_p2), 80   ;;  %s702_s30 = smov (!%p163_p2), 32  }
   0x8   : > { %s703_s5 = smov (!%p163_p2), 64   ;;  %s704_s6 = smov (!%p163_p2), 96  }
   0x9   : > { %s705_s7 = smov (!%p163_p2), 112  }
   0xb   : > { %v199_v0 = vlaneseq  ;;  %v612_v1 = vld [vmem:[%s881_s1 + $0x38] sm:$0xff]  ;;  %s890_s16 = smov (!%p188_p3, %s555_s16), 1  ;;  %v611_v3 = vld [vmem:[%s881_s1 + $0x30] sm:$0xff]  ;;  %v610_v5 = vld [vmem:[%s881_s1 + $0x28] sm:$0xff]  ;;  %vm339_vm6 = vcmask 130048   ;;  %vm342_vm9 = vcmask 261120  }
   0xc   : > { %441 = vmatpush.bf16.msra.mxu0 %v612_v1  ;;  %s603_s21 = sshll.u32 %s890_s16, 5  ;;  %v609_v55 = vld [vmem:[%s881_s1 + $0x20] sm:$0xff]  ;;  %v608_v56 = vld [vmem:[%s881_s1 + $0x18] sm:$0xff]  ;;  %v607_v57 = vld [vmem:[%s881_s1 + $0x10] sm:$0xff]  ;;  %vm345_vm10 = vcmask 392192   ;;  %vm348_vm11 = vcmask 523264  }
   0xd   : > { %v744_v2 = vshrl.u32 %v199_v0, 7  ;;  %s192_s24 = scalar_lea.vmem %s880_s0, %s603_s21  ;;  %v613_v58 = vld [vmem:[%s881_s1 + $0x40] sm:$0xff]  ;;  %v606_v59 = vld [vmem:[%s881_s1 + $0x8] sm:$0xff]  ;;  %vm351_vm12 = vcmask 654336   ;;  %vm354_vm13 = vcmask 785408   ;;  %vm357_vm14 = vcmask 916480  }
   0xe   : > { %v631_v6 = vld [vmem:[%s192_s24 + $0x10] sm:$0xff]   ;;  %v759_v7 = vld [vmem:[%s192_s24 + $0x18] sm:$0xff]   ;;  %v630_v10 = vld [vmem:[%s192_s24 + $0x8] sm:$0xff]   ;;  %462 = vmatpush.bf16.msra.mxu1 %v613_v58  ;;  %vm497_vm15 = vcmask 519168  }
   0xf   : > { %v201_v4 = vadd.s32 8, %v744_v2  ;;  %vm243_vm0 = vcmp.lt.s32.totalorder %v744_v2, 4  ;;  %vm246_vm1 = vcmp.ge.s32.totalorder %v744_v2, 4  ;;  %v202_v8 = vand.u32 3, %v744_v2  ;;  %v615_v18 = vld [vmem:[%s192_s24] sm:$0xff]  }
  0x10   : > { %vm262_vm2 = vcmp.lt.s32.totalorder %v744_v2, 1  ;;  %442 = vmatpush.bf16.msra.mxu0 %v611_v3  ;;  %v763_v11 = vunpack.c.l.bf16 %v631_v6  ;;  %v765_v12 = vunpack.c.h.bf16 %v631_v6  ;;  %v768_v13 = vunpack.c.l.bf16 %v759_v7  ;;  %v605_v60 = vld [vmem:[%s881_s1] sm:$0xff] }
  0x11   : > { %v203_v9 = vand.u32 3, %v201_v4  ;;  %v771_v14 = vunpack.c.h.bf16 %v759_v7  ;;  %v620_v15 = vunpack.c.l.bf16 %v630_v10  ;;  %v621_v16 = vunpack.c.h.bf16 %v630_v10  ;;  %600 = vmatmul.msk.bf16.vlgmr.msra.gmra.mxu1 %vm339_vm6, %v759_v7  ;;  %v688_v63 = vld [vmem:[%s883_s3] ss:$0 sm:$0xff]  ;;  %v689_v3 = vld [vmem:[%s883_s3 + $0x1] ss:$0 sm:$0xff] }
  0x12   : > { %vm265_vm4 = vcmp.ge.s32.totalorder %v744_v2, 1  ;;  %v241_v19 = vrot.slane %v763_v11, 4  ;;  %v242_v20 = vrot.slane %v765_v12, 4  ;;  %v254_v21 = vrot.slane %v768_v13, 4 }
  0x13   : > { %vm773_vm3 = vcmp.ge.s32.totalorder %v203_v9, 1  ;;  %v255_v22 = vrot.slane %v771_v14, 4  ;;  %v260_v23 = vrot.slane %v620_v15, 7  ;;  %v261_v24 = vrot.slane %v621_v16, 7 }
  0x14   : > { %v275_v25 = vrot.slane %v768_v13, 7  ;;  %v276_v26 = vrot.slane %v771_v14, 7  ;;  %443 = vmatpush.bf16.msra.mxu0 %v610_v5  ;;  %v244_v27 = vsel %vm243_vm0, %v241_v19, %v242_v20  ;;  %v245_v28 = vsel %vm243_vm0, %v242_v20, %v241_v19 }
  0x15   : > { %vm788_vm5 = vcmp.ge.s32.totalorder %v202_v8, 1  ;;  %v616_v30 = vunpack.c.l.bf16 %v615_v18  ;;  %v252_v31 = vsel %vm246_vm1, %v245_v28, 0.0  ;;  %v257_v32 = vsel %vm243_vm0, %v255_v22, %v254_v21 }
  0x16   : > { %v263_v33 = vsel %vm262_vm2, %v260_v23, %v261_v24  ;;  %v264_v34 = vsel %vm262_vm2, %v261_v24, %v260_v23  ;;  %v648_v35 = vpack.i.bf16 %v244_v27, %v252_v31  ;;  %v278_v38 = vsel %vm262_vm2, %v276_v26, %v275_v25 }
  0x17   : > { %v271_v36 = vsel %vm265_vm4, %v264_v34, 0.0  ;;  %v274_v37 = vsel %vm773_vm3, %v263_v33, 0.0  ;;  %v617_v40 = vunpack.c.h.bf16 %v615_v18  ;;  %v279_v41 = vsel %vm265_vm4, %v278_v38, 0.0 }
  0x18   : > { %v273_v39 = vsel %vm788_vm5, %v271_v36, 0.0  ;;  %649 = vrot.lane.b32.xlu0 %v648_v35, %s699_s27  ;;  %v469_v43 = vmax.f32 %v616_v30, %v620_v15  ;;  %v668_v44 = vpack.i.bf16 %v621_v16, %v620_v15  ;;  %v258_v45 = vsel %vm246_vm1, %v257_v32, 0.0  ;;  %444 = vmatpush.bf16.msra.mxu0 %v609_v55 }
  0x19   : > { %v658_v42 = vpack.i.bf16 %v274_v37, %v273_v39  ;;  %v256_v46 = vsel %vm243_vm0, %v254_v21, %v255_v22  ;;  %v470_v47 = vmax.f32 %v617_v40, %v621_v16  ;;  %v277_v48 = vsel %vm262_vm2, %v275_v25, %v276_v26 }
  0x1a   : > { %669 = vrot.lane.b32.xlu2 %v668_v44, %s701_s29  ;;  %v281_v49 = vsel %vm788_vm5, %v279_v41, 0.0  ;;  %v282_v50 = vsel %vm773_vm3, %v277_v48, 0.0  ;;  %v653_v51 = vpack.i.bf16 %v256_v46, %v258_v45  ;;  %v663_v52 = vpack.i.bf16 %v617_v40, %v616_v30 }
  0x1b   : > { %659 = vrot.lane.b32.xlu1 %v658_v42, %s700_s28  ;;  %v673_v53 = vpack.i.bf16 %v282_v50, %v281_v49  ;;  %v678_v54 = vpack.i.bf16 %v765_v12, %v763_v11  ;;  %v471_v61 = vmax.f32 %v763_v11, %v768_v13  ;;  %v472_v62 = vmax.f32 %v765_v12, %v771_v14 }
  0x1c   : > { %445 = vmatpush.bf16.msra.mxu0 %v608_v56  ;;  %v220_v8 = vrot.slane %v768_v13, 3  ;;  %v221_v9 = vrot.slane %v771_v14, 3  ;;  %vm222_vm7 = vcmp.lt.s32.totalorder %v744_v2, 5  ;;  %vm225_vm8 = vcmp.ge.s32.totalorder %v744_v2, 5 }
  0x1d   : > { %v473_v0 = vmax.f32 %v469_v43, %v471_v61  ;;  %v474_v1 = vmax.f32 %v470_v47, %v472_v62 }
  0x1e   : > { %v224_v15 = vsel %vm222_vm7, %v221_v9, %v220_v8  ;;  %v223_v18 = vsel %vm222_vm7, %v220_v8, %v221_v9 }
  0x1f   : > { %v477_v4 = vmul.f32 %v688_v63, %v473_v0  ;;  %v478_v5 = vmul.f32 %v688_v63, %v474_v1  ;;  %v231_v19 = vsel %vm225_vm8, %v224_v15, 0.0  ;;  %v240_v14 = vsel %vm773_vm3, %v223_v18, 0.0 }
  0x20   : > { %654 = vrot.lane.b32.xlu0 %v653_v51, %s702_s30  ;;  %446 = vmatpush.bf16.msra.mxu0 %v607_v57  ;;  %v239_v13 = vsel %vm788_vm5, %v231_v19, 0.0  ;;  %v690_v51 = vld [vmem:[%s882_s2] ss:$0 sm:$0xff] }
  0x21   : > { %v481_v6 = vadd.f32 %v689_v3, %v477_v4  ;;  %v482_v7 = vadd.f32 %v689_v3, %v478_v5 }
  0x22   : > { %674 = vrot.lane.b32.xlu2 %v673_v53, %s704_s6 }
  0x23   : > { %664 = vrot.lane.b32.xlu1 %v663_v52, %s703_s5  ;;  %v683_v10 = vpack.i.bf16 %v482_v7, %v481_v6 }
  0x24   : > { %447 = vmatpush.bf16.msra.mxu0 %v606_v59 }
  0x28   : > { %679 = vrot.lane.b32.xlu0 %v678_v54, %s705_s7  ;;  %448 = vmatpush.bf16.msra.mxu0 %v605_v60 }
  0x2b   : > { %684 = vrot.lane.b32.xlu1 %v683_v10, %s700_s28  ;;  %s604_s28 = sshll.u32 %s890_s16, 3 }
  0x2c   : > { %s197_s5 = scalar_lea.vmem %s884_s4, %s604_s28 }
  0x74   : > { %v670_v12 = vpop.permute.xlu2 %669 }
  0x75   : > { %v672_v35 = vunpack.i.h.bf16 %v670_v12  ;;  %v671_v36 = vunpack.i.l.bf16 %v670_v12 }
  0x7c   : > { %v675_v29 = vpop.permute.xlu2 %674 }
  0x7d   : > { %v677_v39 = vunpack.i.h.bf16 %v675_v29  ;;  %v676_v40 = vunpack.i.l.bf16 %v675_v29 }
  0x8a   : > { %v650_v11 = vpop.permute.xlu0 %649 }
  0x8b   : > { %v652_v20 = vunpack.i.h.bf16 %v650_v11  ;;  %v651_v21 = vunpack.i.l.bf16 %v650_v11 }
  0x8d   : > { %v660_v16 = vpop.permute.xlu1 %659  ;;  %v340_v27 = vsel %vm339_vm6, %v239_v13, %v651_v21  ;;  %v341_v28 = vsel %vm339_vm6, %v240_v14, %v652_v20 }
  0x8e   : > { %v662_v25 = vunpack.i.h.bf16 %v660_v16  ;;  %v661_v26 = vunpack.i.l.bf16 %v660_v16  ;;  %v464_v53 = vpop.f32.mrf.mxu1 }
  0x92   : > { %v655_v22 = vpop.permute.xlu0 %654 }
  0x93   : > { %v657_v23 = vunpack.i.h.bf16 %v655_v22  ;;  %v656_v24 = vunpack.i.l.bf16 %v655_v22 }
  0x95   : > { %v665_v2 = vpop.permute.xlu1 %664  ;;  %v343_v32 = vsel %vm342_vm9, %v340_v27, %v656_v24  ;;  %v344_v33 = vsel %vm342_vm9, %v341_v28, %v657_v23 }
  0x96   : > { %v667_v30 = vunpack.i.h.bf16 %v665_v2  ;;  %v666_v31 = vunpack.i.l.bf16 %v665_v2  ;;  %v346_v17 = vsel %vm345_vm10, %v343_v32, %v661_v26  ;;  %v347_v34 = vsel %vm345_vm10, %v344_v33, %v662_v25  ;;  %v466_v0 = vpop.f32.mrf.mxu1 }
  0x98   : > { %v349_v37 = vsel %vm348_vm11, %v346_v17, %v666_v31  ;;  %v350_v38 = vsel %vm348_vm11, %v347_v34, %v667_v30 }
  0x99   : > { %v352_v41 = vsel %vm351_vm12, %v349_v37, %v671_v36  ;;  %v353_v42 = vsel %vm351_vm12, %v350_v38, %v672_v35 }
  0x9a   : > { %v680_v43 = vpop.permute.xlu0 %679  ;;  %v355_v46 = vsel %vm354_vm13, %v352_v41, %v676_v40  ;;  %v356_v47 = vsel %vm354_vm13, %v353_v42, %v677_v39 }
  0x9b   : > { %v682_v44 = vunpack.i.h.bf16 %v680_v43  ;;  %v681_v45 = vunpack.i.l.bf16 %v680_v43 }
  0x9d   : > { %v358_v48 = vsel %vm357_vm14, %v355_v46, %v681_v45  ;;  %v359_v49 = vsel %vm357_vm14, %v356_v47, %v682_v44  ;;  %v685_v52 = vpop.permute.xlu1 %684 }
  0x9e   : > { %v360_v50 = vpack.c.bf16 %v359_v49, %v358_v48  ;;  %v686_v56 = vunpack.i.l.bf16 %v685_v52  ;;  %v687_v62 = vunpack.i.h.bf16 %v685_v52 }
  0xa0   : > { %449 = vmatmul.bf16.vlgmr.msra.gmra.mxu0 %v360_v50 }
 0x11d   : > { %v450_v54 = vpop.f32.mrf.mxu0 }
 0x11e   : > { %v451_v55 = vadd.f32 %v690_v51, %v450_v54 }
 0x120   : > { %v465_v57 = vadd.f32 %v464_v53, %v451_v55 }
 0x122   : > { %v491_v58 = vsel %vm345_vm10, %v465_v57, %v686_v56 }
 0x123   : > { %v493_v59 = vmax.f32 %v491_v58, 0.0 }
 0x125   : > { %v495_v60 = vpack.c.bf16 %v493_v59, %v493_v59  ;;  %v452_v61 = vpop.f32.mrf.mxu0 }
 0x126   : > { %v453_v63 = vadd.f32 %v690_v51, %v452_v61 }
 0x127   : > { %498 = vst.msk [vmem:[%s197_s5] sm:$0xf] %vm497_vm15, %v495_v60 }
 0x128   : > { %v467_v1 = vadd.f32 %v466_v0, %v453_v63 }
 0x12a   : > { %v492_v3 = vsel %vm345_vm10, %v467_v1, %v687_v62 }
 0x12b   : > { %v494_v4 = vmax.f32 %v492_v3, 0.0 }
 0x12d   : > { %v496_v5 = vpack.c.bf16 %v494_v4, %v494_v4 }
 0x12f   : > { %499 = vst.msk [vmem:[%s197_s5 + $0x4] sm:$0xf] %vm497_vm15, %v496_v5 }
 0x130 PF: > { %s14_s15 = sadd.s32 1, %s697_s15  }
 0x131   : > { %p11_p4 = scmp.ge.s32.totalorder %s14_s15, 4  }
 0x133   :  { %13 = sbr.rel (!%p11_p4) target bundleno = 1 (0x1), region = 66 }

// kernel: encoder_forward.5
= control target key start
LH: loop header
LB: loop body
LE: loop exit
PB: predicated region body
PF: predicated region fallthrough
CT: control target
= control target key end

     0   :  { %s1395_s15 = smov 0   ;;  %s2029_s0 = inlined_call_operand.vmem [shape: bf16[2,4,64,3], index: 0, kind: input, shape index: {}]   ;;  %s2030_s1 = inlined_call_operand.vmem [shape: bf16[27,13], index: 1, kind: input, shape index: {}]   ;;  %s2031_s2 = inlined_call_operand.vmem [shape: f32[1,13], index: 2, kind: input, shape index: {}]   ;;  %s2032_s3 = inlined_call_operand.vmem [shape: f32[2,3], index: 3, kind: input, shape index: {}]   ;;  %s2033_s4 = inlined_call_operand.vmem [shape: bf16[2,64,16], index: 4, kind: output, shape index: {}]  }
   0x1 LB: > { %s1038_s16 = sadd.s32 4294967295, %s1358_s15   ;;  %p1042_p0 = scmp.ge.s32.totalorder %s1358_s15, 1  ;;  %s1358_s15 = sphi %s1395_s15, %s14_s15  }
   0x2   : > { %p162_p1 = scmp.lt.s32.totalorder %s1358_s15, 3 }
   0x4   : > { %p163_p2 = pnand %p1042_p0, %p162_p1 }
   0x5   : > { %p188_p3 = scmp.lt.s32.totalorder (!%p163_p2), %s1038_s16, 1  ;;  %s1360_s21 = smov (!%p163_p2), 6  }
   0x6   : > { %166 = sbr.rel (%p163_p2) target bundleno = 362 (0x16a), region = 36  ;;  %s1361_s22 = smov (!%p163_p2), 3  }
   0x7   : > { %s1362_s23 = smov (!%p163_p2), 12   ;;  %s1363_s24 = smov (!%p163_p2), 9  }
   0x8   : > { %s1364_s25 = smov (!%p163_p2), 15   ;;  %s1365_s26 = smov (!%p163_p2), 21  }
   0x9   : > { %s1366_s27 = smov (!%p163_p2), 18   ;;  %s1367_s28 = smov (!%p163_p2), 24  }
   0xa   : > { %s1369_s13 = smov (!%p163_p2), 13  }
   0xb   : > { %v199_v0 = vlaneseq  ;;  %s2055_s16 = smov (!%p188_p3, %s1038_s16), 1  ;;  %vm729_vm11 = vcmask 23552   ;;  %vm837_vm12 = vcmask 1044480   ;;  %vm838_vm13 = vcmask 1045504  }
   0xc   : > { %s1061_s17 = sshll.u32 %s2055_s16, 7  ;;  %vm738_vm14 = vcmask 48128   ;;  %vm747_vm15 = vcmask 72704   ;;  %s1062_s18 = sshll.u32 %s2055_s16, 5 }
   0xd   : > { %v1405_v1 = vshrl.u32 %v199_v0, 7  ;;  %s1411_s20 = scalar_lea.vmem %s2029_s0, %s1061_s17 }
   0xe   : > { %v1414_v2 = vld [vmem:[%s1411_s20 + $0x68] sm:$0xff]   ;;  %v1142_v3 = vld [vmem:[%s1411_s20 + $0x70] sm:$0xff]   ;;  %v1425_v8 = vld [vmem:[%s1411_s20 + $0x60] sm:$0xff]  }
   0xf   : > { %v1137_v4 = vld [vmem:[%s1411_s20 + $0x48] sm:$0xff]   ;;  %v1419_v5 = vunpack.c.h.bf16 %v1414_v2  ;;  %v1421_v6 = vunpack.c.l.bf16 %v1142_v3  ;;  %v1138_v7 = vld [vmem:[%s1411_s20 + $0x50] sm:$0xff]   ;;  %v1136_v9 = vld [vmem:[%s1411_s20 + $0x40] sm:$0xff]   ;;  %v206_v10 = vadd.s32 48, %v1405_v1  ;;  %v207_v11 = vadd.s32 56, %v1405_v1 }
  0x10   : > { %v1430_v12 = vunpack.c.h.bf16 %v1137_v4  ;;  %v1432_v13 = vunpack.c.l.bf16 %v1138_v7  ;;  %v1435_v14 = vld [vmem:[%s1411_s20 + $0x78] sm:$0xff]   ;;  %vm288_vm0 = vcmp.lt.s32.totalorder %v1405_v1, 1  ;;  %v204_v15 = vadd.s32 32, %v1405_v1  ;;  %v1134_v21 = vld [vmem:[%s1411_s20 + $0x30] sm:$0xff]   ;;  %v1469_v30 = vld [vmem:[%s1411_s20 + $0x28] sm:$0xff]  }
  0x11   : > { %v1439_v16 = vunpack.c.h.bf16 %v1142_v3  ;;  %v1189_v17 = vpack.i.bf16 %v1421_v6, %v1419_v5  ;;  %v1444_v18 = vunpack.c.l.bf16 %v1425_v8  ;;  %v1446_v19 = vunpack.c.l.bf16 %v1136_v9  ;;  %v1449_v20 = vld [vmem:[%s1411_s20 + $0x58] sm:$0xff]   ;;  %v1130_v39 = vld [vmem:[%s1411_s20 + $0x10] sm:$0xff]  }
  0x12   : > { %v885_v22 = vmax.f32 %v1432_v13, %v1421_v6  ;;  %v1179_v23 = vpack.i.bf16 %v1432_v13, %v1430_v12  ;;  %v1459_v25 = vunpack.c.l.bf16 %v1435_v14  ;;  %v1135_v26 = vld [vmem:[%s1411_s20 + $0x38] sm:$0xff]   ;;  %v1463_v27 = vunpack.c.h.bf16 %v1138_v7 }
  0x13   : > { %1190 = vrot.lane.b32.xlu2 %v1189_v17, %s1360_s21  ;;  %v205_v29 = vadd.s32 40, %v1405_v1  ;;  %v1472_v31 = vunpack.c.l.bf16 %v1137_v4  ;;  %v1474_v32 = vunpack.c.h.bf16 %v1136_v9  ;;  %v1477_v33 = vunpack.c.l.bf16 %v1449_v20  ;;  %1170 = vrot.lane.b32.xlu0 %v1446_v19, %s1361_s22  ;;  %v1131_v56 = vld [vmem:[%s1411_s20 + $0x18] sm:$0xff]  }
  0x14   : > { %1180 = vrot.lane.b32.xlu1 %v1179_v23, %s1361_s22  ;;  %v1479_v34 = vunpack.c.h.bf16 %v1134_v21  ;;  %v214_v35 = vand.u32 7, %v206_v10  ;;  %v215_v36 = vand.u32 7, %v207_v11  ;;  %v1483_v37 = vunpack.c.l.bf16 %v1135_v26 }
  0x15   : > { %v1485_v38 = vunpack.c.h.bf16 %v1135_v26  ;;  %v1194_v40 = vpack.i.bf16 %v1459_v25, %v1439_v16  ;;  %v212_v42 = vand.u32 7, %v204_v15  ;;  %v1492_v43 = vunpack.c.h.bf16 %v1469_v30 }
  0x16   : > { %v406_v41 = vrot.slane %v1479_v34, 7  ;;  %v407_v44 = vrot.slane %v1483_v37, 7  ;;  %v213_v46 = vand.u32 7, %v205_v29  ;;  %v1091_v47 = vunpack.c.l.bf16 %v1134_v21 }
  0x17   : > { %v408_v45 = vrot.slane %v1485_v38, 7  ;;  %v1184_v48 = vpack.i.bf16 %v1477_v33, %v1463_v27  ;;  %v1174_v49 = vpack.i.bf16 %v1472_v31, %v1474_v32  ;;  %v404_v50 = vrot.slane %v1492_v43, 7 }
  0x18   : > { %v1076_v51 = vunpack.c.h.bf16 %v1130_v39  ;;  %vm1501_vm1 = vcmp.ge.s32.totalorder %v214_v35, 1  ;;  %vm1505_vm2 = vcmp.ge.s32.totalorder %v215_v36, 1  ;;  %v405_v54 = vrot.slane %v1091_v47, 7 }
  0x19   : > { %v1075_v55 = vunpack.c.l.bf16 %v1130_v39  ;;  %v409_v57 = vsel %vm288_vm0, %v407_v44, %v408_v45  ;;  %v410_v58 = vsel %vm288_vm0, %v406_v41, %v407_v44  ;;  %vm1516_vm3 = vcmp.ge.s32.totalorder %v212_v42, 1 }
  0x1a   : > { %v1521_v60 = vmax.f32 %v1076_v51, %v1479_v34  ;;  %vm1524_vm4 = vcmp.ge.s32.totalorder %v213_v46, 1  ;;  %v411_v62 = vsel %vm288_vm0, %v405_v54, %v406_v41  ;;  %v412_v63 = vsel %vm288_vm0, %v404_v50, %v405_v54 }
  0x1b   : > { %1195 = vrot.lane.b32.xlu2 %v1194_v40, %s1360_s21  ;;  %v1534_v0 = vmax.f32 %v1075_v55, %v1091_v47  ;;  %v1079_v3 = vunpack.c.l.bf16 %v1131_v56  ;;  %v1080_v4 = vunpack.c.h.bf16 %v1131_v56  ;;  %1175 = vrot.lane.b32.xlu0 %v1174_v49, %s1361_s22  ;;  %v455_v7 = vsel %vm1501_vm1, %v410_v58, 0.0  ;;  %v1132_v56 = vld [vmem:[%s1411_s20 + $0x20] sm:$0xff]  }
  0x1c   : > { %1185 = vrot.lane.b32.xlu1 %v1184_v48, %s1361_s22  ;;  %v456_v9 = vsel %vm1505_vm2, %v409_v57, 0.0  ;;  %v285_v10 = vrot.slane %v1439_v16, 7  ;;  %v286_v11 = vrot.slane %v1459_v25, 7  ;;  %v453_v15 = vsel %vm1516_vm3, %v412_v63, 0.0  ;;  %v1593_v57 = vld [vmem:[%s1411_s20] sm:$0xff]  }
  0x1d   : > { %v454_v17 = vsel %vm1524_vm4, %v411_v62, 0.0  ;;  %v1549_v21 = vmax.f32 %v1080_v4, %v1485_v38  ;;  %v1552_v23 = vmax.f32 %v1079_v3, %v1483_v37  ;;  %v1209_v26 = vpack.i.bf16 %v1076_v51, %v1075_v55 }
  0x1e   : > { %v1556_v29 = vsel %vm288_vm0, %v285_v10, %v286_v11  ;;  %v283_v35 = vrot.slane %v1419_v5, 7  ;;  %v284_v36 = vrot.slane %v1421_v6, 7  ;;  %v1204_v39 = vpack.i.bf16 %v456_v9, %v455_v7 }
  0x1f   : > { %v1564_v41 = vunpack.c.h.bf16 %v1435_v14  ;;  %v1199_v42 = vpack.i.bf16 %v454_v17, %v453_v15  ;;  %v1112_v46 = vunpack.c.h.bf16 %v1449_v20  ;;  %v1224_v54 = vpack.i.bf16 %v1485_v38, %v1483_v37 }
  0x20   : > { %v1568_v44 = vsel %vm288_vm0, %v284_v36, %v285_v10  ;;  %v1573_v48 = vsel %vm288_vm0, %v283_v35, %v284_v36  ;;  %v1219_v55 = vpack.i.bf16 %v1479_v34, %v1091_v47  ;;  %v1214_v58 = vpack.i.bf16 %v1080_v4, %v1079_v3 }
  0x21   : > { %v358_v14 = vsel %vm1524_vm4, %v1573_v48, 0.0  ;;  %v1583_v51 = vmax.f32 %v1112_v46, %v1564_v41  ;;  %v287_v20 = vrot.slane %v1564_v41, 7  ;;  %v1600_v63 = vunpack.c.h.bf16 %v1132_v56 }
  0x22   : > { %v1068_v7 = vunpack.c.h.bf16 %v1593_v57  ;;  %v471_v34 = vsel %vm1501_vm1, %v1556_v29, 0.0  ;;  %v1067_v47 = vunpack.c.l.bf16 %v1593_v57  ;;  %v1611_v3 = vunpack.c.l.bf16 %v1132_v56 }
  0x23   : > { %1210 = vrot.lane.b32.xlu2 %v1209_v26, %s1362_s23  ;;  %1200 = vrot.lane.b32.xlu0 %v1199_v42, %s1363_s24  ;;  %v289_v62 = vsel %vm288_vm0, %v286_v11, %v287_v20  ;;  %v469_v9 = vsel %vm1516_vm3, %v1573_v48, 0.0  ;;  %v470_v10 = vsel %vm1524_vm4, %v1568_v44, 0.0  ;;  %v1239_v11 = vpack.i.bf16 %v1463_v27, %v1432_v13 }
  0x24   : > { %1205 = vrot.lane.b32.xlu1 %v1204_v39, %s1363_s24  ;;  %v472_v37 = vsel %vm1505_vm2, %v289_v62, 0.0  ;;  %v1616_v4 = vmax.f32 %v1068_v7, %v1600_v63  ;;  %v203_v15 = vadd.s32 24, %v1405_v1  ;;  %v1630_v17 = vmax.f32 %v1067_v47, %v1611_v3 }
  0x25   : > { %v1234_v26 = vpack.i.bf16 %v472_v37, %v471_v34  ;;  %v1229_v36 = vpack.i.bf16 %v470_v10, %v469_v9  ;;  %v201_v39 = vadd.s32 8, %v1405_v1  ;;  %v1634_v42 = vunpack.c.l.bf16 %v1414_v2  ;;  %v1063_v9 = vld [vmem:[%s2030_s1] sm:$0xff] }
  0x26   : > { %v211_v56 = vand.u32 7, %v203_v15  ;;  %vm417_vm5 = vcmp.ge.s32.totalorder %v1405_v1, 1  ;;  %v402_v10 = vrot.slane %v1600_v63, 7  ;;  %v1244_v38 = vpack.i.bf16 %v1112_v46, %v1477_v33 }
  0x27   : > { %v209_v62 = vand.u32 7, %v201_v39  ;;  %v282_v34 = vrot.slane %v1634_v42, 7  ;;  %v1264_v49 = vpack.i.bf16 %v1564_v41, %v1459_v25  ;;  %vm298_vm10 = vcmp.ge.s32.totalorder %v201_v39, 9 }
  0x28   : > { %vm1653_vm6 = vcmp.ge.s32.totalorder %v211_v56, 1  ;;  %v1279_v39 = vpack.i.bf16 %v1068_v7, %v1067_v47  ;;  %v1289_v47 = vpack.i.bf16 %v1600_v63, %v1611_v3  ;;  %v1309_v63 = vpack.i.bf16 %v1474_v32, %v1446_v19 }
  0x29   : > { %vm1677_vm8 = vcmp.ge.s32.totalorder %v209_v62, 1  ;;  %v1324_v40 = vpack.i.bf16 %v1419_v5, %v1634_v42  ;;  %v2051_v48 = vsel %vm1501_vm1, %v1568_v44, 0.0  ;;  %vm783_vm1 = vcmask 171008  }
  0x2a   : > { %vm824_vm4 = vcmask 220160  }
  0x2b   : > { %1225 = vrot.lane.b32.xlu2 %v1224_v54, %s1364_s25  ;;  %1215 = vrot.lane.b32.xlu0 %v1214_v58, %s1362_s23  ;;  %v1637_v54 = vunpack.c.h.bf16 %v1425_v8  ;;  %v208_v58 = vand.u32 7, %v1405_v1 }
  0x2c   : > { %1220 = vrot.lane.b32.xlu1 %v1219_v55, %s1364_s25  ;;  %v401_v55 = vrot.slane %v1611_v3, 7 }
  0x2d   : > { %v281_v2 = vrot.slane %v1637_v54, 7  ;;  %v1254_v8 = vpack.i.bf16 %v1634_v42, %v1637_v54  ;;  %vm1673_vm7 = vcmp.ge.s32.totalorder %v208_v58, 1  ;;  %v1087_v58 = vunpack.c.l.bf16 %v1469_v30 }
  0x2e   : > { %v416_v37 = vsel %vm288_vm0, %v408_v45, %v401_v55  ;;  %v415_v46 = vsel %vm288_vm0, %v401_v55, %v402_v10  ;;  %v1259_v30 = vpack.i.bf16 %v1439_v16, %v1421_v6 }
  0x2f   : > { %v1664_v15 = vsel %vm288_vm0, %v281_v2, %v282_v34  ;;  %v441_v56 = vsel %vm417_vm5, %v416_v37, 0.0  ;;  %v450_v24 = vsel %vm1677_vm8, %v415_v46, 0.0  ;;  %v403_v28 = vrot.slane %v1087_v58, 7 }
  0x30   : > { %v449_v62 = vsel %vm1673_vm7, %v441_v56, 0.0  ;;  %v1294_v7 = vpack.i.bf16 %v1492_v43, %v1087_v58 }
  0x31   : > { %v1269_v37 = vpack.i.bf16 %v450_v24, %v449_v62  ;;  %v413_v46 = vsel %vm288_vm0, %v403_v28, %v404_v50 }
  0x32   : > { %v452_v50 = vsel %vm1653_vm6, %v413_v46, 0.0 }
  0x33   : > { %1240 = vrot.lane.b32.xlu2 %v1239_v11, %s1365_s26  ;;  %1230 = vrot.lane.b32.xlu0 %v1229_v36, %s1366_s27  ;;  %v1660_v11 = vsel %vm288_vm0, %v282_v34, %v283_v35  ;;  %v202_v34 = vadd.s32 16, %v1405_v1  ;;  %v1319_v36 = vpack.i.bf16 %v1637_v54, %v1444_v18 }
  0x34   : > { %1235 = vrot.lane.b32.xlu1 %v1234_v26, %s1366_s27  ;;  %v357_v45 = vsel %vm1516_vm3, %v1660_v11, 0.0  ;;  %v356_v26 = vsel %vm1653_vm6, %v1664_v15, 0.0  ;;  %vm774_vm3 = vcmask 146432  }
  0x35   : > { %v210_v55 = vand.u32 7, %v202_v34 }
  0x37   : > { %vm1700_vm9 = vcmp.ge.s32.totalorder %v210_v55, 1  ;;  %v280_v55 = vrot.slane %v1444_v18, 7 }
  0x38   : > { %v467_v1 = vsel %vm1700_vm9, %v1664_v15, 0.0 }
  0x3b   : > { %1255 = vrot.lane.b32.xlu2 %v1254_v8, %s1360_s21  ;;  %1245 = vrot.lane.b32.xlu0 %v1244_v38, %s1365_s26  ;;  %v1129_v8 = vld [vmem:[%s1411_s20 + $0x8] sm:$0xff]   ;;  %v414_v38 = vsel %vm288_vm0, %v402_v10, %v403_v28 }
  0x3c   : > { %1250 = vrot.lane.b32.xlu1 %v1444_v18, %s1360_s21  ;;  %v1071_v24 = vunpack.c.l.bf16 %v1129_v8  ;;  %v1072_v56 = vunpack.c.h.bf16 %v1129_v8  ;;  %v451_v28 = vsel %vm1700_vm9, %v414_v38, 0.0  ;;  %s2002_s21 = scalar_lea.vmem %s2033_s4, %s1062_s18 }
  0x3d   : > { %v1274_v38 = vpack.i.bf16 %v452_v50, %v451_v28 }
  0x3e   : > { %v1714_v34 = vmax.f32 %v1072_v56, %v1492_v43  ;;  %v1716_v62 = vmax.f32 %v1071_v24, %v1087_v58  ;;  %v1284_v10 = vpack.i.bf16 %v1072_v56, %v1071_v24  ;;  %v1314_v43 = vpack.i.bf16 %v1430_v12, %v1472_v31 }
  0x43   : > { %1270 = vrot.lane.b32.xlu2 %v1269_v37, %s1363_s24  ;;  %1260 = vrot.lane.b32.xlu0 %v1259_v30, %s1367_s28  ;;  %v296_v37 = vsel %vm288_vm0, %v287_v20, %v280_v55 }
  0x44   : > { %1265 = vrot.lane.b32.xlu1 %v1264_v49, %s1367_s28  ;;  %v295_v49 = vsel %vm288_vm0, %v280_v55, %v281_v2  ;;  %v322_v30 = vsel %vm298_vm10, %v296_v37, 0.0  ;;  %v457_v46 = vsel %vm417_vm5, %v296_v37, 0.0  ;;  %v468_v2 = vsel %vm1653_vm6, %v1660_v11, 0.0 }
  0x45   : > { %v355_v8 = vsel %vm1700_vm9, %v295_v49, 0.0  ;;  %v465_v41 = vsel %vm1673_vm7, %v457_v46, 0.0  ;;  %v466_v20 = vsel %vm1677_vm8, %v295_v49, 0.0  ;;  %v1304_v3 = vpack.i.bf16 %v468_v2, %v467_v1  ;;  %v1064_v46 = vld [vmem:[%s2030_s1 + $0x8] sm:$0x30] }
  0x46   : > { %v1299_v57 = vpack.i.bf16 %v466_v20, %v465_v41  ;;  %v354_v58 = vsel %vm1677_vm8, %v322_v30, 0.0  ;;  %v1053_v30 = vld [vmem:[%s2030_s1 + $0x8] sm:$0xf]  ;;  %vm756_vm0 = vcmask 97280   ;;  %vm765_vm5 = vcmask 121856  }
  0x47   : > { %vm949_vm6 = vcmask 105472   ;;  %vm974_vm7 = vcmask 125952  }
  0x4b   : > { %1285 = vrot.lane.b32.xlu2 %v1284_v10, %s1362_s23  ;;  %1275 = vrot.lane.b32.xlu0 %v1274_v38, %s1363_s24 }
  0x4c   : > { %1280 = vrot.lane.b32.xlu1 %v1279_v39, %s1362_s23 }
  0x53   : > { %1300 = vrot.lane.b32.xlu2 %v1299_v57, %s1366_s27  ;;  %1290 = vrot.lane.b32.xlu0 %v1289_v47, %s1364_s25  ;;  %v1054_v57 = vor.u32 %v1064_v46, %v1053_v30  ;;  %v1825_v30 = vld [vmem:[%s2032_s3] ss:$0 sm:$0xff] }
  0x54   : > { %1295 = vrot.lane.b32.xlu1 %v1294_v7, %s1364_s25  ;;  %v1368_v7 = vmov 65535  }
  0x55   : > { %v839_v47 = vsel %vm837_vm12, 4294967295, %v1368_v7 }
  0x56   : > { %v840_v1 = vsel %vm838_vm13, %v839_v47, 0 }
  0x57   : > { %v842_v2 = vand.u32 %v1054_v57, %v840_v1 }
  0x59   : > { %1145 = vmatpush.bf16.msra.mxu2 %v842_v2  ;;  %1146 = vmatpush.bf16.msra.mxu3 %v842_v2 }
  0x5a   : > { %850 = vmatpush.bf16.msra.mxu0 %v842_v2  ;;  %1144 = vmatpush.bf16.msra.mxu1 %v842_v2 }
  0x5b   : > { %1315 = vrot.lane.b32.xlu2 %v1314_v43, %s1365_s26  ;;  %1305 = vrot.lane.b32.xlu0 %v1304_v3, %s1366_s27 }
  0x5c   : > { %1310 = vrot.lane.b32.xlu1 %v1309_v63, %s1365_s26 }
  0x5d   : > { %1148 = vmatpush.bf16.msra.mxu2 %v1063_v9  ;;  %1149 = vmatpush.bf16.msra.mxu3 %v1063_v9 }
  0x5e   : > { %851 = vmatpush.bf16.msra.mxu0 %v1063_v9  ;;  %1147 = vmatpush.bf16.msra.mxu1 %v1063_v9 }
  0x63   : > { %1320 = vrot.lane.b32.xlu0 %v1319_v36, %s1367_s28 }
  0x64   : > { %1325 = vrot.lane.b32.xlu1 %v1324_v40, %s1367_s28  ;;  %v886_v40 = vmax.f32 %v1463_v27, %v1439_v16 }
  0x6d   : > { %v1771_v24 = vpop.permute.xlu2 %1190 }
  0x6e   : > { %v1193_v36 = vunpack.i.h.bf16 %v1771_v24  ;;  %v1192_v16 = vunpack.i.l.bf16 %v1771_v24 }
  0x75   : > { %v1773_v56 = vpop.permute.xlu2 %1195 }
  0x76   : > { %v1198_v57 = vunpack.i.h.bf16 %v1773_v56  ;;  %v1197_v6 = vunpack.i.l.bf16 %v1773_v56 }
  0x7d   : > { %v1781_v49 = vpop.permute.xlu2 %1210 }
  0x7e   : > { %v1212_v24 = vunpack.i.l.bf16 %v1781_v49 }
  0x85   : > { %v1775_v28 = vpop.permute.xlu0 %1170  ;;  %v1801_v63 = vpop.permute.xlu2 %1225 }
  0x86   : > { %v1181_v55 = vpop.permute.xlu1 %1180  ;;  %v1173_v50 = vunpack.i.h.bf16 %v1775_v28  ;;  %v1228_v2 = vunpack.i.h.bf16 %v1801_v63  ;;  %v1227_v52 = vunpack.i.l.bf16 %v1801_v63 }
  0x88   : > { %v1779_v10 = vsel %vm729_vm11, %v354_v58, %v1173_v50  ;;  %v1183_v58 = vunpack.i.h.bf16 %v1181_v55  ;;  %v1182_v50 = vunpack.i.l.bf16 %v1181_v55 }
  0x8a   : > { %v735_v56 = vsel %vm729_vm11, %v358_v14, %v1183_v58 }
  0x8d   : > { %v1176_v39 = vpop.permute.xlu0 %1175 }
  0x8e   : > { %v1186_v37 = vpop.permute.xlu1 %1185  ;;  %v1178_v38 = vunpack.i.h.bf16 %v1176_v39  ;;  %v1177_v35 = vunpack.i.l.bf16 %v1176_v39 }
  0x8f   : > { %v1188_v27 = vunpack.i.h.bf16 %v1186_v37  ;;  %v1187_v46 = vunpack.i.l.bf16 %v1186_v37  ;;  %v734_v37 = vsel %vm729_vm11, %v357_v45, %v1182_v50  ;;  %v744_v50 = vsel %vm738_vm14, %v735_v56, %v1193_v36 }
  0x90   : > { %v1794_v41 = vsel %vm729_vm11, %v356_v26, %v1178_v38  ;;  %v1797_v20 = vsel %vm729_vm11, %v355_v8, %v1177_v35  ;;  %v1810_v8 = vpop.permute.xlu2 %1240  ;;  %v893_v38 = vmax.f32 %v1534_v0, %v885_v22  ;;  %v894_v35 = vmax.f32 %v1521_v60, %v886_v40  ;;  %v1837_v60 = vld [vmem:[%s2032_s3 + $0x1] ss:$0 sm:$0xff] }
  0x91   : > { %v1213_v0 = vunpack.i.h.bf16 %v1781_v49  ;;  %v2050_v49 = vsel %vm1505_vm2, %v1556_v29, 0.0  ;;  %v736_v59 = vsel %vm729_vm11, %v2051_v48, %v1187_v46  ;;  %v1242_v56 = vunpack.i.l.bf16 %v1810_v8 }
  0x92   : > { %v903_v13 = vmul.f32 %v1825_v30, %v893_v38  ;;  %v904_v22 = vmul.f32 %v1825_v30, %v894_v35  ;;  %v737_v61 = vsel %vm729_vm11, %v2050_v49, %v1188_v27  ;;  %v745_v40 = vsel %vm738_vm14, %v736_v59, %v1197_v6 }
  0x93   : > { %v746_v58 = vsel %vm738_vm14, %v737_v61, %v1198_v57  ;;  %vm792_vm2 = vcmask 195584  }
  0x94   : > { %v913_v7 = vadd.f32 %v1837_v60, %v903_v13  ;;  %v914_v47 = vadd.f32 %v1837_v60, %v904_v22 }
  0x95   : > { %v1803_v3 = vpop.permute.xlu0 %1200 }
  0x96   : > { %v1799_v43 = vpop.permute.xlu1 %1205  ;;  %v1203_v1 = vunpack.i.h.bf16 %v1803_v3  ;;  %v1202_v53 = vunpack.i.l.bf16 %v1803_v3  ;;  %v1339_v29 = vpack.i.bf16 %v914_v47, %v913_v7  ;;  %v1243_v3 = vunpack.i.h.bf16 %v1810_v8 }
  0x97   : > { %v1208_v14 = vunpack.i.h.bf16 %v1799_v43  ;;  %v1207_v11 = vunpack.i.l.bf16 %v1799_v43  ;;  %v743_v43 = vsel %vm738_vm14, %v734_v37, %v1192_v16  ;;  %v882_v8 = vmax.f32 %v1474_v32, %v1637_v54 }
  0x98   : > { %v1865_v45 = vpop.permute.xlu2 %1255  ;;  %1340 = vrot.lane.b32.xlu1 %v1339_v29, %s1369_s13  ;;  %v753_v27 = vsel %vm747_vm15, %v744_v50, %v1203_v1  ;;  %v752_v46 = vsel %vm747_vm15, %v743_v43, %v1202_v53  ;;  %v2052_v29 = vmax.f32 %v1446_v19, %v1444_v18 }
  0x99   : > { %v755_v35 = vsel %vm747_vm15, %v746_v58, %v1208_v14  ;;  %v754_v63 = vsel %vm747_vm15, %v745_v40, %v1207_v11  ;;  %v761_v47 = vsel %vm756_vm0, %v752_v46, %v1212_v24  ;;  %v762_v49 = vsel %vm756_vm0, %v753_v27, %v1213_v0 }
  0x9a   : > { %v890_v32 = vmax.f32 %v1616_v4, %v882_v8  ;;  %v1258_v8 = vunpack.i.h.bf16 %v1865_v45 }
  0x9d   : > { %v1216_v26 = vpop.permute.xlu0 %1215 }
  0x9e   : > { %v1808_v15 = vpop.permute.xlu1 %1220  ;;  %v1218_v9 = vunpack.i.h.bf16 %v1216_v26  ;;  %v1217_v44 = vunpack.i.l.bf16 %v1216_v26 }
  0x9f   : > { %v1223_v16 = vunpack.i.h.bf16 %v1808_v15  ;;  %v1222_v36 = vunpack.i.l.bf16 %v1808_v15 }
  0xa0   : > { %v764_v57 = vsel %vm756_vm0, %v755_v35, %v1218_v9  ;;  %v763_v6 = vsel %vm756_vm0, %v754_v63, %v1217_v44  ;;  %v1894_v48 = vpop.permute.xlu2 %1270  ;;  %v900_v35 = vmul.f32 %v1825_v30, %v890_v32 }
  0xa1   : > { %v772_v59 = vsel %vm765_vm5, %v763_v6, %v1227_v52  ;;  %v773_v14 = vsel %vm765_vm5, %v764_v57, %v1228_v2  ;;  %v889_v2 = vmax.f32 %v1630_v17, %v2052_v29 }
  0xa2   : > { %v910_v57 = vadd.f32 %v1837_v60, %v900_v35 }
  0xa3   : > { %v899_v50 = vmul.f32 %v1825_v30, %v889_v2 }
  0xa5   : > { %v1828_v55 = vpop.permute.xlu0 %1230  ;;  %v909_v46 = vadd.f32 %v1837_v60, %v899_v50 }
  0xa6   : > { %v1815_v39 = vpop.permute.xlu1 %1235  ;;  %v1233_v37 = vunpack.i.h.bf16 %v1828_v55  ;;  %v1232_v7 = vunpack.i.l.bf16 %v1828_v55  ;;  %v771_v55 = vsel %vm765_vm5, %v762_v49, %v1223_v16 }
  0xa7   : > { %v1238_v13 = vunpack.i.h.bf16 %v1815_v39  ;;  %v1237_v22 = vunpack.i.l.bf16 %v1815_v39  ;;  %v770_v39 = vsel %vm765_vm5, %v761_v47, %v1222_v36  ;;  %v1329_v6 = vpack.i.bf16 %v910_v57, %v909_v46 }
  0xa8   : > { %v779_v11 = vsel %vm774_vm3, %v770_v39, %v1232_v7  ;;  %v780_v1 = vsel %vm774_vm3, %v771_v55, %v1233_v37  ;;  %v1922_v36 = vpop.permute.xlu2 %1285 }
  0xa9   : > { %v781_v24 = vsel %vm774_vm3, %v772_v59, %v1237_v22  ;;  %v782_v0 = vsel %vm774_vm3, %v773_v14, %v1238_v13  ;;  %v788_v63 = vsel %vm783_vm1, %v779_v11, %v1242_v56  ;;  %v789_v18 = vsel %vm783_vm1, %v780_v1, %v1243_v3  ;;  %1330 = vrot.lane.b32.xlu2 %v1329_v6, %s1369_s13 }
  0xaa   : > { %v887_v3 = vmax.f32 %v1477_v33, %v1459_v25  ;;  %v896_v13 = vmax.f32 %v1549_v21, %v1583_v51  ;;  %v883_v22 = vmax.f32 %v1472_v31, %v1634_v42  ;;  %v2053_v56 = vmax.f32 %v1430_v12, %v1419_v5 }
  0xab   : > { %v742_v11 = vsel %vm738_vm14, %v1794_v41, %v1258_v8  ;;  %v1287_v2 = vunpack.i.l.bf16 %v1922_v36 }
  0xac   : > { %v892_v37 = vmax.f32 %v1714_v34, %v2053_v56  ;;  %v895_v47 = vmax.f32 %v1552_v23, %v887_v3  ;;  %v906_v25 = vmul.f32 %v1825_v30, %v896_v13  ;;  %v891_v33 = vmax.f32 %v1716_v62, %v883_v22 }
  0xad   : > { %v1246_v26 = vpop.permute.xlu0 %1245  ;;  %v1172_v62 = vunpack.i.l.bf16 %v1775_v28  ;;  %v1273_v28 = vunpack.i.h.bf16 %v1894_v48 }
  0xae   : > { %v1875_v38 = vpop.permute.xlu1 %1250  ;;  %v1248_v15 = vunpack.i.h.bf16 %v1246_v26  ;;  %v1247_v61 = vunpack.i.l.bf16 %v1246_v26  ;;  %v905_v21 = vmul.f32 %v1825_v30, %v895_v47  ;;  %v902_v51 = vmul.f32 %v1825_v30, %v892_v37 }
  0xaf   : > { %v916_v31 = vadd.f32 %v1837_v60, %v906_v25  ;;  %v901_v5 = vmul.f32 %v1825_v30, %v891_v33  ;;  %v1257_v30 = vunpack.i.l.bf16 %v1865_v45  ;;  %v1253_v39 = vunpack.i.h.bf16 %v1875_v38 }
  0xb0   : > { %v790_v54 = vsel %vm783_vm1, %v781_v24, %v1247_v61  ;;  %v791_v52 = vsel %vm783_vm1, %v782_v0, %v1248_v15  ;;  %v915_v12 = vadd.f32 %v1837_v60, %v905_v21  ;;  %v912_v42 = vadd.f32 %v1837_v60, %v902_v51  ;;  %v1301_v15 = vpop.permute.xlu2 %1300 }
  0xb1   : > { %v911_v23 = vadd.f32 %v1837_v60, %v901_v5  ;;  %v1252_v55 = vunpack.i.l.bf16 %v1875_v38  ;;  %v730_v0 = vsel %vm729_vm11, 0.0, %v1172_v62  ;;  %v741_v1 = vsel %vm738_vm14, %v1797_v20, %v1257_v30 }
  0xb2   : > { %v1344_v34 = vpack.i.bf16 %v916_v31, %v915_v12  ;;  %v740_v45 = vsel %vm738_vm14, %v1779_v10, %v1253_v39  ;;  %v1288_v38 = vunpack.i.h.bf16 %v1922_v36  ;;  %v1303_v10 = vunpack.i.h.bf16 %v1301_v15  ;;  %v1351_v39 = vld [vmem:[%s2031_s2] ss:$0 sm:$0xff] }
  0xb3   : > { %v1334_v61 = vpack.i.bf16 %v912_v42, %v911_v23  ;;  %v739_v29 = vsel %vm738_vm14, %v730_v0, %v1252_v55  ;;  %v1302_v50 = vunpack.i.l.bf16 %v1301_v15 }
  0xb4   : > { %1345 = vrot.lane.b32.xlu2 %v1344_v34, %s1369_s13 }
  0xb5   : > { %v1261_v40 = vpop.permute.xlu0 %1260  ;;  %1335 = vrot.lane.b32.xlu0 %v1334_v61, %s1369_s13 }
  0xb6   : > { %v1266_v53 = vpop.permute.xlu1 %1265  ;;  %v1263_v58 = vunpack.i.h.bf16 %v1261_v40  ;;  %v1262_v43 = vunpack.i.l.bf16 %v1261_v40 }
  0xb7   : > { %v1268_v9 = vunpack.i.h.bf16 %v1266_v53  ;;  %v1267_v44 = vunpack.i.l.bf16 %v1266_v53  ;;  %v1272_v53 = vunpack.i.l.bf16 %v1894_v48 }
  0xb8   : > { %v797_v17 = vsel %vm792_vm2, %v788_v63, %v1262_v43  ;;  %v798_v26 = vsel %vm792_vm2, %v789_v18, %v1263_v58  ;;  %v749_v18 = vsel %vm747_vm15, %v740_v45, %v1273_v28 }
  0xb9   : > { %v799_v19 = vsel %vm792_vm2, %v790_v54, %v1267_v44  ;;  %v800_v4 = vsel %vm792_vm2, %v791_v52, %v1268_v9  ;;  %v803_v16 = vpack.c.bf16 %v798_v26, %v797_v17  ;;  %v1316_v44 = vpop.permute.xlu2 %1315 }
  0xba   : > { %v804_v27 = vpack.c.bf16 %v800_v4, %v799_v19  ;;  %v748_v19 = vsel %vm747_vm15, %v739_v29, %v1272_v53  ;;  %v1318_v4 = vunpack.i.h.bf16 %v1316_v44  ;;  %v1317_v17 = vunpack.i.l.bf16 %v1316_v44 }
  0xbb   : > { %1057 = vmatmul.msk.bf16.vlgmr.msra.gmra.mxu2 %vm824_vm4, %v803_v16 }
  0xbc   : > { %1058 = vmatmul.msk.bf16.vlgmr.msra.gmra.mxu3 %vm824_vm4, %v804_v27 }
  0xbd   : > { %v1276_v49 = vpop.permute.xlu0 %1275 }
  0xbe   : > { %v1281_v7 = vpop.permute.xlu1 %1280  ;;  %v1278_v60 = vunpack.i.h.bf16 %v1276_v49  ;;  %v1277_v24 = vunpack.i.l.bf16 %v1276_v49 }
  0xbf   : > { %v1283_v52 = vunpack.i.h.bf16 %v1281_v7  ;;  %v1282_v20 = vunpack.i.l.bf16 %v1281_v7 }
  0xc0   : > { %v750_v54 = vsel %vm747_vm15, %v741_v1, %v1277_v24  ;;  %v751_v41 = vsel %vm747_vm15, %v742_v11, %v1278_v60 }
  0xc1   : > { %v758_v26 = vsel %vm756_vm0, %v749_v18, %v1283_v52  ;;  %v757_v27 = vsel %vm756_vm0, %v748_v19, %v1282_v20  ;;  %v760_v46 = vsel %vm756_vm0, %v751_v41, %v1288_v38  ;;  %v759_v16 = vsel %vm756_vm0, %v750_v54, %v1287_v2 }
  0xc5   : > { %v1291_v14 = vpop.permute.xlu0 %1290 }
  0xc6   : > { %v1296_v59 = vpop.permute.xlu1 %1295  ;;  %v1293_v40 = vunpack.i.h.bf16 %v1291_v14  ;;  %v1292_v48 = vunpack.i.l.bf16 %v1291_v14 }
  0xc7   : > { %v1298_v58 = vunpack.i.h.bf16 %v1296_v59  ;;  %v1297_v43 = vunpack.i.l.bf16 %v1296_v59 }
  0xc8   : > { %v766_v36 = vsel %vm765_vm5, %v757_v27, %v1292_v48  ;;  %v767_v57 = vsel %vm765_vm5, %v758_v26, %v1293_v40 }
  0xc9   : > { %v769_v3 = vsel %vm765_vm5, %v760_v46, %v1298_v58  ;;  %v768_v6 = vsel %vm765_vm5, %v759_v16, %v1297_v43  ;;  %v775_v47 = vsel %vm774_vm3, %v766_v36, %v1302_v50  ;;  %v776_v49 = vsel %vm774_vm3, %v767_v57, %v1303_v10 }
  0xcd   : > { %v1306_v9 = vpop.permute.xlu0 %1305 }
  0xce   : > { %v1311_v32 = vpop.permute.xlu1 %1310  ;;  %v1308_v35 = vunpack.i.h.bf16 %v1306_v9  ;;  %v1307_v63 = vunpack.i.l.bf16 %v1306_v9 }
  0xcf   : > { %v1313_v56 = vunpack.i.h.bf16 %v1311_v32  ;;  %v1312_v37 = vunpack.i.l.bf16 %v1311_v32 }
  0xd0   : > { %v777_v13 = vsel %vm774_vm3, %v768_v6, %v1307_v63  ;;  %v778_v22 = vsel %vm774_vm3, %v769_v3, %v1308_v35 }
  0xd1   : > { %v786_v51 = vsel %vm783_vm1, %v777_v13, %v1317_v17  ;;  %v787_v31 = vsel %vm783_vm1, %v778_v22, %v1318_v4  ;;  %v784_v42 = vsel %vm783_vm1, %v775_v47, %v1312_v37  ;;  %v785_v23 = vsel %vm783_vm1, %v776_v49, %v1313_v56 }
  0xd5   : > { %v1321_v25 = vpop.permute.xlu0 %1320 }
  0xd6   : > { %v1326_v7 = vpop.permute.xlu1 %1325  ;;  %v1323_v5 = vunpack.i.h.bf16 %v1321_v25  ;;  %v1322_v12 = vunpack.i.l.bf16 %v1321_v25 }
  0xd7   : > { %v1328_v33 = vunpack.i.h.bf16 %v1326_v7  ;;  %v1327_v21 = vunpack.i.l.bf16 %v1326_v7 }
  0xd8   : > { %v793_v61 = vsel %vm792_vm2, %v784_v42, %v1322_v12  ;;  %v794_v59 = vsel %vm792_vm2, %v785_v23, %v1323_v5 }
  0xd9   : > { %v795_v34 = vsel %vm792_vm2, %v786_v51, %v1327_v21  ;;  %v796_v15 = vsel %vm792_vm2, %v787_v31, %v1328_v33  ;;  %v801_v62 = vpack.c.bf16 %v794_v59, %v793_v61 }
  0xda   : > { %v802_v14 = vpack.c.bf16 %v796_v15, %v795_v34 }
  0xdb   : > { %1055 = vmatmul.msk.bf16.vlgmr.msra.gmra.mxu0 %vm824_vm4, %v801_v62 }
  0xdc   : > { %1056 = vmatmul.msk.bf16.vlgmr.msra.gmra.mxu1 %vm824_vm4, %v802_v14 }
 0x103   : > { %v1331_v8 = vpop.permute.xlu2 %1330 }
 0x104   : > { %v1332_v18 = vunpack.i.l.bf16 %v1331_v8  ;;  %v1333_v37 = vunpack.i.h.bf16 %v1331_v8 }
 0x10a   : > { %v1341_v55 = vpop.permute.xlu1 %1340 }
 0x10b   : > { %v1342_v0 = vunpack.i.l.bf16 %v1341_v55  ;;  %v1343_v41 = vunpack.i.h.bf16 %v1341_v55 }
 0x10e   : > { %v1346_v30 = vpop.permute.xlu2 %1345 }
 0x10f   : > { %v1347_v60 = vunpack.i.l.bf16 %v1346_v30  ;;  %v1348_v54 = vunpack.i.h.bf16 %v1346_v30 }
 0x127   : > { %v1336_v35 = vpop.permute.xlu0 %1335 }
 0x128   : > { %v1337_v63 = vunpack.i.l.bf16 %v1336_v35  ;;  %v1338_v3 = vunpack.i.h.bf16 %v1336_v35 }
 0x13e   : > { %v863_v11 = vpop.f32.mrf.mxu2 }
 0x13f   : > { %v868_v24 = vpop.f32.mrf.mxu3  ;;  %v864_v28 = vadd.f32 %v1351_v39, %v863_v11 }
 0x140   : > { %v869_v1 = vadd.f32 %v1351_v39, %v868_v24 }
 0x141   : > { %v954_v45 = vsel %vm949_vm6, %v864_v28, %v1342_v0 }
 0x142   : > { %v956_v53 = vsel %vm949_vm6, %v869_v1, %v1347_v60  ;;  %v962_v38 = vmax.f32 %v954_v45, 0.0 }
 0x143   : > { %v964_v29 = vmax.f32 %v956_v53, 0.0 }
 0x144   : > { %v970_v32 = vpack.c.bf16 %v962_v38, %v962_v38 }
 0x145   : > { %v972_v2 = vpack.c.bf16 %v964_v29, %v964_v29 }
 0x146   : > { %979 = vst.msk [vmem:[%s2002_s21 + $0x10] sm:$0xf] %vm974_vm7, %v970_v32  ;;  %v865_v20 = vpop.f32.mrf.mxu2 }
 0x147   : > { %981 = vst.msk [vmem:[%s2002_s21 + $0x18] sm:$0xf] %vm974_vm7, %v972_v2  ;;  %v870_v52 = vpop.f32.mrf.mxu3  ;;  %v866_v44 = vadd.f32 %v1351_v39, %v865_v20 }
 0x148   : > { %v871_v9 = vadd.f32 %v1351_v39, %v870_v52 }
 0x149   : > { %v955_v48 = vsel %vm949_vm6, %v866_v44, %v1343_v41 }
 0x14a   : > { %v957_v40 = vsel %vm949_vm6, %v871_v9, %v1348_v54  ;;  %v963_v43 = vmax.f32 %v955_v48, 0.0 }
 0x14b   : > { %v965_v58 = vmax.f32 %v957_v40, 0.0 }
 0x14c   : > { %v971_v50 = vpack.c.bf16 %v963_v43, %v963_v43 }
 0x14d   : > { %v973_v10 = vpack.c.bf16 %v965_v58, %v965_v58 }
 0x14e   : > { %980 = vst.msk [vmem:[%s2002_s21 + $0x14] sm:$0xf] %vm974_vm7, %v971_v50 }
 0x14f   : > { %982 = vst.msk [vmem:[%s2002_s21 + $0x1c] sm:$0xf] %vm974_vm7, %v973_v10 }
 0x158   : > { %v853_v4 = vpop.f32.mrf.mxu0 }
 0x159   : > { %v858_v19 = vpop.f32.mrf.mxu1  ;;  %v854_v26 = vadd.f32 %v1351_v39, %v853_v4 }
 0x15a   : > { %v859_v17 = vadd.f32 %v1351_v39, %v858_v19 }
 0x15b   : > { %v950_v46 = vsel %vm949_vm6, %v854_v26, %v1332_v18 }
 0x15c   : > { %v952_v27 = vsel %vm949_vm6, %v859_v17, %v1337_v63  ;;  %v958_v36 = vmax.f32 %v950_v46, 0.0 }
 0x15d   : > { %v960_v16 = vmax.f32 %v952_v27, 0.0 }
 0x15e   : > { %v966_v6 = vpack.c.bf16 %v958_v36, %v958_v36 }
 0x15f   : > { %v968_v57 = vpack.c.bf16 %v960_v16, %v960_v16 }
 0x160   : > { %975 = vst.msk [vmem:[%s2002_s21] sm:$0xf] %vm974_vm7, %v966_v6  ;;  %v855_v22 = vpop.f32.mrf.mxu0 }
 0x161   : > { %977 = vst.msk [vmem:[%s2002_s21 + $0x8] sm:$0xf] %vm974_vm7, %v968_v57  ;;  %v860_v13 = vpop.f32.mrf.mxu1  ;;  %v856_v7 = vadd.f32 %v1351_v39, %v855_v22 }
 0x162   : > { %v861_v56 = vadd.f32 %v1351_v39, %v860_v13 }
 0x163   : > { %v951_v49 = vsel %vm949_vm6, %v856_v7, %v1333_v37 }
 0x164   : > { %v953_v47 = vsel %vm949_vm6, %v861_v56, %v1338_v3  ;;  %v959_v33 = vmax.f32 %v951_v49, 0.0 }
 0x165   : > { %v961_v25 = vmax.f32 %v953_v47, 0.0 }
 0x166   : > { %v967_v51 = vpack.c.bf16 %v959_v33, %v959_v33 }
 0x167   : > { %v969_v21 = vpack.c.bf16 %v961_v25, %v961_v25 }
 0x168   : > { %976 = vst.msk [vmem:[%s2002_s21 + $0x4] sm:$0xf] %vm974_vm7, %v967_v51 }
 0x169   : > { %978 = vst.msk [vmem:[%s2002_s21 + $0xc] sm:$0xf] %vm974_vm7, %v969_v21 }
 0x16a PF: > { %s14_s15 = sadd.s32 1, %s1358_s15  }
 0x16b   : > { %p11_p4 = scmp.ge.s32.totalorder %s14_s15, 4  }
 0x16d   :  { %13 = sbr.rel (!%p11_p4) target bundleno = 1 (0x1), region = 66 }

// kernel: encoder_forward.8
= control target key start
LH: loop header
LB: loop body
LE: loop exit
PB: predicated region body
PF: predicated region fallthrough
CT: control target
= control target key end

     0   :  { %s946_s15 = smov 0   ;;  %s1138_s0 = inlined_call_operand.vmem [shape: bf16[2,4,4,64], index: 0, kind: input, shape index: {}]   ;;  %s1139_s1 = inlined_call_operand.vmem [shape: bf16[576,64], index: 1, kind: input, shape index: {}]   ;;  %s1140_s2 = inlined_call_operand.vmem [shape: f32[1,64], index: 2, kind: input, shape index: {}]   ;;  %s1141_s3 = inlined_call_operand.vmem [shape: f32[2,64], index: 3, kind: input, shape index: {}]   ;;  %s1142_s4 = inlined_call_operand.vmem [shape: bf16[2,4,128], index: 4, kind: output, shape index: {}]  }
   0x1 LB: > { %s703_s16 = sadd.s32 4294967295, %s918_s15   ;;  %p707_p0 = scmp.ge.s32.totalorder %s918_s15, 1  ;;  %s918_s15 = sphi %s946_s15, %s14_s15  }
   0x2   : > { %p162_p1 = scmp.lt.s32.totalorder %s918_s15, 3 }
   0x4   : > { %p163_p2 = pnand %p707_p0, %p162_p1 }
   0x5   : > { %p187_p3 = scmp.lt.s32.totalorder (!%p163_p2), %s703_s16, 1  ;;  %s920_s21 = smov (!%p163_p2), 64  }
   0x6   : > { %166 = sbr.rel (%p163_p2) target bundleno = 331 (0x14b), region = 36 }
   0xb   : > { %s1146_s16 = smov (!%p187_p3, %s703_s16), 1  ;;  %vm222_vm0 = vcmask 1041408   ;;  %v197_v8 = vlaneseq  ;;  %v866_v12 = vld [vmem:[%s1139_s1 + $0x38] sm:$0xff]  ;;  %v865_v15 = vld [vmem:[%s1139_s1 + $0x30] sm:$0xff]  ;;  %vm234_vm1 = vcmask 1040384   ;;  %v864_v24 = vld [vmem:[%s1139_s1 + $0x28] sm:$0xff] }
   0xc   : > { %s858_s17 = sshll.u32 %s1146_s16, 3  ;;  %v874_v13 = vld [vmem:[%s1139_s1 + $0x78] sm:$0xff]  ;;  %566 = vmatpush.bf16.msra.mxu0 %v866_v12  ;;  %v873_v17 = vld [vmem:[%s1139_s1 + $0x70] sm:$0xff]  ;;  %v872_v25 = vld [vmem:[%s1139_s1 + $0x68] sm:$0xff]  ;;  %vm211_vm3 = vcmask 1042432   ;;  %vm261_vm4 = vcmask 523264  }
   0xd   : > { %s960_s20 = scalar_lea.vmem %s1138_s0, %s858_s17  ;;  %v198_v11 = vshrl.u32 %v197_v8, 7  ;;  %v882_v16 = vld [vmem:[%s1139_s1 + $0xb8] sm:$0xff]  ;;  %579 = vmatpush.bf16.msra.mxu1 %v874_v13  ;;  %v881_v19 = vld [vmem:[%s1139_s1 + $0xb0] sm:$0xff]  ;;  %v880_v27 = vld [vmem:[%s1139_s1 + $0xa8] sm:$0xff]  ;;  %s710_s6 = sshll.u32 %s1146_s16, 1 }
   0xe   : > { %v202_v0 = vld [vmem:[%s960_s20 + $0x4] sm:$0x3]  ;;  %v203_v2 = vld [vmem:[%s960_s20 + $0x6] sm:$0x3]  ;;  %v201_v6 = vld [vmem:[%s960_s20 + $0x2] sm:$0x3]  ;;  %592 = vmatpush.bf16.msra.mxu2 %v882_v16  ;;  %s195_s9 = scalar_lea.vmem %s1142_s4, %s710_s6 }
   0xf   : > { %v963_v1 = vunpack.c.l.bf16 %v202_v0  ;;  %v967_v3 = vunpack.c.l.bf16 %v203_v2  ;;  %v973_v9 = vunpack.c.l.bf16 %v201_v6  ;;  %v199_v14 = vand.u32 1, %v198_v11  ;;  %v890_v18 = vld [vmem:[%s1139_s1 + $0xf8] sm:$0xff]  ;;  %v889_v21 = vld [vmem:[%s1139_s1 + $0xf0] sm:$0xff]  ;;  %v888_v29 = vld [vmem:[%s1139_s1 + $0xe8] sm:$0xff] }
  0x10   : > { %605 = vmatpush.bf16.msra.mxu3 %v890_v18  ;;  %567 = vmatpush.bf16.msra.mxu0 %v865_v15  ;;  %v863_v30 = vld [vmem:[%s1139_s1 + $0x20] sm:$0xff]  ;;  %v862_v33 = vld [vmem:[%s1139_s1 + $0x18] sm:$0xff]  ;;  %v861_v35 = vld [vmem:[%s1139_s1 + $0x10] sm:$0xff] }
  0x11   : > { %218 = vst [vmem:[#allocation1] ss:$2 sm:$0xff] %v963_v1  ;;  %vm1002_vm2 = vcmp.ge.s32.totalorder %v199_v14, 1  ;;  %580 = vmatpush.bf16.msra.mxu1 %v873_v17  ;;  %v871_v31 = vld [vmem:[%s1139_s1 + $0x60] sm:$0xff]  ;;  %v870_v34 = vld [vmem:[%s1139_s1 + $0x58] sm:$0xff]  ;;  %v860_v37 = vld [vmem:[%s1139_s1 + $0x8] sm:$0xff]  ;;  %v632_v6 = vmax.f32 %v963_v1, %v967_v3 }
  0x12   : > { %593 = vmatpush.bf16.msra.mxu2 %v881_v19  ;;  %v859_v40 = vld [vmem:[%s1139_s1] sm:$0xff]  ;;  %v869_v41 = vld [vmem:[%s1139_s1 + $0x50] sm:$0xff]  ;;  %v868_v44 = vld [vmem:[%s1139_s1 + $0x48] sm:$0xff]  ;;  %v209_v54 = vperm.slane %v967_v3, 0 }
  0x13   : > { %v879_v42 = vld [vmem:[%s1139_s1 + $0xa0] sm:$0xff]  ;;  %v878_v45 = vld [vmem:[%s1139_s1 + $0x98] sm:$0xff]  ;;  %v877_v49 = vld [vmem:[%s1139_s1 + $0x90] sm:$0xff] }
  0x14   : > { %606 = vmatpush.bf16.msra.mxu3 %v889_v21  ;;  %568 = vmatpush.bf16.msra.mxu0 %v864_v24  ;;  %v887_v43 = vld [vmem:[%s1139_s1 + $0xe0] sm:$0xff]  ;;  %v886_v46 = vld [vmem:[%s1139_s1 + $0xd8] sm:$0xff]  ;;  %v885_v50 = vld [vmem:[%s1139_s1 + $0xd0] sm:$0xff]  ;;  %v212_v55 = vsel %vm211_vm3, 0.0, %v209_v54 }
  0x15   : > { %581 = vmatpush.bf16.msra.mxu1 %v872_v25  ;;  %v894_v47 = vld [vmem:[%s1139_s1 + $0x118] sm:$0xff]  ;;  %v867_v48 = vld [vmem:[%s1139_s1 + $0x40] sm:$0xff]  ;;  %v893_v51 = vld [vmem:[%s1139_s1 + $0x110] sm:$0xff]  ;;  %v216_v56 = vsel %vm1002_vm2, %v212_v55, 0.0 }
  0x16   : > { %594 = vmatpush.bf16.msra.mxu2 %v880_v27  ;;  %v876_v52 = vld [vmem:[%s1139_s1 + $0x88] sm:$0xff]  ;;  %v200_v61 = vld [vmem:[%s960_s20] sm:$0x3] }
  0x17   : > { %v884_v53 = vld [vmem:[%s1139_s1 + $0xc8] sm:$0xff]  ;;  %v875_v62 = vld [vmem:[%s1139_s1 + $0x80] sm:$0xff] }
  0x18   : > { %v219_v4 = vld.sshfl [vmem:[#allocation1] sm:$0xff pattern:$0x75316420]  ;;  %607 = vmatpush.bf16.msra.mxu3 %v888_v29  ;;  %569 = vmatpush.bf16.msra.mxu0 %v863_v30  ;;  %v892_v60 = vld [vmem:[%s1139_s1 + $0x108] sm:$0xff] }
  0x19   : > { %v220_v5 = vrot.slane %v219_v4, 6  ;;  %224 = vst [vmem:[#allocation1] ss:$2 sm:$0xff] %v967_v3  ;;  %582 = vmatpush.bf16.msra.mxu1 %v871_v31  ;;  %v883_v63 = vld [vmem:[%s1139_s1 + $0xc0] sm:$0xff]  ;;  %v204_v4 = vunpack.c.l.bf16 %v200_v61 }
  0x1a   : > { %595 = vmatpush.bf16.msra.mxu2 %v879_v42  ;;  %v891_v0 = vld [vmem:[%s1139_s1 + $0x100] sm:$0xff] }
  0x1b   : > { %v223_v7 = vsel %vm222_vm0, 0.0, %v220_v5  ;;  %v631_v5 = vmax.f32 %v204_v4, %v973_v9  ;;  %v910_v12 = vld [vmem:[%s1141_s3 + $0x1] ss:$0 sm:$0xff]  ;;  %v911_v22 = vld [vmem:[%s1140_s2] ss:$0 sm:$0xff] }
  0x1c   : > { %244 = vrot.lane.b32.xlu0 %v223_v7, %s920_s21  ;;  %570 = vmatpush.bf16.msra.mxu0 %v862_v33  ;;  %v909_v7 = vld [vmem:[%s1141_s3] ss:$0 sm:$0xff] }
  0x1d   : > { %583 = vmatpush.bf16.msra.mxu1 %v870_v34  ;;  %608 = vmatpush.bf16.msra.mxu3 %v887_v43  ;;  %v633_v11 = vmax.f32 %v631_v5, %v632_v6 }
  0x1e   : > { %596 = vmatpush.bf16.msra.mxu2 %v878_v45 }
  0x1f   : > { %v636_v14 = vmul.f32 %v909_v7, %v633_v11 }
  0x20   : > { %v975_v10 = vld.sshfl [vmem:[#allocation1] sm:$0xff pattern:$0x75316420]  ;;  %571 = vmatpush.bf16.msra.mxu0 %v861_v35 }
  0x21   : > { %230 = vst [vmem:[#allocation1] ss:$2 sm:$0xff] %v973_v9  ;;  %584 = vmatpush.bf16.msra.mxu1 %v869_v41  ;;  %609 = vmatpush.bf16.msra.mxu3 %v886_v46  ;;  %v226_v2 = vrot.slane %v975_v10, 6  ;;  %v270_v10 = vpack.c.bf16 %v967_v3, %v967_v3 }
  0x22   : > { %597 = vmatpush.bf16.msra.mxu2 %v877_v49 }
  0x23   : > { %v228_v8 = vsel %vm222_vm0, 0.0, %v226_v2 }
  0x24   : > { %572 = vmatpush.bf16.msra.mxu0 %v860_v37 }
  0x25   : > { %585 = vmatpush.bf16.msra.mxu1 %v868_v44  ;;  %610 = vmatpush.bf16.msra.mxu3 %v885_v50 }
  0x26   : > { %598 = vmatpush.bf16.msra.mxu2 %v876_v52 }
  0x28   : > { %v231_v20 = vld.sshfl [vmem:[#allocation1] sm:$0xff pattern:$0x75316420]  ;;  %573 = vmatpush.bf16.msra.mxu0 %v859_v40 }
  0x29   : > { %v232_v23 = vrot.slane %v231_v20, 7  ;;  %237 = vst [vmem:[#allocation1] ss:$2 sm:$0xff] %v967_v3  ;;  %586 = vmatpush.bf16.msra.mxu1 %v867_v48  ;;  %611 = vmatpush.bf16.msra.mxu3 %v884_v53 }
  0x2a   : > { %599 = vmatpush.bf16.msra.mxu2 %v875_v62 }
  0x2b   : > { %v235_v26 = vsel %vm234_vm1, 0.0, %v232_v23 }
  0x2c   : > { %v236_v28 = vsel %vm1002_vm2, %v235_v26, 0.0  ;;  %622 = vmatpush.bf16.msrb.mxu0 %v894_v47 }
  0x2d   : > { %248 = vrot.lane.b32.xlu1 %v236_v28, %s920_s21  ;;  %612 = vmatpush.bf16.msra.mxu3 %v883_v63 }
  0x30   : > { %v1029_v32 = vld.sshfl [vmem:[#allocation1] sm:$0xff pattern:$0x75316420]  ;;  %623 = vmatpush.bf16.msrb.mxu0 %v893_v51 }
  0x31   : > { %251 = vst [vmem:[#allocation1] ss:$2 sm:$0xff] %v973_v9  ;;  %v239_v17 = vrot.slane %v1029_v32, 7 }
  0x33   : > { %v241_v18 = vsel %vm234_vm1, 0.0, %v239_v17 }
  0x34   : > { %624 = vmatpush.bf16.msrb.mxu0 %v892_v60  ;;  %v242_v3 = vsel %vm1002_vm2, %v241_v18, 0.0 }
  0x38   : > { %v252_v36 = vld.sshfl [vmem:[#allocation1] sm:$0xff pattern:$0x75316420]  ;;  %625 = vmatpush.bf16.msrb.mxu0 %v891_v0 }
  0x39   : > { %256 = vst [vmem:[#allocation1] ss:$2 sm:$0xff] %v963_v1  ;;  %v639_v1 = vadd.f32 %v910_v12, %v636_v14 }
  0x40   : > { %v257_v38 = vld.sshfl [vmem:[#allocation1] sm:$0xff pattern:$0x75316420] }
  0x41   : > { %v904_v39 = vpack.i.bf16 %v257_v38, %v252_v36  ;;  %641 = vst [vmem:[#allocation1] ss:$2 sm:$0xff] %v639_v1 }
  0x43   : > { %905 = vrot.lane.b32.xlu0 %v904_v39, %s920_s21 }
  0x48   : > { %v642_v16 = vld.sshfl [vmem:[#allocation1] sm:$0xff pattern:$0x75316420] }
  0x49   : > { %643 = vrot.lane.b32.xlu1 %v642_v16, %s920_s21 }
  0x8e   : > { %v245_v57 = vpop.permute.xlu0 %244 }
  0x8f   : > { %v262_v58 = vsel %vm261_vm4, %v216_v56, %v245_v57 }
  0x90   : > { %v266_v59 = vpack.c.bf16 %v262_v58, %v262_v58 }
  0x92   : > { %574 = vmatmul.bf16.vlgmr.msra.gmra.mxu0 %v266_v59 }
  0x9f   : > { %v249_v13 = vpop.permute.xlu1 %248 }
  0xa0   : > { %v263_v9 = vsel %vm261_vm4, %v228_v8, %v249_v13 }
  0xa1   : > { %v267_v15 = vpack.c.bf16 %v263_v9, %v263_v9 }
  0xa2   : > { %855 = vmatmul.msk.bf16.vlgmr.msrb.gmra.mxu0 %vm261_vm4, %v270_v10 }
  0xa3   : > { %587 = vmatmul.bf16.vlgmr.msra.gmra.mxu1 %v267_v15 }
  0xb5   : > { %v906_v19 = vpop.permute.xlu0 %905 }
  0xb6   : > { %v908_v20 = vunpack.i.h.bf16 %v906_v19  ;;  %v907_v21 = vunpack.i.l.bf16 %v906_v19 }
  0xb8   : > { %v264_v23 = vsel %vm261_vm4, %v204_v4, %v907_v21  ;;  %v265_v24 = vsel %vm261_vm4, %v242_v3, %v908_v20 }
  0xb9   : > { %v268_v25 = vpack.c.bf16 %v264_v23, %v264_v23  ;;  %v269_v26 = vpack.c.bf16 %v265_v24, %v265_v24 }
  0xbb   : > { %600 = vmatmul.bf16.vlgmr.msra.gmra.mxu2 %v268_v25  ;;  %613 = vmatmul.bf16.vlgmr.msra.gmra.mxu3 %v269_v26  ;;  %v644_v39 = vpop.permute.xlu1 %643 }
 0x10f   : > { %v575_v27 = vpop.f32.mrf.mxu0 }
 0x110   : > { %v576_v33 = vadd.f32 %v911_v22, %v575_v27 }
 0x117   : > { %v577_v28 = vpop.f32.mrf.mxu0 }
 0x11f   : > { %v627_v29 = vpop.f32.mrf.mxu0 }
 0x120   : > { %v588_v30 = vpop.f32.mrf.mxu1 }
 0x121   : > { %v589_v34 = vadd.f32 %v588_v30, %v576_v33 }
 0x127   : > { %v629_v31 = vpop.f32.mrf.mxu0 }
 0x128   : > { %v590_v32 = vpop.f32.mrf.mxu1 }
 0x13e   : > { %v601_v35 = vpop.f32.mrf.mxu2  ;;  %v614_v36 = vpop.f32.mrf.mxu3 }
 0x13f   : > { %v602_v37 = vadd.f32 %v601_v35, %v589_v34 }
 0x141   : > { %v615_v38 = vadd.f32 %v614_v36, %v602_v37 }
 0x143   : > { %v628_v40 = vadd.f32 %v627_v29, %v615_v38 }
 0x145   : > { %v646_v41 = vsel %vm261_vm4, %v628_v40, %v644_v39 }
 0x146   : > { %v647_v42 = vmax.f32 %v646_v41, 0.0  ;;  %v603_v43 = vpop.f32.mrf.mxu2  ;;  %v616_v44 = vpop.f32.mrf.mxu3 }
 0x148   : > { %v648_v45 = vpack.c.bf16 %v647_v42, %v647_v42 }
 0x14a   : > { %649 = vst [vmem:[%s195_s9] sm:$0x3] %v648_v45 }
 0x14b PF: > { %s14_s15 = sadd.s32 1, %s918_s15  }
 0x14c   : > { %p11_p4 = scmp.ge.s32.totalorder %s14_s15, 4  }
 0x14e   :  { %13 = sbr.rel (!%p11_p4) target bundleno = 1 (0x1), region = 66 }

// kernel: encoder_forward.7
= control target key start
LH: loop header
LB: loop body
LE: loop exit
PB: predicated region body
PF: predicated region fallthrough
CT: control target
= control target key end

     0   :  { %s2399_s21 = smov 0   ;;  %s2917_s0 = inlined_call_operand.vmem [shape: bf16[2,16,64], index: 0, kind: input, shape index: {}]   ;;  %s2918_s1 = inlined_call_operand.vmem [shape: bf16[2,3,64,64], index: 1, kind: input, shape index: {}]   ;;  %s2919_s2 = inlined_call_operand.vmem [shape: bf16[2,3,64,64], index: 2, kind: input, shape index: {}]   ;;  %s2920_s3 = inlined_call_operand.vmem [shape: bf16[2,3,64,64], index: 3, kind: input, shape index: {}]   ;;  %s2921_s4 = inlined_call_operand.vmem [shape: bf16[2,3,64,64], index: 4, kind: input, shape index: {}]   ;;  %s2922_s5 = inlined_call_operand.vmem [shape: f32[2,4,64], index: 5, kind: input, shape index: {}]   ;;  %s2923_s6 = inlined_call_operand.vmem [shape: bf16[2,16,64], index: 6, kind: output, shape index: {}]  }
   0x1 LB: > { %s1729_s22 = sadd.s32 4294967295, %s2362_s21   ;;  %p1733_p0 = scmp.ge.s32.totalorder %s2362_s21, 1  ;;  %s2362_s21 = sphi %s2399_s21, %s16_s21  }
   0x2   : > { %p212_p1 = scmp.lt.s32.totalorder %s2362_s21, 3 }
   0x4   : > { %p213_p2 = pnand %p1733_p0, %p212_p1 }
   0x5   : > { %p242_p3 = scmp.lt.s32.totalorder (!%p213_p2), %s1729_s22, 1 }
   0x6   : > { %216 = sbr.rel (%p213_p2) target bundleno = 1252 (0x4e4), region = 44 }
   0xb   : > { %v2259_v0 = vld [vmem:[%s2918_s1 + $0x38] sm:$0xff]  ;;  %v253_v3 = vlaneseq  ;;  %v2258_v4 = vld [vmem:[%s2918_s1 + $0x30] sm:$0xff]  ;;  %s2933_s22 = smov (!%p242_p3, %s1729_s22), 1  ;;  %v2257_v9 = vld [vmem:[%s2918_s1 + $0x28] sm:$0xff]  ;;  %vm402_vm3 = vcmask 523264   ;;  %vm1671_vm12 = vcmask 519168  }
   0xc   : > { %v2255_v1 = vld [vmem:[%s2918_s1 + $0x18] sm:$0xff]  ;;  %410 = vmatpush.bf16.msra.mxu0 %v2259_v0  ;;  %v2254_v5 = vld [vmem:[%s2918_s1 + $0x10] sm:$0xff]  ;;  %s2249_s11 = sshll.u32 %s2933_s22, 3  ;;  %v2253_v10 = vld [vmem:[%s2918_s1 + $0x8] sm:$0xff] }
   0xd   : > { %v2263_v2 = vld [vmem:[%s2918_s1 + $0x58] sm:$0xff]  ;;  %451 = vmatpush.bf16.msra.mxu1 %v2255_v1  ;;  %v2424_v6 = vshrl.u32 %v253_v3, 7  ;;  %v2262_v7 = vld [vmem:[%s2918_s1 + $0x50] sm:$0xff]  ;;  %s246_s14 = scalar_lea.vmem %s2917_s0, %s2249_s11  ;;  %v2261_v12 = vld [vmem:[%s2918_s1 + $0x48] sm:$0xff]  ;;  %s251_s12 = scalar_lea.vmem %s2923_s6, %s2249_s11 }
   0xe   : > { %501 = vmatpush.bf16.msra.mxu2 %v2263_v2  ;;  %v2444_v11 = vld [vmem:[%s246_s14] sm:$0xff]   ;;  %v2271_v27 = vld [vmem:[%s2919_s2 + $0x38] sm:$0xff]  ;;  %v2270_v28 = vld [vmem:[%s2919_s2 + $0x30] sm:$0xff] }
   0xf   : > { %v2436_v8 = vadd.s32 8, %v2424_v6  ;;  %v260_v13 = vunpack.c.l.bf16 %v2444_v11  ;;  %v261_v14 = vunpack.c.h.bf16 %v2444_v11  ;;  %vm361_vm0 = vcmp.lt.s32.totalorder %v2424_v6, 4  ;;  %v2256_v17 = vld [vmem:[%s2918_s1 + $0x20] sm:$0xff]  ;;  %574 = vmatpush.bf16.msra.mxu3 %v2271_v27  ;;  %v2267_v29 = vld [vmem:[%s2919_s2 + $0x18] sm:$0xff]  ;;  %v2269_v31 = vld [vmem:[%s2919_s2 + $0x28] sm:$0xff] }
  0x10   : > { %411 = vmatpush.bf16.msra.mxu0 %v2258_v4  ;;  %vm364_vm1 = vcmp.ge.s32.totalorder %v2424_v6, 4  ;;  %v2252_v18 = vld [vmem:[%s2918_s1] sm:$0xff]  ;;  %v2275_v30 = vld [vmem:[%s2919_s2 + $0x58] sm:$0xff]  ;;  %v2266_v32 = vld [vmem:[%s2919_s2 + $0x10] sm:$0xff]  ;;  %v256_v54 = vand.u32 3, %v2424_v6  ;;  %vm524_vm5 = vcmp.lt.s32.totalorder %v2424_v6, 1 }
  0x11   : > { %452 = vmatpush.bf16.msra.mxu1 %v2254_v5  ;;  %v359_v15 = vrot.slane %v260_v13, 4  ;;  %v360_v16 = vrot.slane %v261_v14, 4  ;;  %vm462_vm2 = vcmp.lt.s32.totalorder %v2436_v8, 12  ;;  %v2260_v19 = vld [vmem:[%s2918_s1 + $0x40] sm:$0xff]  ;;  %v2274_v33 = vld [vmem:[%s2919_s2 + $0x50] sm:$0xff]  ;;  %v2265_v35 = vld [vmem:[%s2919_s2 + $0x8] sm:$0xff] }
  0x12   : > { %502 = vmatpush.bf16.msra.mxu2 %v2262_v7  ;;  %v2251_v24 = vld [vmem:[%s246_s14] sm:$0xff]  ;;  %v2273_v36 = vld [vmem:[%s2919_s2 + $0x48] sm:$0xff]  ;;  %v257_v52 = vand.u32 3, %v2436_v8  ;;  %vm627_vm6 = vcmp.lt.s32.totalorder %v2424_v6, 7  ;;  %vm527_vm7 = vcmp.ge.s32.totalorder %v2424_v6, 1  ;;  %vm2529_vm8 = vcmp.lt.s32.totalorder %v256_v54, 3 }
  0x13   : > { %v362_v20 = vsel %vm361_vm0, %v359_v15, %v360_v16  ;;  %v363_v21 = vsel %vm361_vm0, %v360_v16, %v359_v15  ;;  %575 = vmatpush.bf16.msra.mxu3 %v2270_v28  ;;  %v2268_v34 = vld [vmem:[%s2919_s2 + $0x20] sm:$0xff]  ;;  %vm631_vm9 = vcmp.lt.s32.totalorder %v2436_v8, 15  ;;  %vm2534_vm10 = vcmp.ge.s32.totalorder %v256_v54, 1  ;;  %v2285_v28 = vld [vmem:[%s2920_s3 + $0x48] sm:$0xff] }
  0x14   : > { %412 = vmatpush.bf16.msra.mxu0 %v2257_v9  ;;  %v370_v22 = vsel %vm364_vm1, %v363_v21, 0.0  ;;  %v468_v23 = vsel %vm462_vm2, %v363_v21, 0.0  ;;  %v2264_v37 = vld [vmem:[%s2919_s2] sm:$0xff]  ;;  %vm2522_vm4 = vcmp.ge.s32.totalorder %v257_v52, 1  ;;  %vm2538_vm11 = vcmp.lt.s32.totalorder %v257_v52, 3  ;;  %v2282_v21 = vld [vmem:[%s2920_s3 + $0x30] sm:$0xff] }
  0x15   : > { %453 = vmatpush.bf16.msra.mxu1 %v2253_v10  ;;  %v372_v25 = vpack.c.bf16 %v362_v20, %v370_v22  ;;  %v469_v26 = vpack.c.bf16 %v468_v23, %v362_v20  ;;  %v2272_v38 = vld [vmem:[%s2919_s2 + $0x40] sm:$0xff]  ;;  %v2279_v20 = vld [vmem:[%s2920_s3 + $0x18] sm:$0xff]  ;;  %v2278_v23 = vld [vmem:[%s2920_s3 + $0x10] sm:$0xff] }
  0x16   : > { %503 = vmatpush.bf16.msra.mxu2 %v2261_v12  ;;  %v2517_v42 = vld [vmem:[%s2922_s5] sm:$0xf]  ;;  %v2287_v22 = vld [vmem:[%s2920_s3 + $0x58] sm:$0xff] }
  0x17   : > { %576 = vmatpush.bf16.msra.mxu3 %v2269_v31  ;;  %v513_v45 = vperm.slane %v2517_v42, 0  ;;  %v2280_v27 = vld [vmem:[%s2920_s3 + $0x20] sm:$0xff] }
  0x18   : > { %413 = vmatpush.bf16.msra.mxu0 %v2256_v17 }
  0x19   : > { %454 = vmatpush.bf16.msra.mxu1 %v2252_v18 }
  0x1a   : > { %504 = vmatpush.bf16.msra.mxu2 %v2260_v19  ;;  %v2283_v19 = vld [vmem:[%s2920_s3 + $0x38] sm:$0xff] }
  0x1b   : > { %1758 = vmatmul.msk.bf16.vlgmr.msra.gmra.mxu0 %vm402_vm3, %v2251_v24  ;;  %577 = vmatpush.bf16.msra.mxu3 %v2268_v34  ;;  %v2281_v24 = vld [vmem:[%s2920_s3 + $0x28] sm:$0xff] }
  0x1c   : > { %1775 = vmatmul.msk.bf16.vlgmr.msra.gmra.mxu1 %vm402_vm3, %v372_v25  ;;  %615 = vmatpush.bf16.msrb.mxu0 %v2267_v29  ;;  %v2286_v25 = vld [vmem:[%s2920_s3 + $0x50] sm:$0xff]  ;;  %v2276_v29 = vld [vmem:[%s2920_s3] sm:$0xff] }
  0x1d   : > { %1792 = vmatmul.msk.bf16.vlgmr.msra.gmra.mxu2 %vm402_vm3, %v469_v26  ;;  %676 = vmatpush.bf16.msrb.mxu1 %v2275_v30  ;;  %v2277_v26 = vld [vmem:[%s2920_s3 + $0x8] sm:$0xff]  ;;  %v2284_v30 = vld [vmem:[%s2920_s3 + $0x40] sm:$0xff] }
  0x1e   : > { %732 = vmatpush.bf16.msrb.mxu2 %v2283_v19 }
  0x1f   : > { %773 = vmatpush.bf16.msrb.mxu3 %v2279_v20 }
  0x20   : > { %616 = vmatpush.bf16.msrb.mxu0 %v2266_v32 }
  0x21   : > { %677 = vmatpush.bf16.msrb.mxu1 %v2274_v33 }
  0x22   : > { %733 = vmatpush.bf16.msrb.mxu2 %v2282_v21 }
  0x23   : > { %774 = vmatpush.bf16.msrb.mxu3 %v2278_v23 }
  0x24   : > { %617 = vmatpush.bf16.msrb.mxu0 %v2265_v35 }
  0x25   : > { %678 = vmatpush.bf16.msrb.mxu1 %v2273_v36  ;;  %v688_v36 = vperm.slane %v2517_v42, 1 }
  0x26   : > { %734 = vmatpush.bf16.msrb.mxu2 %v2281_v24 }
  0x27   : > { %775 = vmatpush.bf16.msrb.mxu3 %v2277_v26 }
  0x28   : > { %618 = vmatpush.bf16.msrb.mxu0 %v2264_v37 }
  0x29   : > { %679 = vmatpush.bf16.msrb.mxu1 %v2272_v38 }
  0x2a   : > { %735 = vmatpush.bf16.msrb.mxu2 %v2280_v27 }
  0x2b   : > { %776 = vmatpush.bf16.msrb.mxu3 %v2276_v29 }
  0x2c   : > { %817 = vmatpush.bf16.msra.mxu0 %v2287_v22 }
  0x30   : > { %818 = vmatpush.bf16.msra.mxu0 %v2286_v25 }
  0x34   : > { %819 = vmatpush.bf16.msra.mxu0 %v2285_v28 }
  0x38   : > { %820 = vmatpush.bf16.msra.mxu0 %v2284_v30 }
  0x98   : > { %v415_v39 = vpop.f32.mrf.mxu0 }
  0x99   : > { %v456_v40 = vpop.f32.mrf.mxu1 }
  0x9a   : > { %v457_v41 = vadd.f32 %v456_v40, %v415_v39 }
  0xa0   : > { %v506_v43 = vpop.f32.mrf.mxu2  ;;  %v417_v46 = vpop.f32.mrf.mxu0 }
  0xa1   : > { %v511_v44 = vadd.f32 %v506_v43, %v457_v41  ;;  %v458_v47 = vpop.f32.mrf.mxu1 }
  0xa2   : > { %v459_v49 = vadd.f32 %v458_v47, %v417_v46 }
  0xa3   : > { %v514_v48 = vadd.f32 %v513_v45, %v511_v44 }
  0xa5   : > { %v516_v53 = vmax.f32 %v514_v48, 0.0 }
  0xa7   : > { %v522_v58 = vrot.slane %v516_v53, 7  ;;  %v625_v60 = vrot.slane %v516_v53, 1 }
  0xa8   : > { %v508_v50 = vpop.f32.mrf.mxu2 }
  0xa9   : > { %v512_v51 = vadd.f32 %v508_v50, %v459_v49 }
  0xab   : > { %v515_v55 = vadd.f32 %v513_v45, %v512_v51 }
  0xad   : > { %v517_v56 = vmax.f32 %v515_v55, 0.0 }
  0xaf   : > { %v523_v61 = vrot.slane %v517_v56, 7  ;;  %v626_v62 = vrot.slane %v517_v56, 1  ;;  %v542_v63 = vpack.c.bf16 %v517_v56, %v516_v53  ;;  %v2295_v56 = vld [vmem:[%s2921_s4 + $0x38] sm:$0xff] }
  0xb0   : > { %875 = vmatpush.bf16.msra.mxu1 %v2295_v56  ;;  %v2308_v56 = vld [vmem:[%s2918_s1 + $0xa0] sm:$0xff] }
  0xb1   : > { %1809 = vmatmul.msk.bf16.vlgmr.msra.gmra.mxu3 %vm402_vm3, %v542_v63  ;;  %v525_v2 = vsel %vm524_vm5, %v522_v58, %v523_v61  ;;  %v526_v3 = vsel %vm524_vm5, %v523_v61, %v522_v58  ;;  %v628_v4 = vsel %vm627_vm6, %v625_v60, %v626_v62  ;;  %v629_v5 = vsel %vm627_vm6, %v626_v62, %v625_v60  ;;  %v2294_v58 = vld [vmem:[%s2921_s4 + $0x30] sm:$0xff]  ;;  %v2291_v60 = vld [vmem:[%s2921_s4 + $0x18] sm:$0xff]  ;;  %v2293_v62 = vld [vmem:[%s2921_s4 + $0x28] sm:$0xff] }
  0xb2   : > { %v533_v7 = vsel %vm527_vm7, %v526_v3, 0.0  ;;  %v540_v9 = vsel %vm2522_vm4, %v525_v2, 0.0  ;;  %v637_v10 = vsel %vm631_vm9, %v629_v5, 0.0  ;;  %v642_v12 = vsel %vm2529_vm8, %v628_v4, 0.0  ;;  %v2299_v61 = vld [vmem:[%s2921_s4 + $0x58] sm:$0xff]  ;;  %916 = vmatpush.bf16.msra.mxu2 %v2291_v60  ;;  %v2290_v63 = vld [vmem:[%s2921_s4 + $0x10] sm:$0xff] }
  0xb3   : > { %v539_v15 = vsel %vm2534_vm10, %v533_v7, 0.0  ;;  %v643_v16 = vsel %vm2538_vm11, %v637_v10, 0.0  ;;  %966 = vmatpush.bf16.msra.mxu3 %v2299_v61  ;;  %v2298_v2 = vld [vmem:[%s2921_s4 + $0x50] sm:$0xff]  ;;  %v2292_v3 = vld [vmem:[%s2921_s4 + $0x20] sm:$0xff]  ;;  %v2289_v4 = vld [vmem:[%s2921_s4 + $0x8] sm:$0xff] }
  0xb4   : > { %v541_v17 = vpack.c.bf16 %v540_v9, %v539_v15  ;;  %v644_v18 = vpack.c.bf16 %v643_v16, %v642_v12  ;;  %876 = vmatpush.bf16.msra.mxu1 %v2294_v58  ;;  %v2297_v5 = vld [vmem:[%s2921_s4 + $0x48] sm:$0xff]  ;;  %v2288_v7 = vld [vmem:[%s2921_s4] sm:$0xff] }
  0xb5   : > { %v2296_v9 = vld [vmem:[%s2921_s4 + $0x40] sm:$0xff] }
  0xb6   : > { %1826 = vmatmul.msk.bf16.vlgmr.msrb.gmra.mxu0 %vm402_vm3, %v541_v17  ;;  %1843 = vmatmul.msk.bf16.vlgmr.msrb.gmra.mxu1 %vm402_vm3, %v644_v18  ;;  %v829_v18 = vperm.slane %v2517_v42, 2  ;;  %v2300_v58 = vld [vmem:[%s2918_s1 + $0x60] sm:$0xff] }
  0xb7   : > { %917 = vmatpush.bf16.msra.mxu2 %v2290_v63  ;;  %967 = vmatpush.bf16.msra.mxu3 %v2298_v2 }
  0xb8   : > { %877 = vmatpush.bf16.msra.mxu1 %v2293_v62 }
  0xbb   : > { %918 = vmatpush.bf16.msra.mxu2 %v2289_v4  ;;  %968 = vmatpush.bf16.msra.mxu3 %v2297_v5 }
  0xbc   : > { %878 = vmatpush.bf16.msra.mxu1 %v2292_v3  ;;  %v978_v3 = vperm.slane %v2517_v42, 3 }
  0xbf   : > { %919 = vmatpush.bf16.msra.mxu2 %v2288_v7  ;;  %969 = vmatpush.bf16.msra.mxu3 %v2296_v9 }
 0x133   : > { %v620_v31 = vpop.f32.mrf.mxu0  ;;  %v681_v32 = vpop.f32.mrf.mxu1 }
 0x134   : > { %v579_v33 = vpop.f32.mrf.mxu3 }
 0x135   : > { %v621_v34 = vadd.f32 %v620_v31, %v579_v33 }
 0x137   : > { %v686_v35 = vadd.f32 %v681_v32, %v621_v34 }
 0x139   : > { %v689_v39 = vadd.f32 %v688_v36, %v686_v35 }
 0x13b   : > { %v622_v37 = vpop.f32.mrf.mxu0  ;;  %v683_v41 = vpop.f32.mrf.mxu1  ;;  %v691_v44 = vmax.f32 %v689_v39, 0.0 }
 0x13c   : > { %v581_v38 = vpop.f32.mrf.mxu3 }
 0x13d   : > { %v623_v40 = vadd.f32 %v622_v37, %v581_v38  ;;  %v693_v47 = vrot.slane %v691_v44, 4 }
 0x13f   : > { %v687_v43 = vadd.f32 %v683_v41, %v623_v40 }
 0x141   : > { %v690_v45 = vadd.f32 %v688_v36, %v687_v43 }
 0x143   : > { %v692_v46 = vmax.f32 %v690_v45, 0.0 }
 0x145   : > { %v694_v48 = vrot.slane %v692_v46, 4  ;;  %v700_v49 = vpack.c.bf16 %v692_v46, %v691_v44  ;;  %v2307_v46 = vld [vmem:[%s2918_s1 + $0x98] sm:$0xff] }
 0x146   : > { %1126 = vmatpush.bf16.msrb.mxu0 %v2307_v46 }
 0x147   : > { %1860 = vmatmul.msk.bf16.vlgmr.msrb.gmra.mxu2 %vm402_vm3, %v700_v49  ;;  %v695_v50 = vsel %vm361_vm0, %v693_v47, %v694_v48  ;;  %v696_v51 = vsel %vm361_vm0, %v694_v48, %v693_v47  ;;  %v2311_v47 = vld [vmem:[%s2918_s1 + $0xb8] sm:$0xff]  ;;  %v2306_v48 = vld [vmem:[%s2918_s1 + $0x90] sm:$0xff] }
 0x148   : > { %v697_v52 = vsel %vm364_vm1, %v696_v51, 0.0  ;;  %v784_v53 = vsel %vm462_vm2, %v696_v51, 0.0  ;;  %v2303_v49 = vld [vmem:[%s2918_s1 + $0x78] sm:$0xff]  ;;  %1211 = vmatpush.bf16.msrb.mxu2 %v2311_v47  ;;  %v2305_v51 = vld [vmem:[%s2918_s1 + $0x88] sm:$0xff] }
 0x149   : > { %v699_v54 = vpack.c.bf16 %v695_v50, %v697_v52  ;;  %v785_v55 = vpack.c.bf16 %v784_v53, %v695_v50  ;;  %1167 = vmatpush.bf16.msrb.mxu1 %v2303_v49  ;;  %v2310_v50 = vld [vmem:[%s2918_s1 + $0xb0] sm:$0xff]  ;;  %v2309_v53 = vld [vmem:[%s2918_s1 + $0xa8] sm:$0xff] }
 0x14a   : > { %1127 = vmatpush.bf16.msrb.mxu0 %v2306_v48  ;;  %v2302_v52 = vld [vmem:[%s2918_s1 + $0x70] sm:$0xff] }
 0x14b   : > { %1877 = vmatmul.msk.bf16.vlgmr.msrb.gmra.mxu3 %vm402_vm3, %v699_v54  ;;  %1894 = vmatmul.msk.bf16.vlgmr.msra.gmra.mxu0 %vm402_vm3, %v785_v55  ;;  %v2304_v54 = vld [vmem:[%s2918_s1 + $0x80] sm:$0xff]  ;;  %v2301_v55 = vld [vmem:[%s2918_s1 + $0x68] sm:$0xff] }
 0x14c   : > { %1212 = vmatpush.bf16.msrb.mxu2 %v2310_v50 }
 0x14d   : > { %1168 = vmatpush.bf16.msrb.mxu1 %v2302_v52 }
 0x14e   : > { %1128 = vmatpush.bf16.msrb.mxu0 %v2305_v51 }
 0x150   : > { %1213 = vmatpush.bf16.msrb.mxu2 %v2309_v53 }
 0x151   : > { %1169 = vmatpush.bf16.msrb.mxu1 %v2301_v55 }
 0x152   : > { %1129 = vmatpush.bf16.msrb.mxu0 %v2304_v54 }
 0x154   : > { %1214 = vmatpush.bf16.msrb.mxu2 %v2308_v56 }
 0x155   : > { %1170 = vmatpush.bf16.msrb.mxu1 %v2300_v58 }
 0x1c8   : > { %v822_v12 = vpop.f32.mrf.mxu0 }
 0x1ca   : > { %v737_v10 = vpop.f32.mrf.mxu2 }
 0x1ce   : > { %v778_v15 = vpop.f32.mrf.mxu3 }
 0x1cf   : > { %v779_v16 = vadd.f32 %v778_v15, %v737_v10 }
 0x1d0   : > { %v824_v23 = vpop.f32.mrf.mxu0 }
 0x1d1   : > { %v827_v17 = vadd.f32 %v822_v12, %v779_v16 }
 0x1d2   : > { %v739_v20 = vpop.f32.mrf.mxu2 }
 0x1d3   : > { %v830_v19 = vadd.f32 %v829_v18, %v827_v17 }
 0x1d5   : > { %v832_v25 = vmax.f32 %v830_v19, 0.0 }
 0x1d6   : > { %v780_v21 = vpop.f32.mrf.mxu3 }
 0x1d7   : > { %v781_v22 = vadd.f32 %v780_v21, %v739_v20  ;;  %v834_v28 = vrot.slane %v832_v25, 7  ;;  %v926_v29 = vrot.slane %v832_v25, 1 }
 0x1d9   : > { %v828_v24 = vadd.f32 %v824_v23, %v781_v22 }
 0x1db   : > { %v831_v26 = vadd.f32 %v829_v18, %v828_v24 }
 0x1dd   : > { %v833_v27 = vmax.f32 %v831_v26, 0.0  ;;  %v2318_v26 = vld [vmem:[%s2919_s2 + $0x90] sm:$0xff] }
 0x1df   : > { %v835_v30 = vrot.slane %v833_v27, 7  ;;  %v843_v31 = vpack.c.bf16 %v833_v27, %v832_v25  ;;  %v927_v32 = vrot.slane %v833_v27, 1  ;;  %v2319_v25 = vld [vmem:[%s2919_s2 + $0x98] sm:$0xff] }
 0x1e0   : > { %1269 = vmatpush.bf16.msrb.mxu3 %v2319_v25  ;;  %v2315_v27 = vld [vmem:[%s2919_s2 + $0x78] sm:$0xff]  ;;  %v2332_v25 = vld [vmem:[%s2920_s3 + $0xa0] sm:$0xff] }
 0x1e1   : > { %v837_v33 = vsel %vm524_vm5, %v835_v30, %v834_v28  ;;  %v929_v34 = vsel %vm627_vm6, %v927_v32, %v926_v29  ;;  %1911 = vmatmul.msk.bf16.vlgmr.msra.gmra.mxu1 %vm402_vm3, %v843_v31  ;;  %v836_v35 = vsel %vm524_vm5, %v834_v28, %v835_v30  ;;  %v928_v36 = vsel %vm627_vm6, %v926_v29, %v927_v32  ;;  %v2323_v28 = vld [vmem:[%s2919_s2 + $0xb8] sm:$0xff]  ;;  %v2317_v29 = vld [vmem:[%s2919_s2 + $0x88] sm:$0xff]  ;;  %v2314_v30 = vld [vmem:[%s2919_s2 + $0x70] sm:$0xff] }
 0x1e2   : > { %v838_v37 = vsel %vm527_vm7, %v837_v33, 0.0  ;;  %v841_v38 = vsel %vm2522_vm4, %v836_v35, 0.0  ;;  %v931_v39 = vsel %vm631_vm9, %v929_v34, 0.0  ;;  %v932_v40 = vsel %vm2529_vm8, %v928_v36, 0.0  ;;  %1310 = vmatpush.bf16.msra.mxu0 %v2315_v27  ;;  %1360 = vmatpush.bf16.msra.mxu1 %v2323_v28  ;;  %v2322_v31 = vld [vmem:[%s2919_s2 + $0xb0] sm:$0xff]  ;;  %v2316_v32 = vld [vmem:[%s2919_s2 + $0x80] sm:$0xff] }
 0x1e3   : > { %v840_v41 = vsel %vm2534_vm10, %v838_v37, 0.0  ;;  %v933_v43 = vsel %vm2538_vm11, %v931_v39, 0.0  ;;  %v2313_v33 = vld [vmem:[%s2919_s2 + $0x68] sm:$0xff]  ;;  %v2312_v35 = vld [vmem:[%s2919_s2 + $0x60] sm:$0xff] }
 0x1e4   : > { %v842_v44 = vpack.c.bf16 %v841_v38, %v840_v41  ;;  %v934_v45 = vpack.c.bf16 %v933_v43, %v932_v40  ;;  %1270 = vmatpush.bf16.msrb.mxu3 %v2318_v26  ;;  %v2321_v34 = vld [vmem:[%s2919_s2 + $0xa8] sm:$0xff]  ;;  %v2320_v36 = vld [vmem:[%s2919_s2 + $0xa0] sm:$0xff] }
 0x1e5   : > { %v2772_v39 = vld [vmem:[%s2922_s5 + $0x4] sm:$0xf] }
 0x1e6   : > { %1928 = vmatmul.msk.bf16.vlgmr.msra.gmra.mxu2 %vm402_vm3, %v842_v44  ;;  %1945 = vmatmul.msk.bf16.vlgmr.msra.gmra.mxu3 %vm402_vm3, %v934_v45  ;;  %v1223_v44 = vperm.slane %v2772_v39, 0  ;;  %v1662_v59 = vperm.slane %v2772_v39, 3 }
 0x1e7   : > { %1311 = vmatpush.bf16.msra.mxu0 %v2314_v30  ;;  %1361 = vmatpush.bf16.msra.mxu1 %v2322_v31  ;;  %v1372_v31 = vperm.slane %v2772_v39, 1 }
 0x1e8   : > { %1271 = vmatpush.bf16.msrb.mxu3 %v2317_v29 }
 0x1eb   : > { %1312 = vmatpush.bf16.msra.mxu0 %v2313_v33  ;;  %1362 = vmatpush.bf16.msra.mxu1 %v2321_v34 }
 0x1ec   : > { %1272 = vmatpush.bf16.msrb.mxu3 %v2316_v32 }
 0x1ef   : > { %1313 = vmatpush.bf16.msra.mxu0 %v2312_v35  ;;  %1363 = vmatpush.bf16.msra.mxu1 %v2320_v36 }
 0x25e   : > { %v880_v60 = vpop.f32.mrf.mxu1 }
 0x266   : > { %v882_v5 = vpop.f32.mrf.mxu1 }
 0x269   : > { %v921_v61 = vpop.f32.mrf.mxu2  ;;  %v971_v62 = vpop.f32.mrf.mxu3 }
 0x26a   : > { %v922_v63 = vadd.f32 %v921_v61, %v880_v60 }
 0x26c   : > { %v976_v2 = vadd.f32 %v971_v62, %v922_v63 }
 0x26e   : > { %v979_v4 = vadd.f32 %v978_v3, %v976_v2 }
 0x270   : > { %v981_v12 = vadd.f32 %v979_v4, %v260_v13 }
 0x271   : > { %v923_v7 = vpop.f32.mrf.mxu2  ;;  %v973_v10 = vpop.f32.mrf.mxu3 }
 0x272   : > { %v924_v9 = vadd.f32 %v923_v7, %v882_v5  ;;  %v2712_v17 = vmax.f32 %v981_v12, 0.0 }
 0x274   : > { %v977_v15 = vadd.f32 %v973_v10, %v924_v9  ;;  %v1087_v20 = vrot.slane %v2712_v17, 4 }
 0x276   : > { %v980_v16 = vadd.f32 %v978_v3, %v977_v15 }
 0x278   : > { %v982_v18 = vadd.f32 %v980_v16, %v261_v14  ;;  %v2331_v16 = vld [vmem:[%s2920_s3 + $0x98] sm:$0xff] }
 0x279   : > { %1416 = vmatpush.bf16.msra.mxu2 %v2331_v16 }
 0x27a   : > { %v2716_v19 = vmax.f32 %v982_v18, 0.0  ;;  %v2327_v18 = vld [vmem:[%s2920_s3 + $0x78] sm:$0xff] }
 0x27b   : > { %1457 = vmatpush.bf16.msra.mxu3 %v2327_v18 }
 0x27c   : > { %v1088_v42 = vrot.slane %v2716_v19, 4  ;;  %v1094_v21 = vpack.c.bf16 %v2716_v19, %v2712_v17 }
 0x27e   : > { %2059 = vmatmul.msk.bf16.vlgmr.msrb.gmra.mxu0 %vm402_vm3, %v1094_v21  ;;  %v1089_v13 = vsel %vm361_vm0, %v1087_v20, %v1088_v42  ;;  %v1090_v22 = vsel %vm361_vm0, %v1088_v42, %v1087_v20  ;;  %v2330_v20 = vld [vmem:[%s2920_s3 + $0x90] sm:$0xff]  ;;  %v2335_v42 = vld [vmem:[%s2920_s3 + $0xb8] sm:$0xff] }
 0x27f   : > { %v1091_v11 = vsel %vm364_vm1, %v1090_v22, 0.0  ;;  %v1178_v14 = vsel %vm462_vm2, %v1090_v22, 0.0  ;;  %1417 = vmatpush.bf16.msra.mxu2 %v2330_v20  ;;  %1501 = vmatpush.bf16.msrb.mxu0 %v2335_v42  ;;  %v2326_v21 = vld [vmem:[%s2920_s3 + $0x70] sm:$0xff] }
 0x280   : > { %v1093_v23 = vpack.c.bf16 %v1089_v13, %v1091_v11  ;;  %v1179_v24 = vpack.c.bf16 %v1178_v14, %v1089_v13  ;;  %v2329_v13 = vld [vmem:[%s2920_s3 + $0x88] sm:$0xff]  ;;  %v2334_v22 = vld [vmem:[%s2920_s3 + $0xb0] sm:$0xff]  ;;  %1458 = vmatpush.bf16.msra.mxu3 %v2326_v21  ;;  %v2328_v14 = vld [vmem:[%s2920_s3 + $0x80] sm:$0xff] }
 0x281   : > { %v2325_v11 = vld [vmem:[%s2920_s3 + $0x68] sm:$0xff] }
 0x282   : > { %2076 = vmatmul.msk.bf16.vlgmr.msrb.gmra.mxu1 %vm402_vm3, %v1093_v23  ;;  %2093 = vmatmul.msk.bf16.vlgmr.msrb.gmra.mxu2 %vm402_vm3, %v1179_v24  ;;  %v2333_v23 = vld [vmem:[%s2920_s3 + $0xa8] sm:$0xff]  ;;  %v2324_v24 = vld [vmem:[%s2920_s3 + $0x60] sm:$0xff] }
 0x283   : > { %1418 = vmatpush.bf16.msra.mxu2 %v2329_v13  ;;  %1502 = vmatpush.bf16.msrb.mxu0 %v2334_v22 }
 0x284   : > { %1459 = vmatpush.bf16.msra.mxu3 %v2325_v11 }
 0x287   : > { %1419 = vmatpush.bf16.msra.mxu2 %v2328_v14  ;;  %1503 = vmatpush.bf16.msrb.mxu0 %v2333_v23 }
 0x288   : > { %1460 = vmatpush.bf16.msra.mxu3 %v2324_v24 }
 0x28b   : > { %1504 = vmatpush.bf16.msrb.mxu0 %v2332_v25 }
 0x2fb   : > { %v1131_v38 = vpop.f32.mrf.mxu0 }
 0x2ff   : > { %v1172_v37 = vpop.f32.mrf.mxu1 }
 0x300   : > { %v1173_v40 = vadd.f32 %v1172_v37, %v1131_v38 }
 0x303   : > { %v1133_v46 = vpop.f32.mrf.mxu0 }
 0x305   : > { %v1216_v41 = vpop.f32.mrf.mxu2 }
 0x306   : > { %v1221_v43 = vadd.f32 %v1216_v41, %v1173_v40 }
 0x307   : > { %v1174_v45 = vpop.f32.mrf.mxu1 }
 0x308   : > { %v1224_v47 = vadd.f32 %v1223_v44, %v1221_v43  ;;  %v1175_v48 = vadd.f32 %v1174_v45, %v1133_v46 }
 0x30a   : > { %v1226_v51 = vmax.f32 %v1224_v47, 0.0 }
 0x30c   : > { %v1228_v54 = vrot.slane %v1226_v51, 7  ;;  %v1320_v55 = vrot.slane %v1226_v51, 1 }
 0x30d   : > { %v1218_v49 = vpop.f32.mrf.mxu2 }
 0x30e   : > { %v1222_v50 = vadd.f32 %v1218_v49, %v1175_v48 }
 0x310   : > { %v1225_v52 = vadd.f32 %v1223_v44, %v1222_v50 }
 0x312   : > { %v1227_v53 = vmax.f32 %v1225_v52, 0.0  ;;  %v2343_v52 = vld [vmem:[%s2921_s4 + $0x98] sm:$0xff] }
 0x313   : > { %1559 = vmatpush.bf16.msrb.mxu1 %v2343_v52 }
 0x314   : > { %v1229_v56 = vrot.slane %v1227_v53, 7  ;;  %v1237_v58 = vpack.c.bf16 %v1227_v53, %v1226_v51  ;;  %v1321_v60 = vrot.slane %v1227_v53, 1  ;;  %v2342_v53 = vld [vmem:[%s2921_s4 + $0x90] sm:$0xff] }
 0x316   : > { %v1230_v61 = vsel %vm524_vm5, %v1228_v54, %v1229_v56  ;;  %v1231_v62 = vsel %vm524_vm5, %v1229_v56, %v1228_v54  ;;  %v1322_v63 = vsel %vm627_vm6, %v1320_v55, %v1321_v60  ;;  %v1323_v2 = vsel %vm627_vm6, %v1321_v60, %v1320_v55  ;;  %2110 = vmatmul.msk.bf16.vlgmr.msrb.gmra.mxu3 %vm402_vm3, %v1237_v58  ;;  %v2339_v54 = vld [vmem:[%s2921_s4 + $0x78] sm:$0xff]  ;;  %v2341_v56 = vld [vmem:[%s2921_s4 + $0x88] sm:$0xff]  ;;  %v2338_v58 = vld [vmem:[%s2921_s4 + $0x70] sm:$0xff] }
 0x317   : > { %v1232_v3 = vsel %vm527_vm7, %v1231_v62, 0.0  ;;  %v1325_v4 = vsel %vm631_vm9, %v1323_v2, 0.0  ;;  %v1235_v5 = vsel %vm2522_vm4, %v1230_v61, 0.0  ;;  %v1326_v7 = vsel %vm2529_vm8, %v1322_v63, 0.0  ;;  %v2347_v55 = vld [vmem:[%s2921_s4 + $0xb8] sm:$0xff]  ;;  %1560 = vmatpush.bf16.msrb.mxu1 %v2342_v53  ;;  %1600 = vmatpush.bf16.msrb.mxu2 %v2339_v54  ;;  %v2346_v60 = vld [vmem:[%s2921_s4 + $0xb0] sm:$0xff] }
 0x318   : > { %v1234_v9 = vsel %vm2534_vm10, %v1232_v3, 0.0  ;;  %v1327_v10 = vsel %vm2538_vm11, %v1325_v4, 0.0  ;;  %1650 = vmatpush.bf16.msrb.mxu3 %v2347_v55  ;;  %v2340_v61 = vld [vmem:[%s2921_s4 + $0x80] sm:$0xff]  ;;  %v2337_v62 = vld [vmem:[%s2921_s4 + $0x68] sm:$0xff] }
 0x319   : > { %v1236_v12 = vpack.c.bf16 %v1235_v5, %v1234_v9  ;;  %v1328_v15 = vpack.c.bf16 %v1327_v10, %v1326_v7  ;;  %v2345_v63 = vld [vmem:[%s2921_s4 + $0xa8] sm:$0xff]  ;;  %v2336_v2 = vld [vmem:[%s2921_s4 + $0x60] sm:$0xff] }
 0x31a   : > { %v2344_v3 = vld [vmem:[%s2921_s4 + $0xa0] sm:$0xff] }
 0x31b   : > { %2127 = vmatmul.msk.bf16.vlgmr.msra.gmra.mxu0 %vm402_vm3, %v1236_v12  ;;  %2144 = vmatmul.msk.bf16.vlgmr.msra.gmra.mxu1 %vm402_vm3, %v1328_v15  ;;  %v1513_v12 = vperm.slane %v2772_v39, 2 }
 0x31c   : > { %1561 = vmatpush.bf16.msrb.mxu1 %v2341_v56  ;;  %1601 = vmatpush.bf16.msrb.mxu2 %v2338_v58 }
 0x31d   : > { %1651 = vmatpush.bf16.msrb.mxu3 %v2346_v60 }
 0x320   : > { %1562 = vmatpush.bf16.msrb.mxu1 %v2340_v61  ;;  %1602 = vmatpush.bf16.msrb.mxu2 %v2337_v62 }
 0x321   : > { %1652 = vmatpush.bf16.msrb.mxu3 %v2345_v63 }
 0x324   : > { %1603 = vmatpush.bf16.msrb.mxu2 %v2336_v2 }
 0x325   : > { %1653 = vmatpush.bf16.msrb.mxu3 %v2344_v3 }
 0x398   : > { %v1315_v26 = vpop.f32.mrf.mxu0  ;;  %v1365_v27 = vpop.f32.mrf.mxu1 }
 0x399   : > { %v1274_v28 = vpop.f32.mrf.mxu3 }
 0x39a   : > { %v1316_v29 = vadd.f32 %v1315_v26, %v1274_v28 }
 0x39c   : > { %v1370_v30 = vadd.f32 %v1365_v27, %v1316_v29 }
 0x39e   : > { %v1373_v34 = vadd.f32 %v1372_v31, %v1370_v30 }
 0x3a0   : > { %v1317_v32 = vpop.f32.mrf.mxu0  ;;  %v1367_v36 = vpop.f32.mrf.mxu1  ;;  %v1375_v38 = vmax.f32 %v1373_v34, 0.0 }
 0x3a1   : > { %v1276_v33 = vpop.f32.mrf.mxu3 }
 0x3a2   : > { %v1318_v35 = vadd.f32 %v1317_v32, %v1276_v33  ;;  %v1377_v43 = vrot.slane %v1375_v38, 4 }
 0x3a4   : > { %v1371_v37 = vadd.f32 %v1367_v36, %v1318_v35 }
 0x3a6   : > { %v1374_v40 = vadd.f32 %v1372_v31, %v1371_v37 }
 0x3a8   : > { %v1376_v41 = vmax.f32 %v1374_v40, 0.0 }
 0x3aa   : > { %v1378_v44 = vrot.slane %v1376_v41, 4  ;;  %v1384_v45 = vpack.c.bf16 %v1376_v41, %v1375_v38 }
 0x3ac   : > { %v1379_v46 = vsel %vm361_vm0, %v1377_v43, %v1378_v44  ;;  %v1380_v47 = vsel %vm361_vm0, %v1378_v44, %v1377_v43  ;;  %2161 = vmatmul.msk.bf16.vlgmr.msra.gmra.mxu2 %vm402_vm3, %v1384_v45 }
 0x3ad   : > { %v1381_v48 = vsel %vm364_vm1, %v1380_v47, 0.0  ;;  %v1468_v49 = vsel %vm462_vm2, %v1380_v47, 0.0 }
 0x3ae   : > { %v1383_v50 = vpack.c.bf16 %v1379_v46, %v1381_v48  ;;  %v1469_v51 = vpack.c.bf16 %v1468_v49, %v1379_v46 }
 0x3b0   : > { %2178 = vmatmul.msk.bf16.vlgmr.msra.gmra.mxu3 %vm402_vm3, %v1383_v50  ;;  %2195 = vmatmul.msk.bf16.vlgmr.msrb.gmra.mxu0 %vm402_vm3, %v1469_v51 }
 0x42d   : > { %v1506_v5 = vpop.f32.mrf.mxu0 }
 0x42f   : > { %v1421_v4 = vpop.f32.mrf.mxu2 }
 0x433   : > { %v1462_v7 = vpop.f32.mrf.mxu3 }
 0x434   : > { %v1463_v9 = vadd.f32 %v1462_v7, %v1421_v4 }
 0x435   : > { %v1508_v42 = vpop.f32.mrf.mxu0 }
 0x436   : > { %v1511_v10 = vadd.f32 %v1506_v5, %v1463_v9 }
 0x437   : > { %v1423_v16 = vpop.f32.mrf.mxu2 }
 0x438   : > { %v1514_v15 = vadd.f32 %v1513_v12, %v1511_v10 }
 0x43a   : > { %v1516_v13 = vmax.f32 %v1514_v15, 0.0 }
 0x43b   : > { %v1464_v18 = vpop.f32.mrf.mxu3 }
 0x43c   : > { %v1465_v20 = vadd.f32 %v1464_v18, %v1423_v16  ;;  %v1518_v14 = vrot.slane %v1516_v13, 7  ;;  %v1610_v23 = vrot.slane %v1516_v13, 1 }
 0x43e   : > { %v1512_v21 = vadd.f32 %v1508_v42, %v1465_v20 }
 0x440   : > { %v1515_v22 = vadd.f32 %v1513_v12, %v1512_v21 }
 0x442   : > { %v1517_v11 = vmax.f32 %v1515_v22, 0.0 }
 0x444   : > { %v1519_v24 = vrot.slane %v1517_v11, 7  ;;  %v1527_v25 = vpack.c.bf16 %v1517_v11, %v1516_v13  ;;  %v1611_v26 = vrot.slane %v1517_v11, 1 }
 0x446   : > { %v1521_v27 = vsel %vm524_vm5, %v1519_v24, %v1518_v14  ;;  %v1613_v28 = vsel %vm627_vm6, %v1611_v26, %v1610_v23  ;;  %2212 = vmatmul.msk.bf16.vlgmr.msrb.gmra.mxu1 %vm402_vm3, %v1527_v25  ;;  %v1520_v29 = vsel %vm524_vm5, %v1518_v14, %v1519_v24  ;;  %v1612_v30 = vsel %vm627_vm6, %v1610_v23, %v1611_v26 }
 0x447   : > { %v1522_v31 = vsel %vm527_vm7, %v1521_v27, 0.0  ;;  %v1525_v32 = vsel %vm2522_vm4, %v1520_v29, 0.0  ;;  %v1615_v33 = vsel %vm631_vm9, %v1613_v28, 0.0  ;;  %v1616_v34 = vsel %vm2529_vm8, %v1612_v30, 0.0 }
 0x448   : > { %v1524_v35 = vsel %vm2534_vm10, %v1522_v31, 0.0  ;;  %v1617_v36 = vsel %vm2538_vm11, %v1615_v33, 0.0 }
 0x449   : > { %v1526_v37 = vpack.c.bf16 %v1525_v32, %v1524_v35  ;;  %v1618_v38 = vpack.c.bf16 %v1617_v36, %v1616_v34 }
 0x44b   : > { %2229 = vmatmul.msk.bf16.vlgmr.msrb.gmra.mxu2 %vm402_vm3, %v1526_v37  ;;  %2246 = vmatmul.msk.bf16.vlgmr.msrb.gmra.mxu3 %vm402_vm3, %v1618_v38 }
 0x4c3   : > { %v1564_v6 = vpop.f32.mrf.mxu1 }
 0x4cb   : > { %v1566_v44 = vpop.f32.mrf.mxu1 }
 0x4ce   : > { %v1605_v57 = vpop.f32.mrf.mxu2  ;;  %v1655_v8 = vpop.f32.mrf.mxu3 }
 0x4cf   : > { %v1606_v40 = vadd.f32 %v1605_v57, %v1564_v6 }
 0x4d1   : > { %v1660_v41 = vadd.f32 %v1655_v8, %v1606_v40 }
 0x4d3   : > { %v1663_v43 = vadd.f32 %v1662_v59, %v1660_v41 }
 0x4d5   : > { %v1665_v0 = vadd.f32 %v1663_v43, %v2712_v17 }
 0x4d6   : > { %v1607_v1 = vpop.f32.mrf.mxu2  ;;  %v1657_v47 = vpop.f32.mrf.mxu3 }
 0x4d7   : > { %v1667_v45 = vmax.f32 %v1665_v0, 0.0  ;;  %v1608_v46 = vadd.f32 %v1607_v1, %v1566_v44 }
 0x4d9   : > { %v1669_v48 = vpack.c.bf16 %v1667_v45, %v1667_v45  ;;  %v1661_v49 = vadd.f32 %v1657_v47, %v1608_v46 }
 0x4db   : > { %1672 = vst.msk [vmem:[%s251_s12] sm:$0xf] %vm1671_vm12, %v1669_v48  ;;  %v1664_v50 = vadd.f32 %v1662_v59, %v1661_v49 }
 0x4dd   : > { %v1666_v39 = vadd.f32 %v1664_v50, %v2716_v19 }
 0x4df   : > { %v1668_v51 = vmax.f32 %v1666_v39, 0.0 }
 0x4e1   : > { %v1670_v52 = vpack.c.bf16 %v1668_v51, %v1668_v51 }
 0x4e3   : > { %1673 = vst.msk [vmem:[%s251_s12 + $0x4] sm:$0xf] %vm1671_vm12, %v1670_v52 }
 0x4e4 PF: > { %s16_s21 = sadd.s32 1, %s2362_s21  }
 0x4e5   : > { %p13_p4 = scmp.ge.s32.totalorder %s16_s21, 4  }
 0x4e7   :  { %15 = sbr.rel (!%p13_p4) target bundleno = 1 (0x1), region = 79 }

// kernel: encoder_forward.9
= control target key start
LH: loop header
LB: loop body
LE: loop exit
PB: predicated region body
PF: predicated region fallthrough
CT: control target
= control target key end

     0   :  { %s4733_s21 = smov 0   ;;  %s5646_s0 = inlined_call_operand.vmem [shape: bf16[2,4,128], index: 0, kind: input, shape index: {}]   ;;  %s5647_s1 = inlined_call_operand.vmem [shape: bf16[4,3,128,128], index: 1, kind: input, shape index: {}]   ;;  %s5648_s2 = inlined_call_operand.vmem [shape: bf16[4,3,128,128], index: 2, kind: input, shape index: {}]   ;;  %s5649_s3 = inlined_call_operand.vmem [shape: bf16[4,3,128,128], index: 3, kind: input, shape index: {}]   ;;  %s5650_s4 = inlined_call_operand.vmem [shape: bf16[4,3,128,128], index: 4, kind: input, shape index: {}]   ;;  %s5651_s5 = inlined_call_operand.vmem [shape: f32[4,4,128], index: 5, kind: input, shape index: {}]   ;;  %s5652_s6 = inlined_call_operand.vmem [shape: bf16[2,4,128], index: 6, kind: output, shape index: {}]  }
   0x1 LB: > { %s2950_s22 = sadd.s32 4294967295, %s4696_s21   ;;  %p2954_p0 = scmp.ge.s32.totalorder %s4696_s21, 1  ;;  %s4696_s21 = sphi %s4733_s21, %s16_s21  }
   0x2   : > { %p211_p1 = scmp.lt.s32.totalorder %s4696_s21, 3 }
   0x4   : > { %p212_p2 = pnand %p2954_p0, %p211_p1 }
   0x5   : > { %p239_p3 = scmp.lt.s32.totalorder (!%p212_p2), %s2950_s22, 1 }
   0x6   : > { %215 = sbr.rel (%p212_p2) target bundleno = 2292 (0x8f4), region = 44 }
   0xb   : > { %v4441_v0 = vld [vmem:[%s5647_s1 + $0x78] sm:$0xff]  ;;  %v4440_v3 = vld [vmem:[%s5647_s1 + $0x70] sm:$0xff]  ;;  %s5662_s22 = smov (!%p239_p3, %s2950_s22), 1  ;;  %v4439_v6 = vld [vmem:[%s5647_s1 + $0x68] sm:$0xff]  ;;  %vm386_vm0 = vcmask 1041408   ;;  %vm587_vm5 = vcmask 1040384  }
   0xc   : > { %v4433_v1 = vld [vmem:[%s5647_s1 + $0x38] sm:$0xff]  ;;  %437 = vmatpush.bf16.msra.mxu0 %v4441_v0  ;;  %v4432_v4 = vld [vmem:[%s5647_s1 + $0x30] sm:$0xff]  ;;  %s2955_s11 = sshll.u32 %s5662_s22, 1  ;;  %v4431_v7 = vld [vmem:[%s5647_s1 + $0x28] sm:$0xff]  ;;  %v247_v0 = vlaneseq  ;;  %vm718_vm7 = vcmask 1042432  }
   0xd   : > { %v4449_v2 = vld [vmem:[%s5647_s1 + $0xb8] sm:$0xff]  ;;  %498 = vmatpush.bf16.msra.mxu1 %v4433_v1  ;;  %v4448_v5 = vld [vmem:[%s5647_s1 + $0xb0] sm:$0xff]  ;;  %s242_s14 = scalar_lea.vmem %s5646_s0, %s2955_s11  ;;  %v4447_v8 = vld [vmem:[%s5647_s1 + $0xa8] sm:$0xff]  ;;  %s246_s23 = scalar_lea.vmem %s5652_s6, %s2955_s11 }
   0xe   : > { %565 = vmatpush.bf16.msra.mxu2 %v4449_v2  ;;  %v250_v9 = vld [vmem:[%s242_s14] sm:$0x3]  ;;  %v4465_v10 = vld [vmem:[%s5648_s2 + $0x78] sm:$0xff]  ;;  %v4464_v15 = vld [vmem:[%s5648_s2 + $0x70] sm:$0xff] }
   0xf   : > { %v4779_v11 = vunpack.c.l.bf16 %v250_v9  ;;  %v4438_v12 = vld [vmem:[%s5647_s1 + $0x60] sm:$0xff]  ;;  %642 = vmatpush.bf16.msra.mxu3 %v4465_v10  ;;  %v4437_v16 = vld [vmem:[%s5647_s1 + $0x58] sm:$0xff]  ;;  %v4463_v19 = vld [vmem:[%s5648_s2 + $0x68] sm:$0xff] }
  0x10   : > { %438 = vmatpush.bf16.msra.mxu0 %v4440_v3  ;;  %v4430_v13 = vld [vmem:[%s5647_s1 + $0x20] sm:$0xff]  ;;  %v4429_v17 = vld [vmem:[%s5647_s1 + $0x18] sm:$0xff]  ;;  %v4436_v20 = vld [vmem:[%s5647_s1 + $0x50] sm:$0xff] }
  0x11   : > { %499 = vmatpush.bf16.msra.mxu1 %v4432_v4  ;;  %v4446_v14 = vld [vmem:[%s5647_s1 + $0xa0] sm:$0xff]  ;;  %382 = vst [vmem:[#allocation1] ss:$2 sm:$0xff] %v4779_v11  ;;  %v4445_v18 = vld [vmem:[%s5647_s1 + $0x98] sm:$0xff]  ;;  %v4428_v21 = vld [vmem:[%s5647_s1 + $0x10] sm:$0xff]  ;;  %v248_v4 = vshrl.u32 %v247_v0, 7 }
  0x12   : > { %566 = vmatpush.bf16.msra.mxu2 %v4448_v5  ;;  %v4444_v23 = vld [vmem:[%s5647_s1 + $0x90] sm:$0xff]  ;;  %v4462_v24 = vld [vmem:[%s5648_s2 + $0x60] sm:$0xff]  ;;  %v4435_v25 = vld [vmem:[%s5647_s1 + $0x48] sm:$0xff] }
  0x13   : > { %643 = vmatpush.bf16.msra.mxu3 %v4464_v15  ;;  %v4427_v26 = vld [vmem:[%s5647_s1 + $0x8] sm:$0xff]  ;;  %v4434_v29 = vld [vmem:[%s5647_s1 + $0x40] sm:$0xff]  ;;  %vm3021_vm1 = vmneg %vm386_vm0  ;;  %v249_v10 = vand.u32 1, %v248_v4 }
  0x14   : > { %439 = vmatpush.bf16.msra.mxu0 %v4439_v6  ;;  %v4443_v27 = vld [vmem:[%s5647_s1 + $0x88] sm:$0xff]  ;;  %v4426_v30 = vld [vmem:[%s5647_s1] sm:$0xff]  ;;  %v4457_v34 = vld [vmem:[%s5648_s2 + $0x38] sm:$0xff] }
  0x15   : > { %500 = vmatpush.bf16.msra.mxu1 %v4431_v7  ;;  %v4442_v32 = vld [vmem:[%s5647_s1 + $0x80] sm:$0xff]  ;;  %v4473_v35 = vld [vmem:[%s5648_s2 + $0xb8] sm:$0xff]  ;;  %vm4844_vm2 = vmpackc.low %vm3021_vm1, %vm3021_vm1  ;;  %vm582_vm4 = vcmp.ge.s32.totalorder %v249_v10, 1  ;;  %vm583_vm6 = vcmp.lt.s32.totalorder %v249_v10, 1 }
  0x16   : > { %567 = vmatpush.bf16.msra.mxu2 %v4447_v8  ;;  %vm4850_vm3 = vmpackc.low %vm386_vm0, %vm386_vm0  ;;  %v4456_v40 = vld [vmem:[%s5648_s2 + $0x30] sm:$0xff]  ;;  %v4455_v42 = vld [vmem:[%s5648_s2 + $0x28] sm:$0xff] }
  0x17   : > { %644 = vmatpush.bf16.msra.mxu3 %v4463_v19  ;;  %v4472_v41 = vld [vmem:[%s5648_s2 + $0xb0] sm:$0xff]  ;;  %v4471_v43 = vld [vmem:[%s5648_s2 + $0xa8] sm:$0xff]  ;;  %v4454_v44 = vld [vmem:[%s5648_s2 + $0x20] sm:$0xff] }
  0x18   : > { %440 = vmatpush.bf16.msra.mxu0 %v4438_v12  ;;  %v383_v22 = vld.sshfl [vmem:[#allocation1] sm:$0xff pattern:$0x75316420]  ;;  %v4461_v46 = vld [vmem:[%s5648_s2 + $0x58] sm:$0xff]  ;;  %v4460_v49 = vld [vmem:[%s5648_s2 + $0x50] sm:$0xff] }
  0x19   : > { %501 = vmatpush.bf16.msra.mxu1 %v4430_v13  ;;  %511 = vst [vmem:[#allocation1] ss:$2 sm:$0xff] %v4779_v11  ;;  %v384_v28 = vrot.slane %v383_v22, 6  ;;  %v4470_v45 = vld [vmem:[%s5648_s2 + $0xa0] sm:$0xff]  ;;  %v4453_v47 = vld [vmem:[%s5648_s2 + $0x18] sm:$0xff]  ;;  %v4452_v50 = vld [vmem:[%s5648_s2 + $0x10] sm:$0xff] }
  0x1a   : > { %568 = vmatpush.bf16.msra.mxu2 %v4446_v14  ;;  %v4469_v48 = vld [vmem:[%s5648_s2 + $0x98] sm:$0xff]  ;;  %v4468_v51 = vld [vmem:[%s5648_s2 + $0x90] sm:$0xff]  ;;  %v4459_v52 = vld [vmem:[%s5648_s2 + $0x48] sm:$0xff] }
  0x1b   : > { %645 = vmatpush.bf16.msra.mxu3 %v4462_v24  ;;  %v3024_v36 = vpack.c.bf16 %v384_v28, %v384_v28  ;;  %v4451_v53 = vld [vmem:[%s5648_s2 + $0x8] sm:$0xff]  ;;  %v4458_v55 = vld [vmem:[%s5648_s2 + $0x40] sm:$0xff]  ;;  %v4481_v58 = vld [vmem:[%s5649_s3 + $0x78] sm:$0xff] }
  0x1c   : > { %441 = vmatpush.bf16.msra.mxu0 %v4437_v16  ;;  %v4467_v54 = vld [vmem:[%s5648_s2 + $0x88] sm:$0xff]  ;;  %v4450_v56 = vld [vmem:[%s5648_s2] sm:$0xff]  ;;  %v4480_v59 = vld [vmem:[%s5649_s3 + $0x70] sm:$0xff] }
  0x1d   : > { %502 = vmatpush.bf16.msra.mxu1 %v4429_v17  ;;  %v4466_v57 = vld [vmem:[%s5648_s2 + $0x80] sm:$0xff]  ;;  %v4479_v60 = vld [vmem:[%s5649_s3 + $0x68] sm:$0xff]  ;;  %v4477_v1 = vld [vmem:[%s5649_s3 + $0x58] sm:$0xff] }
  0x1e   : > { %569 = vmatpush.bf16.msra.mxu2 %v4445_v18  ;;  %v4478_v61 = vld [vmem:[%s5649_s3 + $0x60] sm:$0xff]  ;;  %vm4933_vm8 = vmpackc.low %vm582_vm4, %vm582_vm4  ;;  %v4476_v24 = vld [vmem:[%s5649_s3 + $0x50] sm:$0xff] }
  0x1f   : > { %646 = vmatpush.bf16.msra.mxu3 %v4461_v46  ;;  %v4930_v2 = vld [vmem:[%s5651_s5] sm:$0xf]  ;;  %vm4939_vm9 = vmpackc.low %vm583_vm6, %vm583_vm6  ;;  %v4488_v28 = vld [vmem:[%s5650_s4 + $0x70] sm:$0xff] }
  0x20   : > { %442 = vmatpush.bf16.msra.mxu0 %v4436_v20  ;;  %v512_v31 = vld.sshfl [vmem:[#allocation1] sm:$0xff pattern:$0x75316420]  ;;  %v579_v5 = vperm.slane %v4930_v2, 0  ;;  %v4500_v0 = vld [vmem:[%s5647_s1 + $0x110] sm:$0xff]  ;;  %v4499_v10 = vld [vmem:[%s5647_s1 + $0x108] sm:$0xff] }
  0x21   : > { %503 = vmatpush.bf16.msra.mxu1 %v4428_v21  ;;  %v513_v33 = vrot.slane %v512_v31, 2  ;;  %v4485_v31 = vld [vmem:[%s5650_s4 + $0x58] sm:$0xff]  ;;  %v4680_v21 = vld [vmem:[%s5650_s4 + $0x2b0] sm:$0xff] }
  0x22   : > { %570 = vmatpush.bf16.msra.mxu2 %v4444_v23  ;;  %v4645_v37 = vld [vmem:[%s5648_s2 + $0x258] sm:$0xff] }
  0x23   : > { %v3059_v38 = vpack.c.bf16 %v513_v33, %v513_v33  ;;  %647 = vmatpush.bf16.msra.mxu3 %v4460_v49  ;;  %v4505_v49 = vld [vmem:[%s5647_s1 + $0x138] sm:$0xff] }
  0x24   : > { %443 = vmatpush.bf16.msra.mxu0 %v4435_v25  ;;  %v4475_v25 = vld [vmem:[%s5649_s3 + $0x48] sm:$0xff]  ;;  %v4661_v39 = vld [vmem:[%s5648_s2 + $0x2d8] sm:$0xff] }
  0x25   : > { %504 = vmatpush.bf16.msra.mxu1 %v4427_v26  ;;  %v4474_v26 = vld [vmem:[%s5649_s3 + $0x40] sm:$0xff]  ;;  %v4681_v18 = vld [vmem:[%s5650_s4 + $0x2b8] sm:$0xff] }
  0x26   : > { %571 = vmatpush.bf16.msra.mxu2 %v4443_v27  ;;  %v4489_v27 = vld [vmem:[%s5650_s4 + $0x78] sm:$0xff] }
  0x27   : > { %648 = vmatpush.bf16.msra.mxu3 %v4459_v52  ;;  %v4504_v52 = vld [vmem:[%s5647_s1 + $0x130] sm:$0xff] }
  0x28   : > { %444 = vmatpush.bf16.msra.mxu0 %v4434_v29  ;;  %v4487_v29 = vld [vmem:[%s5650_s4 + $0x68] sm:$0xff] }
  0x29   : > { %505 = vmatpush.bf16.msra.mxu1 %v4426_v30  ;;  %v4486_v30 = vld [vmem:[%s5650_s4 + $0x60] sm:$0xff] }
  0x2a   : > { %572 = vmatpush.bf16.msra.mxu2 %v4442_v32 }
  0x2b   : > { %445 = vmatmul.bf16.vlgmr.msra.gmra.mxu0 %v250_v9  ;;  %649 = vmatpush.bf16.msra.mxu3 %v4458_v55  ;;  %v4503_v55 = vld [vmem:[%s5647_s1 + $0x128] sm:$0xff] }
  0x2c   : > { %703 = vmatpush.bf16.msrb.mxu0 %v4457_v34  ;;  %3025 = vmatmul.msk.bf16.vlgmr.msra.gmra.mxu1 %vm4844_vm2, %v3024_v36  ;;  %v4484_v34 = vld [vmem:[%s5650_s4 + $0x50] sm:$0xff] }
  0x2d   : > { %772 = vmatpush.bf16.msrb.mxu1 %v4473_v35  ;;  %3060 = vmatmul.msk.bf16.vlgmr.msra.gmra.mxu2 %vm4850_vm3, %v3059_v38  ;;  %v786_v38 = vperm.slane %v4930_v2, 1 }
  0x2e   : > { %839 = vmatpush.bf16.msrb.mxu2 %v4481_v58  ;;  %v4502_v58 = vld [vmem:[%s5647_s1 + $0x120] sm:$0xff] }
  0x2f   : > { %903 = vmatpush.bf16.msrb.mxu3 %v4489_v27  ;;  %v4535_v27 = vld [vmem:[%s5648_s2 + $0x168] sm:$0xff] }
  0x30   : > { %704 = vmatpush.bf16.msrb.mxu0 %v4456_v40 }
  0x31   : > { %773 = vmatpush.bf16.msrb.mxu1 %v4472_v41 }
  0x32   : > { %840 = vmatpush.bf16.msrb.mxu2 %v4480_v59  ;;  %v4494_v59 = vld [vmem:[%s5647_s1 + $0xe0] sm:$0xff] }
  0x33   : > { %904 = vmatpush.bf16.msrb.mxu3 %v4488_v28  ;;  %v4526_v28 = vld [vmem:[%s5648_s2 + $0x120] sm:$0xff] }
  0x34   : > { %705 = vmatpush.bf16.msrb.mxu0 %v4455_v42 }
  0x35   : > { %774 = vmatpush.bf16.msrb.mxu1 %v4471_v43 }
  0x36   : > { %841 = vmatpush.bf16.msrb.mxu2 %v4479_v60  ;;  %v4510_v60 = vld [vmem:[%s5647_s1 + $0x160] sm:$0xff] }
  0x37   : > { %905 = vmatpush.bf16.msrb.mxu3 %v4487_v29  ;;  %v854_v29 = vperm.slane %v4930_v2, 3 }
  0x38   : > { %706 = vmatpush.bf16.msrb.mxu0 %v4454_v44 }
  0x39   : > { %775 = vmatpush.bf16.msrb.mxu1 %v4470_v45 }
  0x3a   : > { %842 = vmatpush.bf16.msrb.mxu2 %v4478_v61  ;;  %v4501_v61 = vld [vmem:[%s5647_s1 + $0x118] sm:$0xff] }
  0x3b   : > { %906 = vmatpush.bf16.msrb.mxu3 %v4486_v30 }
  0x3c   : > { %707 = vmatpush.bf16.msrb.mxu0 %v4453_v47  ;;  %v4483_v47 = vld [vmem:[%s5650_s4 + $0x48] sm:$0xff] }
  0x3d   : > { %776 = vmatpush.bf16.msrb.mxu1 %v4469_v48  ;;  %v4482_v48 = vld [vmem:[%s5650_s4 + $0x40] sm:$0xff] }
  0x3e   : > { %843 = vmatpush.bf16.msrb.mxu2 %v4477_v1  ;;  %v790_v1 = vperm.slane %v4930_v2, 2  ;;  %v4534_v2 = vld [vmem:[%s5648_s2 + $0x160] sm:$0xff] }
  0x3f   : > { %907 = vmatpush.bf16.msrb.mxu3 %v4485_v31 }
  0x40   : > { %708 = vmatpush.bf16.msrb.mxu0 %v4452_v50  ;;  %v4497_v50 = vld [vmem:[%s5647_s1 + $0xf8] sm:$0xff] }
  0x41   : > { %777 = vmatpush.bf16.msrb.mxu1 %v4468_v51  ;;  %v4513_v51 = vld [vmem:[%s5647_s1 + $0x178] sm:$0xff] }
  0x42   : > { %844 = vmatpush.bf16.msrb.mxu2 %v4476_v24  ;;  %v4536_v24 = vld [vmem:[%s5648_s2 + $0x170] sm:$0xff] }
  0x43   : > { %908 = vmatpush.bf16.msrb.mxu3 %v4484_v34 }
  0x44   : > { %709 = vmatpush.bf16.msrb.mxu0 %v4451_v53  ;;  %v4496_v53 = vld [vmem:[%s5647_s1 + $0xf0] sm:$0xff] }
  0x45   : > { %778 = vmatpush.bf16.msrb.mxu1 %v4467_v54  ;;  %v4512_v54 = vld [vmem:[%s5647_s1 + $0x170] sm:$0xff] }
  0x46   : > { %845 = vmatpush.bf16.msrb.mxu2 %v4475_v25  ;;  %v4527_v25 = vld [vmem:[%s5648_s2 + $0x128] sm:$0xff] }
  0x47   : > { %909 = vmatpush.bf16.msrb.mxu3 %v4483_v47  ;;  %v4532_v47 = vld [vmem:[%s5648_s2 + $0x150] sm:$0xff] }
  0x48   : > { %710 = vmatpush.bf16.msrb.mxu0 %v4450_v56  ;;  %v4495_v56 = vld [vmem:[%s5647_s1 + $0xe8] sm:$0xff] }
  0x49   : > { %779 = vmatpush.bf16.msrb.mxu1 %v4466_v57  ;;  %v4511_v57 = vld [vmem:[%s5647_s1 + $0x168] sm:$0xff] }
  0x4a   : > { %846 = vmatpush.bf16.msrb.mxu2 %v4474_v26  ;;  %v4519_v26 = vld [vmem:[%s5648_s2 + $0xe8] sm:$0xff] }
  0x4b   : > { %910 = vmatpush.bf16.msrb.mxu3 %v4482_v48  ;;  %v4523_v48 = vld [vmem:[%s5648_s2 + $0x108] sm:$0xff] }
  0x4c   : > { %1106 = vmatpush.bf16.msra.mxu0 %v4505_v49  ;;  %v4515_v49 = vld [vmem:[%s5648_s2 + $0xc8] sm:$0xff] }
  0x4d   : > { %1167 = vmatpush.bf16.msra.mxu1 %v4497_v50  ;;  %v4531_v50 = vld [vmem:[%s5648_s2 + $0x148] sm:$0xff] }
  0x4e   : > { %1232 = vmatpush.bf16.msra.mxu2 %v4513_v51  ;;  %v4522_v51 = vld [vmem:[%s5648_s2 + $0x100] sm:$0xff] }
  0x50   : > { %1107 = vmatpush.bf16.msra.mxu0 %v4504_v52  ;;  %v4514_v52 = vld [vmem:[%s5648_s2 + $0xc0] sm:$0xff] }
  0x51   : > { %1168 = vmatpush.bf16.msra.mxu1 %v4496_v53  ;;  %v4530_v53 = vld [vmem:[%s5648_s2 + $0x140] sm:$0xff] }
  0x52   : > { %1233 = vmatpush.bf16.msra.mxu2 %v4512_v54  ;;  %v4545_v54 = vld [vmem:[%s5649_s3 + $0x138] sm:$0xff] }
  0x54   : > { %1108 = vmatpush.bf16.msra.mxu0 %v4503_v55  ;;  %v4544_v55 = vld [vmem:[%s5649_s3 + $0x130] sm:$0xff] }
  0x55   : > { %1169 = vmatpush.bf16.msra.mxu1 %v4495_v56  ;;  %v4543_v56 = vld [vmem:[%s5649_s3 + $0x128] sm:$0xff] }
  0x56   : > { %1234 = vmatpush.bf16.msra.mxu2 %v4511_v57  ;;  %v4542_v57 = vld [vmem:[%s5649_s3 + $0x120] sm:$0xff] }
  0x58   : > { %1109 = vmatpush.bf16.msra.mxu0 %v4502_v58 }
  0x59   : > { %1170 = vmatpush.bf16.msra.mxu1 %v4494_v59 }
  0x5a   : > { %1235 = vmatpush.bf16.msra.mxu2 %v4510_v60  ;;  %v4541_v60 = vld [vmem:[%s5649_s3 + $0x118] sm:$0xff] }
  0x5c   : > { %1110 = vmatpush.bf16.msra.mxu0 %v4501_v61  ;;  %v5156_v61 = vld [vmem:[%s5651_s5 + $0x4] sm:$0xf] }
  0x60   : > { %1111 = vmatpush.bf16.msra.mxu0 %v4500_v0 }
  0x64   : > { %1112 = vmatpush.bf16.msra.mxu0 %v4499_v10 }
  0xa8   : > { %v446_v62 = vpop.f32.mrf.mxu0 }
  0xa9   : > { %v507_v63 = vpop.f32.mrf.mxu1 }
  0xaa   : > { %v508_v3 = vadd.f32 %v507_v63, %v446_v62  ;;  %v4493_v62 = vld [vmem:[%s5647_s1 + $0xd8] sm:$0xff] }
  0xab   : > { %v4509_v63 = vld [vmem:[%s5647_s1 + $0x158] sm:$0xff]  ;;  %1171 = vmatpush.bf16.msra.mxu1 %v4493_v62 }
  0xac   : > { %1236 = vmatpush.bf16.msra.mxu2 %v4509_v63  ;;  %v1246_v63 = vperm.slane %v5156_v61, 0 }
  0xb0   : > { %v574_v6 = vpop.f32.mrf.mxu2  ;;  %v448_v8 = vpop.f32.mrf.mxu0 }
  0xb1   : > { %v578_v7 = vadd.f32 %v574_v6, %v508_v3  ;;  %v509_v9 = vpop.f32.mrf.mxu1  ;;  %v4492_v8 = vld [vmem:[%s5647_s1 + $0xd0] sm:$0xff] }
  0xb2   : > { %v4508_v9 = vld [vmem:[%s5647_s1 + $0x150] sm:$0xff]  ;;  %1172 = vmatpush.bf16.msra.mxu1 %v4492_v8 }
  0xb3   : > { %v580_v12 = vadd.f32 %v579_v5, %v578_v7  ;;  %1237 = vmatpush.bf16.msra.mxu2 %v4508_v9 }
  0xb5   : > { %v581_v13 = vmax.f32 %v580_v12, 0.0  ;;  %v4491_v12 = vld [vmem:[%s5647_s1 + $0xc8] sm:$0xff] }
  0xb6   : > { %1173 = vmatpush.bf16.msra.mxu1 %v4491_v12 }
  0xb7   : > { %v585_v14 = vrot.slane %v581_v13, 7  ;;  %v716_v15 = vrot.slane %v581_v13, 1  ;;  %v593_v16 = vpack.c.bf16 %v581_v13, %v581_v13  ;;  %v4507_v13 = vld [vmem:[%s5647_s1 + $0x148] sm:$0xff] }
  0xb8   : > { %v576_v17 = vpop.f32.mrf.mxu2  ;;  %1238 = vmatpush.bf16.msra.mxu2 %v4507_v13 }
  0xb9   : > { %650 = vmatmul.bf16.vlgmr.msra.gmra.mxu3 %v593_v16  ;;  %v588_v19 = vsel %vm587_vm5, 0.0, %v585_v14  ;;  %v719_v20 = vsel %vm718_vm7, %v716_v15, 0.0  ;;  %v4498_v14 = vld [vmem:[%s5647_s1 + $0x100] sm:$0xff]  ;;  %v4529_v17 = vld [vmem:[%s5648_s2 + $0x138] sm:$0xff] }
  0xba   : > { %v3126_v22 = vpack.c.bf16 %v588_v19, %v588_v19  ;;  %v3161_v23 = vpack.c.bf16 %v719_v20, %v719_v20  ;;  %1113 = vmatpush.bf16.msra.mxu0 %v4498_v14  ;;  %v4490_v15 = vld [vmem:[%s5647_s1 + $0xc0] sm:$0xff]  ;;  %v4521_v19 = vld [vmem:[%s5648_s2 + $0xf8] sm:$0xff]  ;;  %1304 = vmatpush.bf16.msra.mxu3 %v4529_v17  ;;  %v4539_v17 = vld [vmem:[%s5649_s3 + $0x108] sm:$0xff] }
  0xbb   : > { %v4506_v16 = vld [vmem:[%s5647_s1 + $0x140] sm:$0xff]  ;;  %1174 = vmatpush.bf16.msra.mxu1 %v4490_v15  ;;  %v4537_v20 = vld [vmem:[%s5648_s2 + $0x178] sm:$0xff] }
  0xbc   : > { %3127 = vmatmul.msk.bf16.vlgmr.msrb.gmra.mxu0 %vm4933_vm8, %v3126_v22  ;;  %3162 = vmatmul.msk.bf16.vlgmr.msrb.gmra.mxu1 %vm4939_vm9, %v3161_v23  ;;  %v4528_v22 = vld [vmem:[%s5648_s2 + $0x130] sm:$0xff] }
  0xbd   : > { %1239 = vmatpush.bf16.msra.mxu2 %v4506_v16  ;;  %v4520_v23 = vld [vmem:[%s5648_s2 + $0xf0] sm:$0xff] }
  0xbe   : > { %1365 = vmatpush.bf16.msrb.mxu0 %v4521_v19  ;;  %1305 = vmatpush.bf16.msra.mxu3 %v4528_v22  ;;  %v4540_v16 = vld [vmem:[%s5649_s3 + $0x110] sm:$0xff]  ;;  %v4538_v19 = vld [vmem:[%s5649_s3 + $0x100] sm:$0xff] }
  0xbf   : > { %1431 = vmatpush.bf16.msrb.mxu1 %v4537_v20  ;;  %v4553_v20 = vld [vmem:[%s5650_s4 + $0x138] sm:$0xff]  ;;  %v4552_v22 = vld [vmem:[%s5650_s4 + $0x130] sm:$0xff] }
  0xc2   : > { %1366 = vmatpush.bf16.msrb.mxu0 %v4520_v23  ;;  %1306 = vmatpush.bf16.msra.mxu3 %v4527_v25  ;;  %v4551_v23 = vld [vmem:[%s5650_s4 + $0x128] sm:$0xff]  ;;  %v4549_v25 = vld [vmem:[%s5650_s4 + $0x118] sm:$0xff] }
  0xc3   : > { %1432 = vmatpush.bf16.msrb.mxu1 %v4536_v24  ;;  %v4550_v24 = vld [vmem:[%s5650_s4 + $0x120] sm:$0xff] }
  0xc6   : > { %1367 = vmatpush.bf16.msrb.mxu0 %v4519_v26  ;;  %1307 = vmatpush.bf16.msra.mxu3 %v4526_v28  ;;  %v4548_v28 = vld [vmem:[%s5650_s4 + $0x110] sm:$0xff] }
  0xc7   : > { %1433 = vmatpush.bf16.msrb.mxu1 %v4535_v27 }
  0xcb   : > { %1434 = vmatpush.bf16.msrb.mxu1 %v4534_v2  ;;  %v4546_v2 = vld [vmem:[%s5650_s4 + $0x100] sm:$0xff] }
 0x139   : > { %v712_v32 = vpop.f32.mrf.mxu0  ;;  %v781_v33 = vpop.f32.mrf.mxu1 }
 0x13c   : > { %v651_v35 = vpop.f32.mrf.mxu3 }
 0x13d   : > { %v713_v36 = vadd.f32 %v712_v32, %v651_v35 }
 0x13f   : > { %v785_v40 = vadd.f32 %v781_v33, %v713_v36 }
 0x141   : > { %v787_v41 = vadd.f32 %v786_v38, %v785_v40  ;;  %v714_v42 = vpop.f32.mrf.mxu0  ;;  %v783_v43 = vpop.f32.mrf.mxu1 }
 0x142   : > { %v4525_v42 = vld [vmem:[%s5648_s2 + $0x118] sm:$0xff] }
 0x143   : > { %v788_v44 = vmax.f32 %v787_v41, 0.0  ;;  %1308 = vmatpush.bf16.msra.mxu3 %v4525_v42  ;;  %v4517_v43 = vld [vmem:[%s5648_s2 + $0xd8] sm:$0xff] }
 0x144   : > { %v653_v45 = vpop.f32.mrf.mxu3  ;;  %v4569_v42 = vld [vmem:[%s5647_s1 + $0x1f8] sm:$0xff] }
 0x145   : > { %v789_v46 = vpack.c.bf16 %v788_v44, %v788_v44  ;;  %v4533_v44 = vld [vmem:[%s5648_s2 + $0x158] sm:$0xff]  ;;  %v4524_v45 = vld [vmem:[%s5648_s2 + $0x110] sm:$0xff] }
 0x146   : > { %1435 = vmatpush.bf16.msrb.mxu1 %v4533_v44  ;;  %v4577_v44 = vld [vmem:[%s5647_s1 + $0x238] sm:$0xff] }
 0x147   : > { %847 = vmatmul.bf16.vlgmr.msrb.gmra.mxu2 %v789_v46  ;;  %1309 = vmatpush.bf16.msra.mxu3 %v4524_v45  ;;  %v4516_v46 = vld [vmem:[%s5648_s2 + $0xd0] sm:$0xff] }
 0x148   : > { %1498 = vmatpush.bf16.msrb.mxu2 %v4545_v54  ;;  %v4568_v45 = vld [vmem:[%s5647_s1 + $0x1f0] sm:$0xff]  ;;  %v4565_v54 = vld [vmem:[%s5647_s1 + $0x1d8] sm:$0xff] }
 0x14a   : > { %1436 = vmatpush.bf16.msrb.mxu1 %v4532_v47  ;;  %v4576_v47 = vld [vmem:[%s5647_s1 + $0x230] sm:$0xff] }
 0x14b   : > { %1310 = vmatpush.bf16.msra.mxu3 %v4523_v48  ;;  %v4567_v48 = vld [vmem:[%s5647_s1 + $0x1e8] sm:$0xff] }
 0x14c   : > { %1499 = vmatpush.bf16.msrb.mxu2 %v4544_v55  ;;  %v4557_v55 = vld [vmem:[%s5647_s1 + $0x198] sm:$0xff] }
 0x14e   : > { %1437 = vmatpush.bf16.msrb.mxu1 %v4531_v50  ;;  %v4575_v50 = vld [vmem:[%s5647_s1 + $0x228] sm:$0xff] }
 0x14f   : > { %1311 = vmatpush.bf16.msra.mxu3 %v4522_v51  ;;  %v4566_v51 = vld [vmem:[%s5647_s1 + $0x1e0] sm:$0xff] }
 0x150   : > { %1500 = vmatpush.bf16.msrb.mxu2 %v4543_v56  ;;  %v4573_v56 = vld [vmem:[%s5647_s1 + $0x218] sm:$0xff] }
 0x152   : > { %1438 = vmatpush.bf16.msrb.mxu1 %v4530_v53  ;;  %v4574_v53 = vld [vmem:[%s5647_s1 + $0x220] sm:$0xff] }
 0x154   : > { %1501 = vmatpush.bf16.msrb.mxu2 %v4542_v57  ;;  %v4564_v57 = vld [vmem:[%s5647_s1 + $0x1d0] sm:$0xff] }
 0x158   : > { %1502 = vmatpush.bf16.msrb.mxu2 %v4541_v60 }
 0x15c   : > { %1503 = vmatpush.bf16.msrb.mxu2 %v4540_v16  ;;  %v4600_v16 = vld [vmem:[%s5648_s2 + $0x230] sm:$0xff] }
 0x160   : > { %1504 = vmatpush.bf16.msrb.mxu2 %v4539_v17  ;;  %v4591_v17 = vld [vmem:[%s5648_s2 + $0x1e8] sm:$0xff] }
 0x164   : > { %1505 = vmatpush.bf16.msrb.mxu2 %v4538_v19  ;;  %v4583_v19 = vld [vmem:[%s5648_s2 + $0x1a8] sm:$0xff] }
 0x1ca   : > { %v848_v3 = vpop.f32.mrf.mxu2 }
 0x1cb   : > { %v849_v4 = vadd.f32 %v848_v3, %v790_v1 }
 0x1cd   : > { %v852_v5 = vmax.f32 %v849_v4, 0.0 }
 0x1cf   : > { %v853_v6 = vpack.c.bf16 %v852_v5, %v852_v5 }
 0x1d1   : > { %911 = vmatmul.bf16.vlgmr.msrb.gmra.mxu3 %v853_v6 }
 0x1d2   : > { %v850_v7 = vpop.f32.mrf.mxu2  ;;  %1562 = vmatpush.bf16.msrb.mxu3 %v4553_v20  ;;  %v4599_v20 = vld [vmem:[%s5648_s2 + $0x228] sm:$0xff] }
 0x1d6   : > { %1563 = vmatpush.bf16.msrb.mxu3 %v4552_v22  ;;  %v4590_v22 = vld [vmem:[%s5648_s2 + $0x1e0] sm:$0xff] }
 0x1da   : > { %1564 = vmatpush.bf16.msrb.mxu3 %v4551_v23  ;;  %v1513_v23 = vperm.slane %v5156_v61, 3 }
 0x1de   : > { %1565 = vmatpush.bf16.msrb.mxu3 %v4550_v24 }
 0x1e2   : > { %1566 = vmatpush.bf16.msrb.mxu3 %v4549_v25 }
 0x1e6   : > { %1567 = vmatpush.bf16.msrb.mxu3 %v4548_v28 }
 0x254   : > { %v912_v30 = vpop.f32.mrf.mxu3 }
 0x255   : > { %v913_v31 = vadd.f32 %v912_v30, %v854_v29 }
 0x257   : > { %v916_v32 = vadd.f32 %v913_v31, %v4779_v11  ;;  %v4518_v11 = vld [vmem:[%s5648_s2 + $0xe0] sm:$0xff]  ;;  %v1445_v31 = vperm.slane %v5156_v61, 1 }
 0x258   : > { %1368 = vmatpush.bf16.msrb.mxu0 %v4518_v11  ;;  %v4547_v11 = vld [vmem:[%s5650_s4 + $0x108] sm:$0xff] }
 0x259   : > { %v5086_v33 = vmax.f32 %v916_v32, 0.0  ;;  %1568 = vmatpush.bf16.msrb.mxu3 %v4547_v11  ;;  %v4596_v11 = vld [vmem:[%s5648_s2 + $0x210] sm:$0xff] }
 0x25b   : > { %v1053_v34 = vrot.slane %v5086_v33, 6  ;;  %v1180_v35 = vrot.slane %v5086_v33, 2  ;;  %v1057_v36 = vpack.c.bf16 %v5086_v33, %v5086_v33 }
 0x25c   : > { %v914_v38 = vpop.f32.mrf.mxu3  ;;  %1369 = vmatpush.bf16.msrb.mxu0 %v4517_v43  ;;  %v4561_v43 = vld [vmem:[%s5647_s1 + $0x1b8] sm:$0xff] }
 0x25d   : > { %v3423_v40 = vpack.c.bf16 %v1053_v34, %v1053_v34  ;;  %v3458_v41 = vpack.c.bf16 %v1180_v35, %v1180_v35  ;;  %1114 = vmatmul.bf16.vlgmr.msra.gmra.mxu0 %v1057_v36  ;;  %1569 = vmatpush.bf16.msrb.mxu3 %v4546_v2  ;;  %v4587_v2 = vld [vmem:[%s5648_s2 + $0x1c8] sm:$0xff] }
 0x25f   : > { %3424 = vmatmul.msk.bf16.vlgmr.msra.gmra.mxu1 %vm4844_vm2, %v3423_v40  ;;  %3459 = vmatmul.msk.bf16.vlgmr.msra.gmra.mxu2 %vm4850_vm3, %v3458_v41 }
 0x260   : > { %1370 = vmatpush.bf16.msrb.mxu0 %v4516_v46  ;;  %1826 = vmatpush.bf16.msra.mxu1 %v4561_v43  ;;  %v4560_v46 = vld [vmem:[%s5647_s1 + $0x1b0] sm:$0xff]  ;;  %v4595_v43 = vld [vmem:[%s5648_s2 + $0x208] sm:$0xff] }
 0x261   : > { %1891 = vmatpush.bf16.msra.mxu2 %v4577_v44  ;;  %v4586_v44 = vld [vmem:[%s5648_s2 + $0x1c0] sm:$0xff] }
 0x264   : > { %1371 = vmatpush.bf16.msrb.mxu0 %v4515_v49  ;;  %1827 = vmatpush.bf16.msra.mxu1 %v4560_v46  ;;  %v4559_v49 = vld [vmem:[%s5647_s1 + $0x1a8] sm:$0xff]  ;;  %v4594_v46 = vld [vmem:[%s5648_s2 + $0x200] sm:$0xff] }
 0x265   : > { %1892 = vmatpush.bf16.msra.mxu2 %v4576_v47  ;;  %v4609_v47 = vld [vmem:[%s5649_s3 + $0x1f8] sm:$0xff] }
 0x268   : > { %1372 = vmatpush.bf16.msrb.mxu0 %v4514_v52  ;;  %1828 = vmatpush.bf16.msra.mxu1 %v4559_v49  ;;  %v4558_v52 = vld [vmem:[%s5647_s1 + $0x1a0] sm:$0xff]  ;;  %v4607_v49 = vld [vmem:[%s5649_s3 + $0x1e8] sm:$0xff] }
 0x269   : > { %1893 = vmatpush.bf16.msra.mxu2 %v4575_v50  ;;  %v4606_v50 = vld [vmem:[%s5649_s3 + $0x1e0] sm:$0xff] }
 0x26c   : > { %1765 = vmatpush.bf16.msra.mxu0 %v4569_v42  ;;  %1829 = vmatpush.bf16.msra.mxu1 %v4558_v52  ;;  %v4579_v42 = vld [vmem:[%s5648_s2 + $0x188] sm:$0xff] }
 0x26d   : > { %1894 = vmatpush.bf16.msra.mxu2 %v4574_v53  ;;  %v4605_v53 = vld [vmem:[%s5649_s3 + $0x1d8] sm:$0xff] }
 0x270   : > { %1766 = vmatpush.bf16.msra.mxu0 %v4568_v45  ;;  %1830 = vmatpush.bf16.msra.mxu1 %v4557_v55  ;;  %v4578_v45 = vld [vmem:[%s5648_s2 + $0x180] sm:$0xff] }
 0x271   : > { %1895 = vmatpush.bf16.msra.mxu2 %v4573_v56 }
 0x274   : > { %1767 = vmatpush.bf16.msra.mxu0 %v4567_v48  ;;  %v4608_v48 = vld [vmem:[%s5649_s3 + $0x1f0] sm:$0xff] }
 0x278   : > { %1768 = vmatpush.bf16.msra.mxu0 %v4566_v51 }
 0x27c   : > { %1769 = vmatpush.bf16.msra.mxu0 %v4565_v54  ;;  %v5374_v54 = vld [vmem:[%s5651_s5 + $0x8] sm:$0xf] }
 0x27d   : > { %v1905_v56 = vperm.slane %v5374_v54, 0 }
 0x280   : > { %1770 = vmatpush.bf16.msra.mxu0 %v4564_v57 }
 0x2da   : > { %v1115_v58 = vpop.f32.mrf.mxu0 }
 0x2dc   : > { %v1176_v59 = vpop.f32.mrf.mxu1 }
 0x2dd   : > { %v1177_v62 = vadd.f32 %v1176_v59, %v1115_v58  ;;  %v1449_v58 = vperm.slane %v5156_v61, 2  ;;  %v4598_v61 = vld [vmem:[%s5648_s2 + $0x220] sm:$0xff] }
 0x2e2   : > { %v1117_v0 = vpop.f32.mrf.mxu0  ;;  %v1241_v1 = vpop.f32.mrf.mxu2 }
 0x2e3   : > { %v1245_v3 = vadd.f32 %v1241_v1, %v1177_v62  ;;  %v4556_v1 = vld [vmem:[%s5647_s1 + $0x190] sm:$0xff] }
 0x2e4   : > { %v1178_v4 = vpop.f32.mrf.mxu1  ;;  %1831 = vmatpush.bf16.msra.mxu1 %v4556_v1 }
 0x2e5   : > { %v1247_v5 = vadd.f32 %v1246_v63, %v1245_v3  ;;  %v4572_v3 = vld [vmem:[%s5647_s1 + $0x210] sm:$0xff]  ;;  %v4563_v4 = vld [vmem:[%s5647_s1 + $0x1c8] sm:$0xff] }
 0x2e6   : > { %1896 = vmatpush.bf16.msra.mxu2 %v4572_v3  ;;  %1771 = vmatpush.bf16.msra.mxu0 %v4563_v4 }
 0x2e7   : > { %v1248_v6 = vmax.f32 %v1247_v5, 0.0  ;;  %v4555_v5 = vld [vmem:[%s5647_s1 + $0x188] sm:$0xff] }
 0x2e8   : > { %1832 = vmatpush.bf16.msra.mxu1 %v4555_v5 }
 0x2e9   : > { %v1250_v7 = vrot.slane %v1248_v6, 7  ;;  %v1378_v8 = vrot.slane %v1248_v6, 1  ;;  %v1255_v9 = vpack.c.bf16 %v1248_v6, %v1248_v6  ;;  %v4571_v6 = vld [vmem:[%s5647_s1 + $0x208] sm:$0xff] }
 0x2ea   : > { %v1243_v10 = vpop.f32.mrf.mxu2  ;;  %1897 = vmatpush.bf16.msra.mxu2 %v4571_v6 }
 0x2eb   : > { %v1252_v12 = vsel %vm587_vm5, 0.0, %v1250_v7  ;;  %v1380_v13 = vsel %vm718_vm7, %v1378_v8, 0.0  ;;  %1312 = vmatmul.bf16.vlgmr.msra.gmra.mxu3 %v1255_v9  ;;  %v4562_v7 = vld [vmem:[%s5647_s1 + $0x1c0] sm:$0xff]  ;;  %v4593_v10 = vld [vmem:[%s5648_s2 + $0x1f8] sm:$0xff] }
 0x2ec   : > { %v3525_v14 = vpack.c.bf16 %v1252_v12, %v1252_v12  ;;  %v3560_v15 = vpack.c.bf16 %v1380_v13, %v1380_v13  ;;  %1772 = vmatpush.bf16.msra.mxu0 %v4562_v7  ;;  %v4554_v8 = vld [vmem:[%s5647_s1 + $0x180] sm:$0xff]  ;;  %v4585_v12 = vld [vmem:[%s5648_s2 + $0x1b8] sm:$0xff]  ;;  %1963 = vmatpush.bf16.msra.mxu3 %v4593_v10  ;;  %v4603_v10 = vld [vmem:[%s5649_s3 + $0x1c8] sm:$0xff] }
 0x2ed   : > { %v4570_v9 = vld [vmem:[%s5647_s1 + $0x200] sm:$0xff]  ;;  %1833 = vmatpush.bf16.msra.mxu1 %v4554_v8  ;;  %v4601_v13 = vld [vmem:[%s5648_s2 + $0x238] sm:$0xff] }
 0x2ee   : > { %3526 = vmatmul.msk.bf16.vlgmr.msrb.gmra.mxu0 %vm4933_vm8, %v3525_v14  ;;  %3561 = vmatmul.msk.bf16.vlgmr.msrb.gmra.mxu1 %vm4939_vm9, %v3560_v15  ;;  %v4592_v14 = vld [vmem:[%s5648_s2 + $0x1f0] sm:$0xff] }
 0x2ef   : > { %1898 = vmatpush.bf16.msra.mxu2 %v4570_v9  ;;  %v4584_v15 = vld [vmem:[%s5648_s2 + $0x1b0] sm:$0xff] }
 0x2f0   : > { %2024 = vmatpush.bf16.msrb.mxu0 %v4585_v12  ;;  %1964 = vmatpush.bf16.msra.mxu3 %v4592_v14  ;;  %v4604_v9 = vld [vmem:[%s5649_s3 + $0x1d0] sm:$0xff]  ;;  %v4602_v12 = vld [vmem:[%s5649_s3 + $0x1c0] sm:$0xff] }
 0x2f1   : > { %2090 = vmatpush.bf16.msrb.mxu1 %v4601_v13  ;;  %v4617_v13 = vld [vmem:[%s5650_s4 + $0x1f8] sm:$0xff]  ;;  %v4616_v14 = vld [vmem:[%s5650_s4 + $0x1f0] sm:$0xff] }
 0x2f4   : > { %2025 = vmatpush.bf16.msrb.mxu0 %v4584_v15  ;;  %1965 = vmatpush.bf16.msra.mxu3 %v4591_v17  ;;  %v4615_v15 = vld [vmem:[%s5650_s4 + $0x1e8] sm:$0xff]  ;;  %v4613_v17 = vld [vmem:[%s5650_s4 + $0x1d8] sm:$0xff] }
 0x2f5   : > { %2091 = vmatpush.bf16.msrb.mxu1 %v4600_v16  ;;  %v4614_v16 = vld [vmem:[%s5650_s4 + $0x1e0] sm:$0xff] }
 0x2f8   : > { %2026 = vmatpush.bf16.msrb.mxu0 %v4583_v19  ;;  %1966 = vmatpush.bf16.msra.mxu3 %v4590_v22  ;;  %v4612_v22 = vld [vmem:[%s5650_s4 + $0x1d0] sm:$0xff] }
 0x2f9   : > { %2092 = vmatpush.bf16.msrb.mxu1 %v4599_v20 }
 0x2fd   : > { %2093 = vmatpush.bf16.msrb.mxu1 %v4598_v61  ;;  %v4610_v61 = vld [vmem:[%s5650_s4 + $0x1c0] sm:$0xff] }
 0x36b   : > { %v1374_v26 = vpop.f32.mrf.mxu0  ;;  %v1440_v27 = vpop.f32.mrf.mxu1 }
 0x36e   : > { %v1313_v29 = vpop.f32.mrf.mxu3 }
 0x36f   : > { %v1375_v30 = vadd.f32 %v1374_v26, %v1313_v29 }
 0x371   : > { %v1444_v32 = vadd.f32 %v1440_v27, %v1375_v30 }
 0x373   : > { %v1446_v34 = vadd.f32 %v1445_v31, %v1444_v32  ;;  %v1376_v35 = vpop.f32.mrf.mxu0  ;;  %v1442_v36 = vpop.f32.mrf.mxu1 }
 0x374   : > { %v4589_v35 = vld [vmem:[%s5648_s2 + $0x1d8] sm:$0xff] }
 0x375   : > { %v1447_v38 = vmax.f32 %v1446_v34, 0.0  ;;  %1967 = vmatpush.bf16.msra.mxu3 %v4589_v35  ;;  %v4581_v36 = vld [vmem:[%s5648_s2 + $0x198] sm:$0xff] }
 0x376   : > { %v1315_v40 = vpop.f32.mrf.mxu3  ;;  %v4633_v35 = vld [vmem:[%s5647_s1 + $0x2b8] sm:$0xff] }
 0x377   : > { %v1448_v41 = vpack.c.bf16 %v1447_v38, %v1447_v38  ;;  %v4597_v38 = vld [vmem:[%s5648_s2 + $0x218] sm:$0xff]  ;;  %v4588_v40 = vld [vmem:[%s5648_s2 + $0x1d0] sm:$0xff] }
 0x378   : > { %2094 = vmatpush.bf16.msrb.mxu1 %v4597_v38  ;;  %v4641_v38 = vld [vmem:[%s5647_s1 + $0x2f8] sm:$0xff] }
 0x379   : > { %1506 = vmatmul.bf16.vlgmr.msrb.gmra.mxu2 %v1448_v41  ;;  %1968 = vmatpush.bf16.msra.mxu3 %v4588_v40  ;;  %v4580_v41 = vld [vmem:[%s5648_s2 + $0x190] sm:$0xff] }
 0x37a   : > { %2157 = vmatpush.bf16.msrb.mxu2 %v4609_v47  ;;  %v4632_v40 = vld [vmem:[%s5647_s1 + $0x2b0] sm:$0xff]  ;;  %v4629_v47 = vld [vmem:[%s5647_s1 + $0x298] sm:$0xff] }
 0x37c   : > { %2095 = vmatpush.bf16.msrb.mxu1 %v4596_v11  ;;  %v4640_v11 = vld [vmem:[%s5647_s1 + $0x2f0] sm:$0xff] }
 0x37d   : > { %1969 = vmatpush.bf16.msra.mxu3 %v4587_v2  ;;  %v4631_v2 = vld [vmem:[%s5647_s1 + $0x2a8] sm:$0xff] }
 0x37e   : > { %2158 = vmatpush.bf16.msrb.mxu2 %v4608_v48  ;;  %v4621_v48 = vld [vmem:[%s5647_s1 + $0x258] sm:$0xff] }
 0x380   : > { %2096 = vmatpush.bf16.msrb.mxu1 %v4595_v43  ;;  %v4639_v43 = vld [vmem:[%s5647_s1 + $0x2e8] sm:$0xff] }
 0x381   : > { %1970 = vmatpush.bf16.msra.mxu3 %v4586_v44  ;;  %v4630_v44 = vld [vmem:[%s5647_s1 + $0x2a0] sm:$0xff] }
 0x382   : > { %2159 = vmatpush.bf16.msrb.mxu2 %v4607_v49  ;;  %v4637_v49 = vld [vmem:[%s5647_s1 + $0x2d8] sm:$0xff] }
 0x384   : > { %2097 = vmatpush.bf16.msrb.mxu1 %v4594_v46  ;;  %v4638_v46 = vld [vmem:[%s5647_s1 + $0x2e0] sm:$0xff] }
 0x386   : > { %2160 = vmatpush.bf16.msrb.mxu2 %v4606_v50  ;;  %v4628_v50 = vld [vmem:[%s5647_s1 + $0x290] sm:$0xff] }
 0x38a   : > { %2161 = vmatpush.bf16.msrb.mxu2 %v4605_v53 }
 0x38e   : > { %2162 = vmatpush.bf16.msrb.mxu2 %v4604_v9  ;;  %v4664_v9 = vld [vmem:[%s5648_s2 + $0x2f0] sm:$0xff] }
 0x392   : > { %2163 = vmatpush.bf16.msrb.mxu2 %v4603_v10  ;;  %v4655_v10 = vld [vmem:[%s5648_s2 + $0x2a8] sm:$0xff] }
 0x396   : > { %2164 = vmatpush.bf16.msrb.mxu2 %v4602_v12  ;;  %v4647_v12 = vld [vmem:[%s5648_s2 + $0x268] sm:$0xff] }
 0x3fc   : > { %v1507_v59 = vpop.f32.mrf.mxu2 }
 0x3fd   : > { %v1508_v60 = vadd.f32 %v1507_v59, %v1449_v58 }
 0x3ff   : > { %v1511_v62 = vmax.f32 %v1508_v60, 0.0 }
 0x401   : > { %v1512_v63 = vpack.c.bf16 %v1511_v62, %v1511_v62 }
 0x403   : > { %1570 = vmatmul.bf16.vlgmr.msrb.gmra.mxu3 %v1512_v63 }
 0x404   : > { %v1509_v0 = vpop.f32.mrf.mxu2  ;;  %2221 = vmatpush.bf16.msrb.mxu3 %v4617_v13  ;;  %v4663_v13 = vld [vmem:[%s5648_s2 + $0x2e8] sm:$0xff] }
 0x408   : > { %2222 = vmatpush.bf16.msrb.mxu3 %v4616_v14  ;;  %v4654_v14 = vld [vmem:[%s5648_s2 + $0x2a0] sm:$0xff] }
 0x40c   : > { %2223 = vmatpush.bf16.msrb.mxu3 %v4615_v15  ;;  %v2172_v15 = vperm.slane %v5374_v54, 3 }
 0x410   : > { %2224 = vmatpush.bf16.msrb.mxu3 %v4614_v16 }
 0x414   : > { %2225 = vmatpush.bf16.msrb.mxu3 %v4613_v17 }
 0x418   : > { %2226 = vmatpush.bf16.msrb.mxu3 %v4612_v22 }
 0x486   : > { %v1571_v24 = vpop.f32.mrf.mxu3 }
 0x487   : > { %v1572_v25 = vadd.f32 %v1571_v24, %v1513_v23 }
 0x489   : > { %v1575_v26 = vadd.f32 %v1572_v25, %v5086_v33  ;;  %v4582_v33 = vld [vmem:[%s5648_s2 + $0x1a0] sm:$0xff]  ;;  %v2104_v25 = vperm.slane %v5374_v54, 1 }
 0x48a   : > { %2027 = vmatpush.bf16.msrb.mxu0 %v4582_v33  ;;  %v4611_v33 = vld [vmem:[%s5650_s4 + $0x1c8] sm:$0xff] }
 0x48b   : > { %v5304_v27 = vmax.f32 %v1575_v26, 0.0  ;;  %2227 = vmatpush.bf16.msrb.mxu3 %v4611_v33  ;;  %v4643_v33 = vld [vmem:[%s5648_s2 + $0x248] sm:$0xff] }
 0x48d   : > { %v1712_v28 = vrot.slane %v5304_v27, 6  ;;  %v1839_v29 = vrot.slane %v5304_v27, 2  ;;  %v1716_v30 = vpack.c.bf16 %v5304_v27, %v5304_v27 }
 0x48e   : > { %v1573_v31 = vpop.f32.mrf.mxu3  ;;  %2028 = vmatpush.bf16.msrb.mxu0 %v4581_v36  ;;  %v4625_v36 = vld [vmem:[%s5647_s1 + $0x278] sm:$0xff] }
 0x48f   : > { %v3822_v32 = vpack.c.bf16 %v1712_v28, %v1712_v28  ;;  %v3857_v34 = vpack.c.bf16 %v1839_v29, %v1839_v29  ;;  %1773 = vmatmul.bf16.vlgmr.msra.gmra.mxu0 %v1716_v30  ;;  %2228 = vmatpush.bf16.msrb.mxu3 %v4610_v61  ;;  %v4659_v61 = vld [vmem:[%s5648_s2 + $0x2c8] sm:$0xff] }
 0x491   : > { %3823 = vmatmul.msk.bf16.vlgmr.msra.gmra.mxu1 %vm4844_vm2, %v3822_v32  ;;  %3858 = vmatmul.msk.bf16.vlgmr.msra.gmra.mxu2 %vm4850_vm3, %v3857_v34 }
 0x492   : > { %2029 = vmatpush.bf16.msrb.mxu0 %v4580_v41  ;;  %2485 = vmatpush.bf16.msra.mxu1 %v4625_v36  ;;  %v4624_v41 = vld [vmem:[%s5647_s1 + $0x270] sm:$0xff]  ;;  %v4642_v36 = vld [vmem:[%s5648_s2 + $0x240] sm:$0xff] }
 0x493   : > { %2550 = vmatpush.bf16.msra.mxu2 %v4641_v38  ;;  %v4658_v38 = vld [vmem:[%s5648_s2 + $0x2c0] sm:$0xff] }
 0x496   : > { %2030 = vmatpush.bf16.msrb.mxu0 %v4579_v42  ;;  %2486 = vmatpush.bf16.msra.mxu1 %v4624_v41  ;;  %v4623_v42 = vld [vmem:[%s5647_s1 + $0x268] sm:$0xff]  ;;  %v4672_v41 = vld [vmem:[%s5649_s3 + $0x2b0] sm:$0xff] }
 0x497   : > { %2551 = vmatpush.bf16.msra.mxu2 %v4640_v11  ;;  %v4671_v11 = vld [vmem:[%s5649_s3 + $0x2a8] sm:$0xff] }
 0x49a   : > { %2031 = vmatpush.bf16.msrb.mxu0 %v4578_v45  ;;  %2487 = vmatpush.bf16.msra.mxu1 %v4623_v42  ;;  %v4622_v45 = vld [vmem:[%s5647_s1 + $0x260] sm:$0xff] }
 0x49b   : > { %2552 = vmatpush.bf16.msra.mxu2 %v4639_v43 }
 0x49e   : > { %2424 = vmatpush.bf16.msra.mxu0 %v4633_v35  ;;  %2488 = vmatpush.bf16.msra.mxu1 %v4622_v45  ;;  %v4650_v35 = vld [vmem:[%s5648_s2 + $0x280] sm:$0xff]  ;;  %v5592_v45 = vld [vmem:[%s5651_s5 + $0xc] sm:$0xf] }
 0x49f   : > { %2553 = vmatpush.bf16.msra.mxu2 %v4638_v46 }
 0x4a2   : > { %2425 = vmatpush.bf16.msra.mxu0 %v4632_v40  ;;  %2489 = vmatpush.bf16.msra.mxu1 %v4621_v48  ;;  %v4673_v40 = vld [vmem:[%s5649_s3 + $0x2b8] sm:$0xff] }
 0x4a3   : > { %2554 = vmatpush.bf16.msra.mxu2 %v4637_v49 }
 0x4a6   : > { %2426 = vmatpush.bf16.msra.mxu0 %v4631_v2  ;;  %v4670_v2 = vld [vmem:[%s5649_s3 + $0x2a0] sm:$0xff] }
 0x4aa   : > { %2427 = vmatpush.bf16.msra.mxu0 %v4630_v44  ;;  %v4669_v44 = vld [vmem:[%s5649_s3 + $0x298] sm:$0xff] }
 0x4ae   : > { %2428 = vmatpush.bf16.msra.mxu0 %v4629_v47  ;;  %v2564_v47 = vperm.slane %v5592_v45, 0 }
 0x4b2   : > { %2429 = vmatpush.bf16.msra.mxu0 %v4628_v50 }
 0x50c   : > { %v1774_v51 = vpop.f32.mrf.mxu0 }
 0x50e   : > { %v1835_v52 = vpop.f32.mrf.mxu1 }
 0x50f   : > { %v1836_v55 = vadd.f32 %v1835_v52, %v1774_v51  ;;  %v2108_v51 = vperm.slane %v5374_v54, 2  ;;  %v4662_v54 = vld [vmem:[%s5648_s2 + $0x2e0] sm:$0xff] }
 0x514   : > { %v1776_v57 = vpop.f32.mrf.mxu0  ;;  %v1900_v58 = vpop.f32.mrf.mxu2 }
 0x515   : > { %v1904_v59 = vadd.f32 %v1900_v58, %v1836_v55  ;;  %v4620_v58 = vld [vmem:[%s5647_s1 + $0x250] sm:$0xff] }
 0x516   : > { %v1837_v60 = vpop.f32.mrf.mxu1  ;;  %2490 = vmatpush.bf16.msra.mxu1 %v4620_v58 }
 0x517   : > { %v1906_v62 = vadd.f32 %v1905_v56, %v1904_v59  ;;  %v4636_v59 = vld [vmem:[%s5647_s1 + $0x2d0] sm:$0xff]  ;;  %v4627_v60 = vld [vmem:[%s5647_s1 + $0x288] sm:$0xff] }
 0x518   : > { %2555 = vmatpush.bf16.msra.mxu2 %v4636_v59  ;;  %2430 = vmatpush.bf16.msra.mxu0 %v4627_v60 }
 0x519   : > { %v1907_v63 = vmax.f32 %v1906_v62, 0.0  ;;  %v4619_v62 = vld [vmem:[%s5647_s1 + $0x248] sm:$0xff] }
 0x51a   : > { %2491 = vmatpush.bf16.msra.mxu1 %v4619_v62 }
 0x51b   : > { %v1909_v0 = vrot.slane %v1907_v63, 7  ;;  %v2037_v1 = vrot.slane %v1907_v63, 1  ;;  %v1914_v3 = vpack.c.bf16 %v1907_v63, %v1907_v63  ;;  %v4635_v63 = vld [vmem:[%s5647_s1 + $0x2c8] sm:$0xff] }
 0x51c   : > { %v1902_v4 = vpop.f32.mrf.mxu2  ;;  %2556 = vmatpush.bf16.msra.mxu2 %v4635_v63 }
 0x51d   : > { %v1911_v5 = vsel %vm587_vm5, 0.0, %v1909_v0  ;;  %v2039_v6 = vsel %vm718_vm7, %v2037_v1, 0.0  ;;  %1971 = vmatmul.bf16.vlgmr.msra.gmra.mxu3 %v1914_v3  ;;  %v4626_v0 = vld [vmem:[%s5647_s1 + $0x280] sm:$0xff]  ;;  %v4657_v4 = vld [vmem:[%s5648_s2 + $0x2b8] sm:$0xff] }
 0x51e   : > { %v3924_v7 = vpack.c.bf16 %v1911_v5, %v1911_v5  ;;  %v3959_v8 = vpack.c.bf16 %v2039_v6, %v2039_v6  ;;  %2431 = vmatpush.bf16.msra.mxu0 %v4626_v0  ;;  %v4618_v1 = vld [vmem:[%s5647_s1 + $0x240] sm:$0xff]  ;;  %v4649_v5 = vld [vmem:[%s5648_s2 + $0x278] sm:$0xff]  ;;  %2622 = vmatpush.bf16.msra.mxu3 %v4657_v4  ;;  %v4668_v0 = vld [vmem:[%s5649_s3 + $0x290] sm:$0xff] }
 0x51f   : > { %v4634_v3 = vld [vmem:[%s5647_s1 + $0x2c0] sm:$0xff]  ;;  %2492 = vmatpush.bf16.msra.mxu1 %v4618_v1  ;;  %v4665_v6 = vld [vmem:[%s5648_s2 + $0x2f8] sm:$0xff]  ;;  %v4667_v1 = vld [vmem:[%s5649_s3 + $0x288] sm:$0xff] }
 0x520   : > { %3925 = vmatmul.msk.bf16.vlgmr.msrb.gmra.mxu0 %vm4933_vm8, %v3924_v7  ;;  %3960 = vmatmul.msk.bf16.vlgmr.msrb.gmra.mxu1 %vm4939_vm9, %v3959_v8  ;;  %v4656_v7 = vld [vmem:[%s5648_s2 + $0x2b0] sm:$0xff]  ;;  %v4679_v4 = vld [vmem:[%s5650_s4 + $0x2a8] sm:$0xff] }
 0x521   : > { %2557 = vmatpush.bf16.msra.mxu2 %v4634_v3  ;;  %v4648_v8 = vld [vmem:[%s5648_s2 + $0x270] sm:$0xff]  ;;  %v4666_v3 = vld [vmem:[%s5649_s3 + $0x280] sm:$0xff] }
 0x522   : > { %2683 = vmatpush.bf16.msrb.mxu0 %v4649_v5  ;;  %2623 = vmatpush.bf16.msra.mxu3 %v4656_v7  ;;  %v4678_v5 = vld [vmem:[%s5650_s4 + $0x2a0] sm:$0xff] }
 0x523   : > { %2749 = vmatpush.bf16.msrb.mxu1 %v4665_v6  ;;  %v4677_v6 = vld [vmem:[%s5650_s4 + $0x298] sm:$0xff] }
 0x526   : > { %2684 = vmatpush.bf16.msrb.mxu0 %v4648_v8  ;;  %2624 = vmatpush.bf16.msra.mxu3 %v4655_v10 }
 0x527   : > { %2750 = vmatpush.bf16.msrb.mxu1 %v4664_v9  ;;  %v4676_v9 = vld [vmem:[%s5650_s4 + $0x290] sm:$0xff] }
 0x52a   : > { %2685 = vmatpush.bf16.msrb.mxu0 %v4647_v12  ;;  %2625 = vmatpush.bf16.msra.mxu3 %v4654_v14 }
 0x52b   : > { %2751 = vmatpush.bf16.msrb.mxu1 %v4663_v13  ;;  %v2763_v13 = vperm.slane %v5592_v45, 1 }
 0x52f   : > { %2752 = vmatpush.bf16.msrb.mxu1 %v4662_v54 }
 0x533   : > { %2753 = vmatpush.bf16.msrb.mxu1 %v4661_v39  ;;  %v2831_v39 = vperm.slane %v5592_v45, 3 }
 0x59d   : > { %v2033_v19 = vpop.f32.mrf.mxu0  ;;  %v2099_v20 = vpop.f32.mrf.mxu1 }
 0x5a0   : > { %v1972_v23 = vpop.f32.mrf.mxu3 }
 0x5a1   : > { %v2034_v24 = vadd.f32 %v2033_v19, %v1972_v23 }
 0x5a3   : > { %v2103_v26 = vadd.f32 %v2099_v20, %v2034_v24 }
 0x5a5   : > { %v2105_v28 = vadd.f32 %v2104_v25, %v2103_v26  ;;  %v2035_v29 = vpop.f32.mrf.mxu0  ;;  %v2101_v30 = vpop.f32.mrf.mxu1 }
 0x5a6   : > { %v4653_v29 = vld [vmem:[%s5648_s2 + $0x298] sm:$0xff]  ;;  %v4652_v30 = vld [vmem:[%s5648_s2 + $0x290] sm:$0xff] }
 0x5a7   : > { %v2106_v31 = vmax.f32 %v2105_v28, 0.0  ;;  %2626 = vmatpush.bf16.msra.mxu3 %v4653_v29 }
 0x5a8   : > { %v1974_v32 = vpop.f32.mrf.mxu3 }
 0x5a9   : > { %v2107_v34 = vpack.c.bf16 %v2106_v31, %v2106_v31  ;;  %v4644_v31 = vld [vmem:[%s5648_s2 + $0x250] sm:$0xff] }
 0x5aa   : > { %v4660_v32 = vld [vmem:[%s5648_s2 + $0x2d0] sm:$0xff] }
 0x5ab   : > { %2165 = vmatmul.bf16.vlgmr.msrb.gmra.mxu2 %v2107_v34  ;;  %2627 = vmatpush.bf16.msra.mxu3 %v4652_v30  ;;  %v4651_v34 = vld [vmem:[%s5648_s2 + $0x288] sm:$0xff] }
 0x5ac   : > { %2754 = vmatpush.bf16.msrb.mxu1 %v4660_v32  ;;  %2816 = vmatpush.bf16.msrb.mxu2 %v4673_v40 }
 0x5af   : > { %2628 = vmatpush.bf16.msra.mxu3 %v4651_v34 }
 0x5b0   : > { %2755 = vmatpush.bf16.msrb.mxu1 %v4659_v61  ;;  %2817 = vmatpush.bf16.msrb.mxu2 %v4672_v41 }
 0x5b3   : > { %2629 = vmatpush.bf16.msra.mxu3 %v4650_v35 }
 0x5b4   : > { %2756 = vmatpush.bf16.msrb.mxu1 %v4658_v38  ;;  %2818 = vmatpush.bf16.msrb.mxu2 %v4671_v11 }
 0x5b8   : > { %2819 = vmatpush.bf16.msrb.mxu2 %v4670_v2 }
 0x5bc   : > { %2820 = vmatpush.bf16.msrb.mxu2 %v4669_v44 }
 0x5c0   : > { %2821 = vmatpush.bf16.msrb.mxu2 %v4668_v0 }
 0x5c4   : > { %2822 = vmatpush.bf16.msrb.mxu2 %v4667_v1 }
 0x5c8   : > { %2823 = vmatpush.bf16.msrb.mxu2 %v4666_v3 }
 0x62e   : > { %v2166_v52 = vpop.f32.mrf.mxu2 }
 0x62f   : > { %v2167_v53 = vadd.f32 %v2166_v52, %v2108_v51 }
 0x631   : > { %v2170_v55 = vmax.f32 %v2167_v53, 0.0 }
 0x633   : > { %v2171_v56 = vpack.c.bf16 %v2170_v55, %v2170_v55 }
 0x635   : > { %2229 = vmatmul.bf16.vlgmr.msrb.gmra.mxu3 %v2171_v56 }
 0x636   : > { %v2168_v57 = vpop.f32.mrf.mxu2  ;;  %2880 = vmatpush.bf16.msrb.mxu3 %v4681_v18 }
 0x63a   : > { %2881 = vmatpush.bf16.msrb.mxu3 %v4680_v21 }
 0x63e   : > { %2882 = vmatpush.bf16.msrb.mxu3 %v4679_v4 }
 0x642   : > { %2883 = vmatpush.bf16.msrb.mxu3 %v4678_v5 }
 0x646   : > { %2884 = vmatpush.bf16.msrb.mxu3 %v4677_v6 }
 0x64a   : > { %2885 = vmatpush.bf16.msrb.mxu3 %v4676_v9 }
 0x6b8   : > { %v2230_v16 = vpop.f32.mrf.mxu3 }
 0x6b9   : > { %v2231_v17 = vadd.f32 %v2230_v16, %v2172_v15 }
 0x6bb   : > { %v2234_v19 = vadd.f32 %v2231_v17, %v5304_v27  ;;  %v4646_v27 = vld [vmem:[%s5648_s2 + $0x260] sm:$0xff] }
 0x6bc   : > { %2686 = vmatpush.bf16.msrb.mxu0 %v4646_v27 }
 0x6bd   : > { %v5522_v20 = vmax.f32 %v2234_v19, 0.0 }
 0x6bf   : > { %v2371_v22 = vrot.slane %v5522_v20, 6  ;;  %v2498_v23 = vrot.slane %v5522_v20, 2  ;;  %v2375_v24 = vpack.c.bf16 %v5522_v20, %v5522_v20 }
 0x6c0   : > { %v2232_v25 = vpop.f32.mrf.mxu3  ;;  %2687 = vmatpush.bf16.msrb.mxu0 %v4645_v37 }
 0x6c1   : > { %v4221_v26 = vpack.c.bf16 %v2371_v22, %v2371_v22  ;;  %v4256_v28 = vpack.c.bf16 %v2498_v23, %v2498_v23  ;;  %2432 = vmatmul.bf16.vlgmr.msra.gmra.mxu0 %v2375_v24  ;;  %v4675_v24 = vld [vmem:[%s5650_s4 + $0x288] sm:$0xff]  ;;  %v4674_v25 = vld [vmem:[%s5650_s4 + $0x280] sm:$0xff] }
 0x6c2   : > { %2886 = vmatpush.bf16.msrb.mxu3 %v4675_v24 }
 0x6c3   : > { %4222 = vmatmul.msk.bf16.vlgmr.msra.gmra.mxu1 %vm4844_vm2, %v4221_v26  ;;  %4257 = vmatmul.msk.bf16.vlgmr.msra.gmra.mxu2 %vm4850_vm3, %v4256_v28  ;;  %v2767_v26 = vperm.slane %v5592_v45, 2 }
 0x6c4   : > { %2688 = vmatpush.bf16.msrb.mxu0 %v4644_v31 }
 0x6c6   : > { %2887 = vmatpush.bf16.msrb.mxu3 %v4674_v25 }
 0x6c8   : > { %2689 = vmatpush.bf16.msrb.mxu0 %v4643_v33 }
 0x6cc   : > { %2690 = vmatpush.bf16.msrb.mxu0 %v4642_v36 }
 0x73e   : > { %v2433_v42 = vpop.f32.mrf.mxu0 }
 0x740   : > { %v2494_v43 = vpop.f32.mrf.mxu1 }
 0x741   : > { %v2495_v46 = vadd.f32 %v2494_v43, %v2433_v42 }
 0x746   : > { %v2435_v48 = vpop.f32.mrf.mxu0  ;;  %v2559_v49 = vpop.f32.mrf.mxu2 }
 0x747   : > { %v2563_v50 = vadd.f32 %v2559_v49, %v2495_v46 }
 0x748   : > { %v2496_v51 = vpop.f32.mrf.mxu1 }
 0x749   : > { %v2565_v52 = vadd.f32 %v2564_v47, %v2563_v50 }
 0x74b   : > { %v2566_v53 = vmax.f32 %v2565_v52, 0.0 }
 0x74d   : > { %v2568_v55 = vrot.slane %v2566_v53, 7  ;;  %v2696_v56 = vrot.slane %v2566_v53, 1  ;;  %v2573_v57 = vpack.c.bf16 %v2566_v53, %v2566_v53 }
 0x74e   : > { %v2561_v58 = vpop.f32.mrf.mxu2 }
 0x74f   : > { %v2570_v59 = vsel %vm587_vm5, 0.0, %v2568_v55  ;;  %v2698_v60 = vsel %vm718_vm7, %v2696_v56, 0.0  ;;  %2630 = vmatmul.bf16.vlgmr.msra.gmra.mxu3 %v2573_v57 }
 0x750   : > { %v4323_v62 = vpack.c.bf16 %v2570_v59, %v2570_v59  ;;  %v4358_v63 = vpack.c.bf16 %v2698_v60, %v2698_v60 }
 0x752   : > { %4324 = vmatmul.msk.bf16.vlgmr.msrb.gmra.mxu0 %vm4933_vm8, %v4323_v62  ;;  %4359 = vmatmul.msk.bf16.vlgmr.msrb.gmra.mxu1 %vm4939_vm9, %v4358_v63 }
 0x7cf   : > { %v2692_v7 = vpop.f32.mrf.mxu0  ;;  %v2758_v8 = vpop.f32.mrf.mxu1 }
 0x7d2   : > { %v2631_v10 = vpop.f32.mrf.mxu3 }
 0x7d3   : > { %v2693_v12 = vadd.f32 %v2692_v7, %v2631_v10 }
 0x7d5   : > { %v2762_v14 = vadd.f32 %v2758_v8, %v2693_v12 }
 0x7d7   : > { %v2764_v15 = vadd.f32 %v2763_v13, %v2762_v14  ;;  %v2694_v16 = vpop.f32.mrf.mxu0  ;;  %v2760_v17 = vpop.f32.mrf.mxu1 }
 0x7d9   : > { %v2765_v19 = vmax.f32 %v2764_v15, 0.0 }
 0x7da   : > { %v2633_v22 = vpop.f32.mrf.mxu3 }
 0x7db   : > { %v2766_v23 = vpack.c.bf16 %v2765_v19, %v2765_v19 }
 0x7dd   : > { %2824 = vmatmul.bf16.vlgmr.msrb.gmra.mxu2 %v2766_v23 }
 0x860   : > { %v2825_v28 = vpop.f32.mrf.mxu2 }
 0x861   : > { %v2826_v27 = vadd.f32 %v2825_v28, %v2767_v26 }
 0x863   : > { %v2829_v54 = vmax.f32 %v2826_v27, 0.0 }
 0x865   : > { %v2830_v29 = vpack.c.bf16 %v2829_v54, %v2829_v54 }
 0x867   : > { %2888 = vmatmul.bf16.vlgmr.msrb.gmra.mxu3 %v2830_v29 }
 0x868   : > { %v2827_v37 = vpop.f32.mrf.mxu2 }
 0x8ea   : > { %v2889_v30 = vpop.f32.mrf.mxu3 }
 0x8eb   : > { %v2890_v31 = vadd.f32 %v2889_v30, %v2831_v39 }
 0x8ed   : > { %v2893_v32 = vadd.f32 %v2890_v31, %v5522_v20 }
 0x8ef   : > { %v2894_v34 = vmax.f32 %v2893_v32, 0.0 }
 0x8f1   : > { %v2895_v33 = vpack.c.bf16 %v2894_v34, %v2894_v34 }
 0x8f2   : > { %v2891_v61 = vpop.f32.mrf.mxu3 }
 0x8f3   : > { %2896 = vst [vmem:[%s246_s23] sm:$0x3] %v2895_v33 }
 0x8f4 PF: > { %s16_s21 = sadd.s32 1, %s4696_s21  }
 0x8f5   : > { %p13_p4 = scmp.ge.s32.totalorder %s16_s21, 4  }
 0x8f7   :  { %15 = sbr.rel (!%p13_p4) target bundleno = 1 (0x1), region = 89 }

</bundles_post_ra>
